<compile_context>
chip_gen: v6e
topology: v6e:2x2x1
jax: 0.10.0
libtpu: 0.0.40
codegen_flags: <defaults>
</compile_context>

<pallas_src>
import math

import jax
import jax.numpy as jnp
from jax.experimental import pallas as pl
from jax.experimental.pallas import tpu as pltpu


def ffn_sin_kernel(x_ref,
                   w1_ref, b1_ref,
                   w2_ref, b2_ref,
                   w3_ref, b3_ref,
                   w4_ref, b4_ref,
                   o_ref):
    """Fused 4-layer MLP with sin activations; whole hot path stays in VMEM."""
    x = x_ref[...].astype(jnp.float32)            # (bt, din), din tiny (e.g. 2)
    bt = x_ref.shape[0]
    din = x_ref.shape[1]
    d1 = w1_ref.shape[1]

    # ---- Layer 1: K = din is a degenerate MXU contraction -> VPU broadcast-FMA.
    pre1 = jnp.broadcast_to(b1_ref[...].astype(jnp.float32), (bt, d1))
    for k in range(din):                          # din is static & tiny -> unrolled
        pre1 = pre1 + x[:, k:k + 1] * w1_ref[k:k + 1, :].astype(jnp.float32)
    h1 = jnp.sin(pre1)

    # ---- Layers 2/3: bf16 operands on the MXU, f32 accumulation.
    h2 = jnp.sin(
        jnp.dot(h1.astype(w2_ref.dtype), w2_ref[...],
                preferred_element_type=jnp.float32) + b2_ref[...])
    h3 = jnp.sin(
        jnp.dot(h2.astype(w3_ref.dtype), w3_ref[...],
                preferred_element_type=jnp.float32) + b3_ref[...])

    # ---- Layer 4: output padded to a lane-dense 128-wide block; no activation.
    out = jnp.dot(h3.astype(w4_ref.dtype), w4_ref[...],
                  preferred_element_type=jnp.float32) + b4_ref[...]
    o_ref[...] = out.astype(o_ref.dtype)


def ffn_sin_forward(coord, params, *, batch_tile=256,
                    weight_dtype=jnp.bfloat16):
    """coord: [N, input_dim] float32 -> [N, 3] float32."""
    (w1, b1), (w2, b2), (w3, b3), (w4, b4) = params
    N, din = coord.shape
    d1, d2, d3, dout = w1.shape[1], w2.shape[1], w3.shape[1], w4.shape[1]

    # Lane-dense final layer: zero-pad output features up to a multiple of 128.
    dpad = max(128, ((dout + 127) // 128) * 128)
    w4p = jnp.zeros((w4.shape[0], dpad), jnp.float32).at[:, :dout].set(w4)
    b4p = jnp.zeros((1, dpad), jnp.float32).at[:, :dout].set(b4)

    # bf16 operands for the MXU layers (f32 accumulation inside the kernel).
    w2c = w2.astype(weight_dtype)
    w3c = w3.astype(weight_dtype)
    w4c = w4p.astype(weight_dtype)

    # Pick the batch tile: big tiles for real N, a single grid step for tiny N.
    if N <= batch_tile:
        bt = max(8, ((N + 7) // 8) * 8)
    else:
        bt = batch_tile
    n_pad = ((N + bt - 1) // bt) * bt
    x = coord
    if n_pad != N:
        x = jnp.zeros((n_pad, din), coord.dtype).at[:N].set(coord)

    grid = (n_pad // bt,)

    def full_block(shape):
        # whole-array block; index_map is constant so it stays resident in VMEM
        return pl.BlockSpec(shape, lambda i: (0, 0))

    def _nbytes(a):
        return int(a.size) * a.dtype.itemsize

    cost = pl.CostEstimate(
        flops=2 * n_pad * (din * d1 + d1 * d2 + d2 * d3 + d3 * dpad),
        transcendentals=n_pad * (d1 + d2 + d3),
        bytes_accessed=(_nbytes(x) + _nbytes(w1) + _nbytes(b1)
                        + _nbytes(w2c) + _nbytes(b2)
                        + _nbytes(w3c) + _nbytes(b3)
                        + _nbytes(w4c) + _nbytes(b4p)
                        + n_pad * dpad * 4),
    )

    out_padded = pl.pallas_call(
        ffn_sin_kernel,
        out_shape=jax.ShapeDtypeStruct((n_pad, dpad), jnp.float32),
        grid_spec=pltpu.PrefetchScalarGridSpec(
            num_scalar_prefetch=0,
            grid=grid,
            in_specs=[
                pl.BlockSpec((bt, din), lambda i: (i, 0)),   # x tile
                full_block(w1.shape), full_block(b1.shape),
                full_block(w2c.shape), full_block(b2.shape),
                full_block(w3c.shape), full_block(b3.shape),
                full_block(w4c.shape), full_block(b4p.shape),
            ],
            out_specs=pl.BlockSpec((bt, dpad), lambda i: (i, 0)),
        ),
        compiler_params=pltpu.CompilerParams(
            dimension_semantics=("parallel",)),
        cost_estimate=cost,
    )(x, w1, b1, w2c, b2, w3c, b3, w4c, b4p)

    return out_padded[:N, :dout]


def init_params(key, dims=(2, 1024, 512, 256, 3)):
    """Deterministic init matching torch.nn.Linear's default
    U(-1/sqrt(fan_in), 1/sqrt(fan_in)); weights stored as [in, out]."""
    params = []
    for fan_in, fan_out in zip(dims[:-1], dims[1:]):
        key, kw, kb = jax.random.split(key, 3)
        bound = 1.0 / math.sqrt(fan_in)
        w = jax.random.uniform(kw, (fan_in, fan_out), jnp.float32, -bound, bound)
        b = jax.random.uniform(kb, (1, fan_out), jnp.float32, -bound, bound)
        params.append((w, b))
    return params


def ffn_sin_reference(coord, params):
    h = coord
    for idx, (w, b) in enumerate(params):
        h = h @ w + b
        if idx < len(params) - 1:
            h = jnp.sin(h)
    return h


if __name__ == "__main__":
    key = jax.random.PRNGKey(0)
    k_params, k_x = jax.random.split(key)

    params = init_params(k_params)                        # Linear(2,1024/512/256/3)
    coord = jax.random.normal(k_x, (16, 2), jnp.float32)  # [batch=16, input_dim=2]

    out = ffn_sin_forward(coord, params)
    out = jax.block_until_ready(out)

    ref = ffn_sin_reference(coord, params)
    assert out.shape == (16, 3)
    # bf16 MXU operands vs f32 reference -> slightly looser tolerance
    assert jnp.allclose(out, ref, atol=3e-2, rtol=3e-2), "mismatch vs reference"

    print("KERNEL_OK")
</pallas_src>

<mosaic_0001>
module attributes {stable_mosaic.version = 11 : i64} {
  func.func @ffn_sin_kernel(%arg0: i32, %arg1: memref<16x2xf32, #tpu.memory_space<vmem>>, %arg2: memref<2x1024xf32, #tpu.memory_space<vmem>>, %arg3: memref<1x1024xf32, #tpu.memory_space<vmem>>, %arg4: memref<1024x512xbf16, #tpu.memory_space<vmem>>, %arg5: memref<1x512xf32, #tpu.memory_space<vmem>>, %arg6: memref<512x256xbf16, #tpu.memory_space<vmem>>, %arg7: memref<1x256xf32, #tpu.memory_space<vmem>>, %arg8: memref<256x128xbf16, #tpu.memory_space<vmem>>, %arg9: memref<1x128xf32, #tpu.memory_space<vmem>>, %arg10: memref<16x128xf32, #tpu.memory_space<vmem>>) attributes {dimension_semantics = [#tpu.dimension_semantics<parallel>], iteration_bounds = array<i64: 1>, scalar_prefetch = 0 : i64, scratch_operands = 0 : i64, tpu.core_type = #tpu.core_type<tc>, window_params = [{transform_indices = @transform_0, window_bounds = array<i64: 16, 2>}, {pipeline_mode = #tpu.pipeline_mode<synchronous>, transform_indices = @transform_1, window_bounds = array<i64: 2, 1024>}, {pipeline_mode = #tpu.pipeline_mode<synchronous>, transform_indices = @transform_2, window_bounds = array<i64: 1, 1024>}, {pipeline_mode = #tpu.pipeline_mode<synchronous>, transform_indices = @transform_3, window_bounds = array<i64: 1024, 512>}, {pipeline_mode = #tpu.pipeline_mode<synchronous>, transform_indices = @transform_4, window_bounds = array<i64: 1, 512>}, {pipeline_mode = #tpu.pipeline_mode<synchronous>, transform_indices = @transform_5, window_bounds = array<i64: 512, 256>}, {pipeline_mode = #tpu.pipeline_mode<synchronous>, transform_indices = @transform_6, window_bounds = array<i64: 1, 256>}, {pipeline_mode = #tpu.pipeline_mode<synchronous>, transform_indices = @transform_7, window_bounds = array<i64: 256, 128>}, {pipeline_mode = #tpu.pipeline_mode<synchronous>, transform_indices = @transform_8, window_bounds = array<i64: 1, 128>}, {transform_indices = @transform_9, window_bounds = array<i64: 16, 128>}]} {
    %c0 = arith.constant 0 : index
    %c0_0 = arith.constant 0 : index
    %0 = vector.load %arg1[%c0, %c0_0] : memref<16x2xf32, #tpu.memory_space<vmem>>, vector<16x2xf32>
    %c0_1 = arith.constant 0 : index
    %c0_2 = arith.constant 0 : index
    %1 = vector.load %arg3[%c0_1, %c0_2] : memref<1x1024xf32, #tpu.memory_space<vmem>>, vector<1x1024xf32>
    %2 = vector.shape_cast %1 : vector<1x1024xf32> to vector<1x1024xf32>
    %3 = vector.broadcast %2 : vector<1x1024xf32> to vector<16x1024xf32>
    %4 = vector.extract_strided_slice %0 {offsets = [0, 0], sizes = [16, 1], strides = [1, 1]} : vector<16x2xf32> to vector<16x1xf32>
    %c0_3 = arith.constant 0 : index
    %c0_4 = arith.constant 0 : index
    %5 = vector.load %arg2[%c0_3, %c0_4] : memref<2x1024xf32, #tpu.memory_space<vmem>>, vector<1x1024xf32>
    %6 = vector.broadcast %4 : vector<16x1xf32> to vector<16x1024xf32>
    %7 = vector.broadcast %5 : vector<1x1024xf32> to vector<16x1024xf32>
    %8 = arith.mulf %6, %7 : vector<16x1024xf32>
    %9 = arith.addf %3, %8 : vector<16x1024xf32>
    %10 = vector.extract_strided_slice %0 {offsets = [0, 1], sizes = [16, 1], strides = [1, 1]} : vector<16x2xf32> to vector<16x1xf32>
    %c1 = arith.constant 1 : index
    %c0_5 = arith.constant 0 : index
    %11 = vector.load %arg2[%c1, %c0_5] : memref<2x1024xf32, #tpu.memory_space<vmem>>, vector<1x1024xf32>
    %12 = vector.broadcast %10 : vector<16x1xf32> to vector<16x1024xf32>
    %13 = vector.broadcast %11 : vector<1x1024xf32> to vector<16x1024xf32>
    %14 = arith.mulf %12, %13 : vector<16x1024xf32>
    %15 = arith.addf %9, %14 : vector<16x1024xf32>
    %16 = math.sin %15 : vector<16x1024xf32>
    %17 = arith.truncf %16 : vector<16x1024xf32> to vector<16x1024xbf16>
    %c0_6 = arith.constant 0 : index
    %c0_7 = arith.constant 0 : index
    %18 = vector.load %arg4[%c0_6, %c0_7] : memref<1024x512xbf16, #tpu.memory_space<vmem>>, vector<1024x512xbf16>
    %cst = arith.constant dense<0.000000e+00> : vector<16x512xf32>
    %19 = tpu.matmul %17, %18, %cst {dimension_numbers = #tpu.dot_dimension_numbers<[1], [0], [0], [1], [0, 0, 1, 1], [], []>} : vector<16x1024xbf16>, vector<1024x512xbf16>, vector<16x512xf32> -> vector<16x512xf32>
    %c0_8 = arith.constant 0 : index
    %c0_9 = arith.constant 0 : index
    %20 = vector.load %arg5[%c0_8, %c0_9] : memref<1x512xf32, #tpu.memory_space<vmem>>, vector<1x512xf32>
    %21 = vector.broadcast %20 : vector<1x512xf32> to vector<16x512xf32>
    %22 = arith.addf %19, %21 : vector<16x512xf32>
    %23 = math.sin %22 : vector<16x512xf32>
    %24 = arith.truncf %23 : vector<16x512xf32> to vector<16x512xbf16>
    %c0_10 = arith.constant 0 : index
    %c0_11 = arith.constant 0 : index
    %25 = vector.load %arg6[%c0_10, %c0_11] : memref<512x256xbf16, #tpu.memory_space<vmem>>, vector<512x256xbf16>
    %cst_12 = arith.constant dense<0.000000e+00> : vector<16x256xf32>
    %26 = tpu.matmul %24, %25, %cst_12 {dimension_numbers = #tpu.dot_dimension_numbers<[1], [0], [0], [1], [0, 0, 1, 1], [], []>} : vector<16x512xbf16>, vector<512x256xbf16>, vector<16x256xf32> -> vector<16x256xf32>
    %c0_13 = arith.constant 0 : index
    %c0_14 = arith.constant 0 : index
    %27 = vector.load %arg7[%c0_13, %c0_14] : memref<1x256xf32, #tpu.memory_space<vmem>>, vector<1x256xf32>
    %28 = vector.broadcast %27 : vector<1x256xf32> to vector<16x256xf32>
    %29 = arith.addf %26, %28 : vector<16x256xf32>
    %30 = math.sin %29 : vector<16x256xf32>
    %31 = arith.truncf %30 : vector<16x256xf32> to vector<16x256xbf16>
    %c0_15 = arith.constant 0 : index
    %c0_16 = arith.constant 0 : index
    %32 = vector.load %arg8[%c0_15, %c0_16] : memref<256x128xbf16, #tpu.memory_space<vmem>>, vector<256x128xbf16>
    %cst_17 = arith.constant dense<0.000000e+00> : vector<16x128xf32>
    %33 = tpu.matmul %31, %32, %cst_17 {dimension_numbers = #tpu.dot_dimension_numbers<[1], [0], [0], [1], [0, 0, 1, 1], [], []>} : vector<16x256xbf16>, vector<256x128xbf16>, vector<16x128xf32> -> vector<16x128xf32>
    %c0_18 = arith.constant 0 : index
    %c0_19 = arith.constant 0 : index
    %34 = vector.load %arg9[%c0_18, %c0_19] : memref<1x128xf32, #tpu.memory_space<vmem>>, vector<1x128xf32>
    %35 = vector.broadcast %34 : vector<1x128xf32> to vector<16x128xf32>
    %36 = arith.addf %33, %35 : vector<16x128xf32>
    %c0_20 = arith.constant 0 : index
    %c0_21 = arith.constant 0 : index
    %37 = vector.load %arg10[%c0_20, %c0_21] : memref<16x128xf32, #tpu.memory_space<vmem>>, vector<16x128xf32>
    tpu.vector_store %arg10[%c0_20, %c0_21], %36 {strides = array<i32>} : memref<16x128xf32, #tpu.memory_space<vmem>>, vector<16x128xf32>,
    return
  }
  func.func @transform_0(%arg0: i32) -> (i32, i32) {
    %c0_i32 = arith.constant 0 : i32
    %c0_i32_0 = arith.constant 0 : i32
    return %arg0, %c0_i32 : i32, i32
  }
  func.func @transform_1(%arg0: i32) -> (i32, i32) {
    %c0_i32 = arith.constant 0 : i32
    %c0_i32_0 = arith.constant 0 : i32
    %c0_i32_1 = arith.constant 0 : i32
    return %c0_i32, %c0_i32_0 : i32, i32
  }
  func.func @transform_2(%arg0: i32) -> (i32, i32) {
    %c0_i32 = arith.constant 0 : i32
    %c0_i32_0 = arith.constant 0 : i32
    %c0_i32_1 = arith.constant 0 : i32
    return %c0_i32, %c0_i32_0 : i32, i32
  }
  func.func @transform_3(%arg0: i32) -> (i32, i32) {
    %c0_i32 = arith.constant 0 : i32
    %c0_i32_0 = arith.constant 0 : i32
    %c0_i32_1 = arith.constant 0 : i32
    return %c0_i32, %c0_i32_0 : i32, i32
  }
  func.func @transform_4(%arg0: i32) -> (i32, i32) {
    %c0_i32 = arith.constant 0 : i32
    %c0_i32_0 = arith.constant 0 : i32
    %c0_i32_1 = arith.constant 0 : i32
    return %c0_i32, %c0_i32_0 : i32, i32
  }
  func.func @transform_5(%arg0: i32) -> (i32, i32) {
    %c0_i32 = arith.constant 0 : i32
    %c0_i32_0 = arith.constant 0 : i32
    %c0_i32_1 = arith.constant 0 : i32
    return %c0_i32, %c0_i32_0 : i32, i32
  }
  func.func @transform_6(%arg0: i32) -> (i32, i32) {
    %c0_i32 = arith.constant 0 : i32
    %c0_i32_0 = arith.constant 0 : i32
    %c0_i32_1 = arith.constant 0 : i32
    return %c0_i32, %c0_i32_0 : i32, i32
  }
  func.func @transform_7(%arg0: i32) -> (i32, i32) {
    %c0_i32 = arith.constant 0 : i32
    %c0_i32_0 = arith.constant 0 : i32
    %c0_i32_1 = arith.constant 0 : i32
    return %c0_i32, %c0_i32_0 : i32, i32
  }
  func.func @transform_8(%arg0: i32) -> (i32, i32) {
    %c0_i32 = arith.constant 0 : i32
    %c0_i32_0 = arith.constant 0 : i32
    %c0_i32_1 = arith.constant 0 : i32
    return %c0_i32, %c0_i32_0 : i32, i32
  }
  func.func @transform_9(%arg0: i32) -> (i32, i32) {
    %c0_i32 = arith.constant 0 : i32
    %c0_i32_0 = arith.constant 0 : i32
    return %arg0, %c0_i32 : i32, i32
  }
}

</mosaic_0001>

<bundles_post_ra>
// kernel: tpu_custom_call.1
= control target key start
LH: loop header
LB: loop body
LE: loop exit
PB: predicated region body
PF: predicated region fallthrough
CT: control target
= control target key end

     0   :  { %14 = vsyncpa [#allocation3], 0  ;;  %s9785_s0 = inlined_call_operand.vmem [shape: f32[16,2], index: 0, kind: input, shape index: {}]   ;;  %s9786_s1 = inlined_call_operand.vmem [shape: f32[2,1024], index: 1, kind: input, shape index: {}]   ;;  %s9787_s2 = inlined_call_operand.hbm [shape: f32[1,1024], index: 2, kind: input, shape index: {}]   ;;  %s9788_s3 = inlined_call_operand.hbm [shape: bf16[1024,512], index: 3, kind: input, shape index: {}]   ;;  %s9789_s4 = inlined_call_operand.vmem [shape: f32[1,512], index: 4, kind: input, shape index: {}]   ;;  %s9790_s5 = inlined_call_operand.hbm [shape: bf16[512,256], index: 5, kind: input, shape index: {}]   ;;  %s9791_s6 = inlined_call_operand.vmem [shape: f32[1,256], index: 6, kind: input, shape index: {}]   ;;  %s9792_s7 = inlined_call_operand.hbm [shape: bf16[256,128], index: 7, kind: input, shape index: {}]   ;;  %s9793_s8 = inlined_call_operand.vmem [shape: f32[1,128], index: 8, kind: input, shape index: {}]   ;;  %s9794_s9 = inlined_call_operand.hbm [shape: f32[16,128], index: 9, kind: output, shape index: {}]  }
   0x1   :  { %15 = vsyncpa [#allocation6], 0 }
   0x2   :  { %16 = vsyncpa [#allocation9], 0 }
   0x3   :  { %17 = vsyncpa [#allocation4], 0  ;;  %s7130_s30 = smov [#allocation5]  }
   0x4   :  { %s37_s10 = sshll.u32 %s7130_s30, 4  ;;  %s38_s10 = int_to_ptr.vmem [resolvable:$true] %s37_s10 }
   0x5   :  { %s7030_s11 = scalar_lea.vmem %s38_s10, 32768  ;;  %p7035_p1 = scmp.lt.s32.totalorder %s38_s10, %s38_s10 }
   0x6   :  { %p7031_p0 = scmp.ne.s32.totalorder %s38_s10, %s7030_s11  ;;  %p7036_p2 = scmp.lt.s32.totalorder %s7030_s11, %s7030_s11 }
   0x8   :  { %p7037_p3 = por %p7036_p2, %p7035_p1 }
   0xa   :  { %p7038_p4 = pnand %p7037_p3, %p7031_p0 }
   0xc   :  { %7041 = shalt.err (!%p7038_p4)
}
   0xd   :  { %s7131_s12 = smov 256   ;;  %s7132_s13 = smov 16  }
   0xe   :  { %43 = dma.hbm_to_vmem [thread:$0]  %s9788_s3, 32768, %s38_s10, [#allocation6], %s7131_s12, %s7131_s12, %s7132_s13  }
   0xf   :  { %s7133_s16 = smov [#allocation2]   ;;  %s7134_s18 = smov [#allocation7]  }
  0x10   :  { %s28_s17 = sshll.u32 %s7133_s16, 4  ;;  %s51_s19 = sshll.u32 %s7134_s18, 4  ;;  %s29_s17 = int_to_ptr.vmem [resolvable:$true] %s28_s17  ;;  %s52_s19 = int_to_ptr.vmem [resolvable:$true] %s51_s19 }
  0x11   :  { %s7050_s20 = scalar_lea.vmem %s29_s17, 128  ;;  %p7055_p6 = scmp.lt.s32.totalorder %s29_s17, %s29_s17 }
  0x12   :  { %p7051_p5 = scmp.ne.s32.totalorder %s29_s17, %s7050_s20  ;;  %p7056_p7 = scmp.lt.s32.totalorder %s7050_s20, %s7050_s20 }
  0x14   :  { %p7057_p8 = por %p7056_p7, %p7055_p6 }
  0x16   :  { %p7058_p9 = pnand %p7057_p8, %p7051_p5 }
  0x18   :  { %7061 = shalt.err (!%p7058_p9)
}
  0x19   :  { %31 = dma.hbm_to_vmem [thread:$0]  %s9787_s2, 128, %s29_s17, [#allocation3]  }
  0x1a   :  { %s7070_s23 = scalar_lea.vmem %s52_s19, 8192  ;;  %p7075_p11 = scmp.lt.s32.totalorder %s52_s19, %s52_s19 }
  0x1b   :  { %p7071_p10 = scmp.ne.s32.totalorder %s52_s19, %s7070_s23  ;;  %p7076_p12 = scmp.lt.s32.totalorder %s7070_s23, %s7070_s23 }
  0x1d   :  { %p7077_p13 = por %p7076_p12, %p7075_p11 }
  0x1f   :  { %p7078_p0 = pnand %p7077_p13, %p7071_p10 }
  0x21   :  { %7081 = shalt.err (!%p7078_p0)
}
  0x22   :  { %s7135_s3 = smov 128   ;;  %s7136_s24 = smov 8  }
  0x23   :  { %57 = dma.hbm_to_vmem [thread:$0]  %s9790_s5, 8192, %s52_s19, [#allocation6], %s7135_s3, %s7135_s3, %s7136_s24  }
  0x24   :  { %s7137_s27 = smov [#allocation8]  }
  0x25   :  { %s65_s28 = sshll.u32 %s7137_s27, 4  ;;  %s66_s28 = int_to_ptr.vmem [resolvable:$true] %s65_s28 }
  0x26   :  { %s7090_s2 = scalar_lea.vmem %s66_s28, 2048  ;;  %p7095_p2 = scmp.lt.s32.totalorder %s66_s28, %s66_s28 }
  0x27   :  { %p7091_p1 = scmp.ne.s32.totalorder %s66_s28, %s7090_s2  ;;  %p7096_p3 = scmp.lt.s32.totalorder %s7090_s2, %s7090_s2 }
  0x29   :  { %p7097_p4 = por %p7096_p3, %p7095_p2 }
  0x2b   :  { %p7098_p5 = pnand %p7097_p4, %p7091_p1 }
  0x2d   :  { %7101 = shalt.err (!%p7098_p5)
}
  0x2e   :  { %s7138_s29 = smov 64   ;;  %s7139_s30 = smov 4  }
  0x2f   :  { %71 = dma.hbm_to_vmem [thread:$0]  %s9792_s7, 2048, %s66_s28, [#allocation9], %s7138_s29, %s7138_s29, %s7139_s30  }
  0x30   :  { %7122 = dma.done.wait [#allocation3], 128  }
  0x31   :  { %7123 = vsyncadd [#allocation3], 4294967168 }
  0x32   :  { %7124 = dma.done.wait [#allocation6], 40960  }
  0x33   :  { %7125 = vsyncadd [#allocation6], 4294926336 }
  0x34   :  { %7126 = dma.done.wait [#allocation9], 2048  }
  0x35   :  { %7127 = vsyncadd [#allocation9], 4294965248  ;;  %v91_v0 = vlaneseq  ;;  %v7140_v1 = vmov 1   ;;  %v7141_v2 = vmov 0   ;;  %v87_v5 = vld [vmem:[%s9785_s0] sm:$0xff]  ;;  %v88_v6 = vld [vmem:[%s9785_s0 + $0x8] sm:$0xff] }
  0x36   :  { %6409 = vset.pattern.permute.xlu1 %v7140_v1  ;;  %6408 = vset.pattern.permute.xlu0 %v7141_v2  ;;  %v7228_v9 = vld [vmem:[%s9786_s1 + $0x1] ss:$2 sm:$0xff]  ;;  %v7236_v12 = vld [vmem:[%s9786_s1] ss:$2 sm:$0xff]  ;;  %s7148_s25 = smov [#allocation10]  }
  0x37   :  { %v7214_v3 = vshrl.u32 %v91_v0, 7  ;;  %218 = vperm.xlu1 %6409, %v87_v5   ;;  %134 = vperm.xlu0 %6408, %v87_v5   ;;  %v7231_v11 = vld [vmem:[#allocation2] sm:$0xff]  ;;  %v6411_v25 = vld [vmem:[#allocation5 + $0xe4] ss:$16 sps:$4 sm:$0xff]   ;;  %v6415_v27 = vld [vmem:[#allocation5 + $0xe0] ss:$16 sps:$4 sm:$0xff]  }
  0x38   :  { %v6413_v26 = vld [vmem:[#allocation5 + $0x2e4] ss:$16 sps:$4 sm:$0xff]   ;;  %v6416_v28 = vld [vmem:[#allocation5 + $0x2e0] ss:$16 sps:$4 sm:$0xff]   ;;  %3528 = vmatprep.subr.bf16.mxu0 %v6411_v25  ;;  %s5791_s26 = sshll.u32 %s7148_s25, 4  ;;  %s5792_s26 = int_to_ptr.vmem [resolvable:$true] %s5791_s26 }
  0x39   :  { %v109_v4 = vsub.s32 4, %v7214_v3  ;;  %v113_v7 = vsub.s32 5, %v7214_v3  ;;  %v117_v8 = vsub.s32 6, %v7214_v3  ;;  %v121_v10 = vsub.s32 7, %v7214_v3  ;;  %v6417_v29 = vld [vmem:[#allocation5 + $0xc4] ss:$16 sps:$4 sm:$0xff]   ;;  %3571 = vmatprep.subr.bf16.mxu1 %v6413_v26  ;;  %3529 = vmatpush1.bf16.msra.mxu0 %v6415_v27  ;;  %p7107_p7 = scmp.lt.s32.totalorder %s5792_s26, %s5792_s26 }
  0x3a   :  { %v6419_v30 = vld [vmem:[#allocation5 + $0x2c4] ss:$16 sps:$4 sm:$0xff]   ;;  %3572 = vmatpush1.bf16.msra.mxu1 %v6416_v28  ;;  %v6421_v31 = vld [vmem:[#allocation5 + $0xc0] ss:$16 sps:$4 sm:$0xff]   ;;  %3530 = vmatprep.subr.bf16.mxu0 %v6417_v29  ;;  %s7102_s27 = scalar_lea.vmem %s5792_s26, 256 }
  0x3b   :  { %v7239_v13 = vrot.slane %v7228_v9, %v109_v4  ;;  %v7242_v14 = vrot.slane %v7228_v9, %v113_v7  ;;  %v7245_v15 = vrot.slane %v7228_v9, %v117_v8  ;;  %v7248_v16 = vrot.slane %v7228_v9, %v121_v10  ;;  %222 = vperm.xlu1 %6409, %v88_v6   ;;  %v6422_v32 = vld [vmem:[#allocation5 + $0x2c0] ss:$16 sps:$4 sm:$0xff]   ;;  %v6423_v33 = vld [vmem:[#allocation5 + $0xa4] ss:$16 sps:$4 sm:$0xff]   ;;  %p7103_p6 = scmp.ne.s32.totalorder %s5792_s26, %s7102_s27  ;;  %p7108_p8 = scmp.lt.s32.totalorder %s7102_s27, %s7102_s27 }
  0x3c   :  { %v7251_v17 = vrot.slane %v7231_v11, %v109_v4  ;;  %v7254_v18 = vrot.slane %v7231_v11, %v113_v7  ;;  %v7257_v19 = vrot.slane %v7231_v11, %v117_v8  ;;  %139 = vperm.xlu0 %6408, %v88_v6   ;;  %v7260_v20 = vrot.slane %v7231_v11, %v121_v10  ;;  %v6425_v34 = vld [vmem:[#allocation5 + $0x2a4] ss:$16 sps:$4 sm:$0xff]   ;;  %v6427_v35 = vld [vmem:[#allocation5 + $0xa0] ss:$16 sps:$4 sm:$0xff]  }
  0x3d   :  { %v7263_v21 = vrot.slane %v7236_v12, %v109_v4  ;;  %v7266_v22 = vrot.slane %v7236_v12, %v113_v7  ;;  %v7269_v23 = vrot.slane %v7236_v12, %v117_v8  ;;  %v7272_v24 = vrot.slane %v7236_v12, %v121_v10  ;;  %3573 = vmatprep.subr.bf16.mxu1 %v6419_v30  ;;  %v6428_v36 = vld [vmem:[#allocation5 + $0x2a0] ss:$16 sps:$4 sm:$0xff]   ;;  %v6429_v37 = vld [vmem:[#allocation5 + $0x84] ss:$16 sps:$4 sm:$0xff]   ;;  %p7109_p9 = por %p7108_p8, %p7107_p7 }
  0x3e   :  { %3531 = vmatpush1.bf16.msra.mxu0 %v6421_v31  ;;  %3574 = vmatpush1.bf16.msra.mxu1 %v6422_v32  ;;  %v6431_v38 = vld [vmem:[#allocation5 + $0x284] ss:$16 sps:$4 sm:$0xff]   ;;  %v6433_v39 = vld [vmem:[#allocation5 + $0x80] ss:$16 sps:$4 sm:$0xff]  }
  0x3f   :  { %3532 = vmatprep.subr.bf16.mxu0 %v6423_v33  ;;  %3575 = vmatprep.subr.bf16.mxu1 %v6425_v34  ;;  %v6434_v40 = vld [vmem:[#allocation5 + $0x280] ss:$16 sps:$4 sm:$0xff]   ;;  %v6435_v41 = vld [vmem:[#allocation5 + $0x64] ss:$16 sps:$4 sm:$0xff]   ;;  %p7110_p10 = pnand %p7109_p9, %p7103_p6 }
  0x40   :  { %6410 = vset.pattern.permute.xlu0 %v7140_v1  ;;  %v6437_v42 = vld [vmem:[#allocation5 + $0x264] ss:$16 sps:$4 sm:$0xff]   ;;  %v6439_v43 = vld [vmem:[#allocation5 + $0x60] ss:$16 sps:$4 sm:$0xff]  }
  0x41   :  { %v6440_v44 = vld [vmem:[#allocation5 + $0x260] ss:$16 sps:$4 sm:$0xff]   ;;  %v6441_v45 = vld [vmem:[#allocation5 + $0x44] ss:$16 sps:$4 sm:$0xff]  }
  0x42   :  { %3533 = vmatpush1.bf16.msra.mxu0 %v6427_v35  ;;  %3576 = vmatpush1.bf16.msra.mxu1 %v6428_v36  ;;  %v6443_v46 = vld [vmem:[#allocation5 + $0x244] ss:$16 sps:$4 sm:$0xff]   ;;  %v6445_v47 = vld [vmem:[#allocation5 + $0x40] ss:$16 sps:$4 sm:$0xff]  }
  0x43   :  { %3534 = vmatprep.subr.bf16.mxu0 %v6429_v37  ;;  %3577 = vmatprep.subr.bf16.mxu1 %v6431_v38  ;;  %v6446_v48 = vld [vmem:[#allocation5 + $0x240] ss:$16 sps:$4 sm:$0xff]   ;;  %v6447_v49 = vld [vmem:[#allocation5 + $0x24] ss:$16 sps:$4 sm:$0xff]  }
  0x44   :  { %v6449_v50 = vld [vmem:[#allocation5 + $0x224] ss:$16 sps:$4 sm:$0xff]   ;;  %v6451_v51 = vld [vmem:[#allocation5 + $0x20] ss:$16 sps:$4 sm:$0xff]  }
  0x45   :  { %v6452_v52 = vld [vmem:[#allocation5 + $0x220] ss:$16 sps:$4 sm:$0xff]   ;;  %v6453_v53 = vld [vmem:[#allocation5 + $0x4] ss:$16 sps:$4 sm:$0xff]  }
  0x46   :  { %3535 = vmatpush1.bf16.msra.mxu0 %v6433_v39  ;;  %3578 = vmatpush1.bf16.msra.mxu1 %v6434_v40  ;;  %v6455_v54 = vld [vmem:[#allocation5 + $0x204] ss:$16 sps:$4 sm:$0xff]   ;;  %v6457_v55 = vld [vmem:[#allocation5] ss:$16 sps:$4 sm:$0xff]  }
  0x47   :  { %3536 = vmatprep.subr.bf16.mxu0 %v6435_v41  ;;  %3579 = vmatprep.subr.bf16.mxu1 %v6437_v42  ;;  %v6458_v56 = vld [vmem:[#allocation5 + $0x200] ss:$16 sps:$4 sm:$0xff]   ;;  %v6459_v57 = vld [vmem:[#allocation5 + $0x1e4] ss:$16 sps:$4 sm:$0xff]   ;;  %v7275_v41 = vsub.s32 0, %v7214_v3  ;;  %v7278_v42 = vsub.s32 1, %v7214_v3 }
  0x48   :  { %v6461_v58 = vld [vmem:[#allocation5 + $0x3e4] ss:$16 sps:$4 sm:$0xff]   ;;  %v6463_v59 = vld [vmem:[#allocation5 + $0x1e0] ss:$16 sps:$4 sm:$0xff]  }
  0x49   :  { %v6464_v60 = vld [vmem:[#allocation5 + $0x3e0] ss:$16 sps:$4 sm:$0xff]   ;;  %v6465_v61 = vld [vmem:[#allocation5 + $0x1c4] ss:$16 sps:$4 sm:$0xff]   ;;  %9815 = vst [vmem:[#allocation15_spill] sm:$0xff] %v7275_v41  ;;  %9816 = vst [vmem:[#allocation16_spill] sm:$0xff] %v7278_v42 }
  0x4a   :  { %3537 = vmatpush1.bf16.msra.mxu0 %v6439_v43  ;;  %3580 = vmatpush1.bf16.msra.mxu1 %v6440_v44  ;;  %v6467_v62 = vld [vmem:[#allocation5 + $0x3c4] ss:$16 sps:$4 sm:$0xff]   ;;  %v6469_v63 = vld [vmem:[#allocation5 + $0x1c0] ss:$16 sps:$4 sm:$0xff]   ;;  %v7281_v43 = vsub.s32 2, %v7214_v3  ;;  %v229_v44 = vrot.slane %v7228_v9, %v7275_v41 }
  0x4b   :  { %3538 = vmatprep.subr.bf16.mxu0 %v6441_v45  ;;  %3581 = vmatprep.subr.bf16.mxu1 %v6443_v46  ;;  %v6470_v0 = vld [vmem:[#allocation5 + $0x3c0] ss:$16 sps:$4 sm:$0xff]   ;;  %v6471_v1 = vld [vmem:[#allocation5 + $0x1a4] ss:$16 sps:$4 sm:$0xff]   ;;  %v146_v46 = vrot.slane %v7236_v12, %v7275_v41 }
  0x4c   :  { %v6473_v2 = vld [vmem:[#allocation5 + $0x3a4] ss:$16 sps:$4 sm:$0xff]   ;;  %v6475_v4 = vld [vmem:[#allocation5 + $0x1a0] ss:$16 sps:$4 sm:$0xff]   ;;  %9817 = vst [vmem:[#allocation17_spill] sm:$0xff] %v7281_v43  ;;  %v237_v45 = vrot.slane %v7228_v9, %v7281_v43 }
  0x4d   :  { %v6476_v5 = vld [vmem:[#allocation5 + $0x3a0] ss:$16 sps:$4 sm:$0xff]   ;;  %v6477_v6 = vld [vmem:[#allocation5 + $0x184] ss:$16 sps:$4 sm:$0xff]  }
  0x4e   :  { %3539 = vmatpush1.bf16.msra.mxu0 %v6445_v47  ;;  %3582 = vmatpush1.bf16.msra.mxu1 %v6446_v48  ;;  %v6479_v7 = vld [vmem:[#allocation5 + $0x384] ss:$16 sps:$4 sm:$0xff]   ;;  %v6481_v8 = vld [vmem:[#allocation5 + $0x180] ss:$16 sps:$4 sm:$0xff]   ;;  %v150_v47 = vrot.slane %v7236_v12, %v7278_v42  ;;  %v154_v48 = vrot.slane %v7236_v12, %v7281_v43 }
  0x4f   :  { %3540 = vmatprep.subr.bf16.mxu0 %v6447_v49  ;;  %3583 = vmatprep.subr.bf16.mxu1 %v6449_v50  ;;  %v6482_v10 = vld [vmem:[#allocation5 + $0x380] ss:$16 sps:$4 sm:$0xff]   ;;  %v6483_v25 = vld [vmem:[#allocation5 + $0x164] ss:$16 sps:$4 sm:$0xff]  }
  0x50   :  { %v6485_v26 = vld [vmem:[#allocation5 + $0x364] ss:$16 sps:$4 sm:$0xff]   ;;  %v6487_v27 = vld [vmem:[#allocation5 + $0x160] ss:$16 sps:$4 sm:$0xff]  }
  0x51   :  { %v6488_v28 = vld [vmem:[#allocation5 + $0x360] ss:$16 sps:$4 sm:$0xff]   ;;  %v6489_v29 = vld [vmem:[#allocation5 + $0x144] ss:$16 sps:$4 sm:$0xff]  }
  0x52   :  { %3541 = vmatpush1.bf16.msra.mxu0 %v6451_v51  ;;  %3584 = vmatpush1.bf16.msra.mxu1 %v6452_v52  ;;  %v6491_v30 = vld [vmem:[#allocation5 + $0x344] ss:$16 sps:$4 sm:$0xff]   ;;  %v6493_v31 = vld [vmem:[#allocation5 + $0x140] ss:$16 sps:$4 sm:$0xff]   ;;  %v233_v51 = vrot.slane %v7228_v9, %v7278_v42  ;;  %v98_v52 = vrot.slane %v7231_v11, %v7278_v42 }
  0x53   :  { %3542 = vmatprep.subr.bf16.mxu0 %v6453_v53  ;;  %3585 = vmatprep.subr.bf16.mxu1 %v6455_v54  ;;  %v6494_v32 = vld [vmem:[#allocation5 + $0x340] ss:$16 sps:$4 sm:$0xff]   ;;  %v6495_v33 = vld [vmem:[#allocation5 + $0x124] ss:$16 sps:$4 sm:$0xff]  }
  0x54   :  { %v6497_v34 = vld [vmem:[#allocation5 + $0x324] ss:$16 sps:$4 sm:$0xff]   ;;  %v6499_v35 = vld [vmem:[#allocation5 + $0x120] ss:$16 sps:$4 sm:$0xff]  }
  0x55   :  { %v6500_v36 = vld [vmem:[#allocation5 + $0x320] ss:$16 sps:$4 sm:$0xff]   ;;  %v6501_v37 = vld [vmem:[#allocation5 + $0x104] ss:$16 sps:$4 sm:$0xff]  }
  0x56   :  { %3543 = vmatpush1.bf16.msra.mxu0 %v6457_v55  ;;  %3586 = vmatpush1.bf16.msra.mxu1 %v6458_v56  ;;  %v6503_v38 = vld [vmem:[#allocation5 + $0x304] ss:$16 sps:$4 sm:$0xff]   ;;  %v6505_v39 = vld [vmem:[#allocation5 + $0x100] ss:$16 sps:$4 sm:$0xff]  }
  0x57   :  { %3544 = vmatprep.subr.bf16.mxu0 %v6459_v57  ;;  %3587 = vmatprep.subr.bf16.mxu1 %v6461_v58  ;;  %v6506_v40 = vld [vmem:[#allocation5 + $0x300] ss:$16 sps:$4 sm:$0xff]  }
  0x5a   :  { %3545 = vmatpush2.bf16.msra.mxu0 %v6463_v59  ;;  %3588 = vmatpush2.bf16.msra.mxu1 %v6464_v60 }
  0x5b   :  { %3546 = vmatprep.subr.bf16.mxu0 %v6465_v61  ;;  %3589 = vmatprep.subr.bf16.mxu1 %v6467_v62  ;;  %v7330_v62 = vsub.s32 3, %v7214_v3 }
  0x5d   :  { %9821 = vst [vmem:[#allocation21_spill] sm:$0xff] %v7330_v62 }
  0x5e   :  { %3547 = vmatpush2.bf16.msra.mxu0 %v6469_v63  ;;  %3590 = vmatpush2.bf16.msra.mxu1 %v6470_v0  ;;  %v7336_v0 = vrot.slane %v7231_v11, %v7275_v41 }
  0x5f   :  { %3548 = vmatprep.subr.bf16.mxu0 %v6471_v1  ;;  %3591 = vmatprep.subr.bf16.mxu1 %v6473_v2 }
  0x62   :  { %3549 = vmatpush2.bf16.msra.mxu0 %v6475_v4  ;;  %3592 = vmatpush2.bf16.msra.mxu1 %v6476_v5 }
  0x63   :  { %3550 = vmatprep.subr.bf16.mxu0 %v6477_v6  ;;  %3593 = vmatprep.subr.bf16.mxu1 %v6479_v7 }
  0x66   :  { %3551 = vmatpush2.bf16.msra.mxu0 %v6481_v8  ;;  %3594 = vmatpush2.bf16.msra.mxu1 %v6482_v10 }
  0x67   :  { %3552 = vmatprep.subr.bf16.mxu0 %v6483_v25  ;;  %3595 = vmatprep.subr.bf16.mxu1 %v6485_v26 }
  0x6a   :  { %3553 = vmatpush2.bf16.msra.mxu0 %v6487_v27  ;;  %3596 = vmatpush2.bf16.msra.mxu1 %v6488_v28 }
  0x6b   :  { %3554 = vmatprep.subr.bf16.mxu0 %v6489_v29  ;;  %3597 = vmatprep.subr.bf16.mxu1 %v6491_v30 }
  0x6e   :  { %3555 = vmatpush2.bf16.msra.mxu0 %v6493_v31  ;;  %3598 = vmatpush2.bf16.msra.mxu1 %v6494_v32 }
  0x6f   :  { %3556 = vmatprep.subr.bf16.mxu0 %v6495_v33  ;;  %3599 = vmatprep.subr.bf16.mxu1 %v6497_v34 }
  0x72   :  { %3557 = vmatpush2.bf16.msra.mxu0 %v6499_v35  ;;  %3600 = vmatpush2.bf16.msra.mxu1 %v6500_v36 }
  0x73   :  { %3558 = vmatprep.subr.bf16.mxu0 %v6501_v37  ;;  %3601 = vmatprep.subr.bf16.mxu1 %v6503_v38  ;;  %v7019_v37 = vld [vmem:[%s9786_s1] ss:$2 sm:$0xff] }
  0x74   :  { %v7405_v38 = vrot.slane %v7019_v37, %v7330_v62 }
  0x76   :  { %3559 = vmatpush2.bf16.msra.mxu0 %v6505_v39  ;;  %3602 = vmatpush2.bf16.msra.mxu1 %v6506_v40 }
  0xb2   :  { %v7293_v49 = vpop.permute.xlu1 %218  ;;  %v135_v50 = vpop.permute.xlu0 %134 }
  0xb3   :  { %v7300_v53 = vmul.f32 %v229_v44, %v7293_v49  ;;  %v7303_v54 = vmul.f32 %v237_v45, %v7293_v49  ;;  %v7307_v55 = vmul.f32 %v7239_v13, %v7293_v49  ;;  %v7311_v12 = vmul.f32 %v7242_v14, %v7293_v49 }
  0xb4   :  { %v7315_v9 = vmul.f32 %v7245_v15, %v7293_v49  ;;  %v7319_v56 = vmul.f32 %v7248_v16, %v7293_v49  ;;  %v7321_v57 = vmul.f32 %v146_v46, %v135_v50  ;;  %v184_v58 = vmul.f32 %v150_v47, %v135_v50 }
  0xb5   :  { %9818 = vst [vmem:[#allocation18_spill] sm:$0xff] %v7307_v55  ;;  %v7323_v59 = vmul.f32 %v154_v48, %v135_v50  ;;  %v187_v60 = vmul.f32 %v7263_v21, %v135_v50  ;;  %v7327_v61 = vmul.f32 %v7266_v22, %v135_v50  ;;  %v189_v1 = vmul.f32 %v7269_v23, %v135_v50 }
  0xb6   :  { %9819 = vst [vmem:[#allocation19_spill] sm:$0xff] %v7315_v9  ;;  %9820 = vst [vmem:[#allocation20_spill] sm:$0xff] %v7319_v56  ;;  %v7332_v63 = vpop.permute.xlu1 %222  ;;  %v7340_v2 = vmul.f32 %v7272_v24, %v135_v50  ;;  %v200_v3 = vadd.f32 %v184_v58, %v98_v52  ;;  %v267_v7 = vmul.f32 %v233_v51, %v7293_v49 }
  0xb7   :  { %v7342_v4 = vpop.permute.xlu0 %139  ;;  %v7345_v5 = vmul.f32 %v229_v44, %v7332_v63  ;;  %v7348_v6 = vmul.f32 %v237_v45, %v7332_v63  ;;  %v278_v8 = vmul.f32 %v7239_v13, %v7332_v63  ;;  %v7355_v10 = vmul.f32 %v7242_v14, %v7332_v63  ;;  %v7020_v45 = vld [vmem:[%s9786_s1 + $0x1] ss:$2 sm:$0xff] }
  0xb8   :  { %v280_v25 = vmul.f32 %v7245_v15, %v7332_v63  ;;  %v7361_v26 = vmul.f32 %v7248_v16, %v7332_v63  ;;  %v7364_v27 = vadd.f32 %v187_v60, %v7251_v17  ;;  %v7367_v28 = vadd.f32 %v189_v1, %v7257_v19 }
  0xb9   :  { %v191_v29 = vmul.f32 %v146_v46, %v7342_v4  ;;  %v192_v13 = vmul.f32 %v150_v47, %v7342_v4  ;;  %v7373_v14 = vrot.slane %v7231_v11, %v7281_v43  ;;  %v193_v15 = vmul.f32 %v154_v48, %v7342_v4  ;;  %v7021_v48 = vld [vmem:[#allocation2] sm:$0xff] }
  0xba   :  { %9822 = vst [vmem:[#allocation22_spill] sm:$0xff] %v7364_v27  ;;  %9823 = vst [vmem:[#allocation23_spill] sm:$0xff] %v7367_v28  ;;  %v195_v16 = vmul.f32 %v7263_v21, %v7342_v4  ;;  %v196_v30 = vmul.f32 %v7266_v22, %v7342_v4  ;;  %v197_v31 = vmul.f32 %v7269_v23, %v7342_v4 }
  0xbb   :  { %v198_v32 = vmul.f32 %v7272_v24, %v7342_v4  ;;  %v7385_v33 = vadd.f32 %v191_v29, %v7336_v0  ;;  %v208_v34 = vadd.f32 %v192_v13, %v98_v52  ;;  %v275_v11 = vmul.f32 %v233_v51, %v7332_v63 }
  0xbc   :  { %v7389_v35 = vadd.f32 %v193_v15, %v7373_v14  ;;  %v211_v21 = vadd.f32 %v195_v16, %v7251_v17  ;;  %v7393_v36 = vadd.f32 %v196_v30, %v7254_v18  ;;  %v213_v22 = vadd.f32 %v197_v31, %v7257_v19 }
  0xbd   :  { %v7397_v23 = vadd.f32 %v198_v32, %v7260_v20  ;;  %v7399_v24 = vadd.f32 %v267_v7, %v200_v3  ;;  %v7409_v17 = vadd.f32 %v275_v11, %v208_v34  ;;  %v7419_v46 = vrot.slane %v7020_v45, %v7330_v62 }
  0xbe   :  { %v7407_v39 = vadd.f32 %v278_v8, %v211_v21  ;;  %v7411_v40 = vadd.f32 %v280_v25, %v213_v22  ;;  %v7422_v51 = vrot.slane %v7021_v48, %v7330_v62  ;;  %v186_v52 = vmul.f32 %v7405_v38, %v135_v50 }
  0xbf   :  { %v9796_v19 = vand.u32 2147483647, %v7399_v24  ;;  %v405_v44 = vand.u32 2139095040, %v7399_v24  ;;  %v9795_v58 = vand.u32 2147483647, %v7409_v17  ;;  %v1237_v60 = vand.u32 2139095040, %v7409_v17 }
  0xc0   :  { %9824 = vst [vmem:[#allocation24_spill] sm:$0xff] %v7411_v40  ;;  %v202_v13 = vadd.f32 %v186_v52, %v7422_v51  ;;  %v269_v15 = vmul.f32 %v7419_v46, %v7293_v49  ;;  %v9800_v22 = vmov 683565275   ;;  %v9798_v45 = vmov 2475754826  }
  0xc1   :  { %v406_v47 = vshrl.u32 %v405_v44, 23  ;;  %v409_v3 = vand.u32 8388607, %v9796_v19  ;;  %v1238_v7 = vshrl.u32 %v1237_v60, 23  ;;  %v1241_v29 = vand.u32 8388607, %v9795_v58 }
  0xc2   :  { %v7434_v11 = vadd.f32 %v269_v15, %v202_v13  ;;  %v9802_v49 = vmov 2131351028   ;;  %v9805_v52 = vmov 2102212464   ;;  %v7147_v15 = vmov 1326507024  }
  0xc3   :  { %v5810_v1 = vadd.s32 4294967169, %v406_v47  ;;  %v5842_v25 = vadd.s32 4294967169, %v1238_v7  ;;  %v410_v50 = vor.u32 8388608, %v409_v3  ;;  %v1242_v34 = vor.u32 8388608, %v1241_v29 }
  0xc4   :  { %vm404_vm13 = vcmp.lt.s32.totalorder %v7399_v24, 0 }
  0xc5   :  { %v412_v8 = vadd.s32 1, %v5810_v1  ;;  %v1244_v30 = vadd.s32 1, %v5842_v25  ;;  %v7437_v44 = vshll.u32 %v410_v50, 8  ;;  %v9809_v1 = vmov 920167782  }
  0xc7   :  { %vm413_vm0 = vcmp.gt.s32.totalorder %v412_v8, 0  ;;  %vm1245_vm1 = vcmp.gt.s32.totalorder %v1244_v30, 0 }
  0xc8   :  { %v414_v16 = vsel %vm413_vm0, %v412_v8, 0 }
  0xc9   :  { %v416_v31 = vand.u32 31, %v414_v16  ;;  %v415_v32 = vshrl.u32 %v414_v16, 5 }
  0xcb   :  { %v417_v21 = vsub.s32 32, %v416_v31  ;;  %v419_v37 = vshll.u32 %v9800_v22, %v416_v31  ;;  %v422_v47 = vshll.u32 %v9798_v45, %v416_v31  ;;  %v425_v48 = vshll.u32 %v9802_v49, %v416_v31 }
  0xcc   :  { %v428_v60 = vshll.u32 %v9805_v52, %v416_v31  ;;  %v431_v3 = vshll.u32 %v9809_v1, %v416_v31  ;;  %vm434_vm2 = vcmp.lt.s32.totalorder %v415_v32, 1  ;;  %vm435_vm3 = vcmp.lt.s32.totalorder %v415_v32, 2 }
  0xcd   :  { %v418_v7 = vshrl.u32 %v9800_v22, %v417_v21  ;;  %v420_v8 = vshrl.u32 %v9798_v45, %v417_v21  ;;  %v423_v25 = vshrl.u32 %v9802_v49, %v417_v21  ;;  %v426_v29 = vshrl.u32 %v9805_v52, %v417_v21 }
  0xce   :  { %v429_v13 = vshrl.u32 %v9809_v1, %v417_v21  ;;  %v432_v50 = vshrl.u32 %v7147_v15, %v417_v21  ;;  %vm436_vm4 = vcmp.lt.s32.totalorder %v415_v32, 3  ;;  %vm437_vm5 = vcmp.lt.s32.totalorder %v415_v32, 4 }
  0xcf   :  { %v421_v16 = vor.u32 %v420_v8, %v419_v37  ;;  %v424_v58 = vor.u32 %v423_v25, %v422_v47  ;;  %v427_v19 = vor.u32 %v426_v29, %v425_v48  ;;  %v1246_v45 = vsel %vm1245_vm1, %v1244_v30, 0  ;;  %v6509_v8 = vld [vmem:[#allocation5 + $0x4e4] ss:$16 sps:$4 sm:$0xff]  }
  0xd0   :  { %v430_v31 = vor.u32 %v429_v13, %v428_v60  ;;  %v433_v62 = vor.u32 %v432_v50, %v431_v3  ;;  %v7450_v9 = vshrl.u32 %v1246_v45, 5  ;;  %v1248_v48 = vand.u32 31, %v1246_v45  ;;  %3614 = vmatprep.subr.bf16.mxu0 %v6509_v8 }
  0xd1   :  { %v438_v22 = vsel %vm434_vm2, %v418_v7, %v421_v16  ;;  %v439_v49 = vsel %vm437_vm5, %v427_v19, 2102212464  ;;  %v442_v43 = vsel %vm434_vm2, %v421_v16, %v424_v58  ;;  %v446_v52 = vsel %vm434_vm2, %v424_v58, %v427_v19 }
  0xd2   :  { %v440_v42 = vsel %vm436_vm4, %v424_v58, %v439_v49  ;;  %v443_v1 = vsel %vm437_vm5, %v430_v31, 920167782  ;;  %v447_v41 = vsel %vm437_vm5, %v433_v62, 1326507024  ;;  %v194_v60 = vmul.f32 %v7405_v38, %v7342_v4  ;;  %v6512_v58 = vld [vmem:[#allocation5 + $0x6e4] ss:$16 sps:$4 sm:$0xff]  }
  0xd3   :  { %v441_v21 = vsel %vm435_vm3, %v438_v22, %v440_v42  ;;  %v444_v37 = vsel %vm436_vm4, %v427_v19, %v443_v1  ;;  %v448_v47 = vsel %vm436_vm4, %v430_v31, %v447_v41  ;;  %v7457_v7 = vshll.u32 %v1242_v34, 8  ;;  %3657 = vmatprep.subr.bf16.mxu1 %v6512_v58 }
  0xd4   :  { %v445_v3 = vsel %vm435_vm3, %v442_v43, %v444_v37  ;;  %v449_v30 = vsel %vm435_vm3, %v446_v52, %v448_v47  ;;  %v457_v41 = vmul.u32 %v7437_v44, %v441_v21  ;;  %v1249_v4 = vsub.s32 32, %v1248_v48 }
  0xd5   :  { %v7460_v62 = vmul.u32.u64.low %v7437_v44, %v449_v30  ;;  %v7461_v49 = vmul.u32.u64.high %v7437_v44, %v449_v30, %v7460_v62  ;;  %v7464_v42 = vmul.u32.u64.low %v7437_v44, %v445_v3  ;;  %v7465_v19 = vmul.u32.u64.high %v7437_v44, %v445_v3, %v7464_v42 }
  0xd6   :  { %vm1266_vm6 = vcmp.lt.s32.totalorder %v7450_v9, 1  ;;  %v613_v43 = vand.u32 2139095040, %v7434_v11  ;;  %v9825_v38 = vmov 683565275   ;;  %v9826_v34 = vmov 2475754826  }
  0xd7   :  { %v1251_v32 = vshll.u32 %v9825_v38, %v1248_v48  ;;  %v1254_v22 = vshll.u32 %v9826_v34, %v1248_v48  ;;  %v9827_v45 = vmov 2131351028   ;;  %v9828_v1 = vmov 2102212464  }
  0xd8   :  { %v1257_v52 = vshll.u32 %v9827_v45, %v1248_v48  ;;  %v1260_v25 = vshll.u32 %v9828_v1, %v1248_v48  ;;  %v1252_v29 = vshrl.u32 %v9826_v34, %v1249_v4  ;;  %v1255_v13 = vshrl.u32 %v9827_v45, %v1249_v4 }
  0xd9   :  { %v1258_v44 = vshrl.u32 %v9828_v1, %v1249_v4  ;;  %v9829_v50 = vmov 920167782   ;;  %vm459_vm7 = vc.u32 %v7461_v49, %v7464_v42  ;;  %v460_v31 = vadd.s32 1, %v7465_v19 }
  0xda   :  { %v1263_v16 = vshll.u32 %v9829_v50, %v1248_v48  ;;  %v1261_v21 = vshrl.u32 %v9829_v50, %v1249_v4  ;;  %vm1267_vm8 = vcmp.lt.s32.totalorder %v7450_v9, 2  ;;  %v1253_v37 = vor.u32 %v1252_v29, %v1251_v32 }
  0xdb   :  { %v1256_v47 = vor.u32 %v1255_v13, %v1254_v22  ;;  %v1259_v3 = vor.u32 %v1258_v44, %v1257_v52  ;;  %v1264_v30 = vshrl.u32 %v7147_v15, %v1249_v4  ;;  %v461_v8 = vsel %vm459_vm7, %v460_v31, %v7465_v19 }
  0xdc   :  { %v1262_v58 = vor.u32 %v1261_v21, %v1260_v25  ;;  %vm1269_vm9 = vcmp.lt.s32.totalorder %v7450_v9, 4  ;;  %v614_v48 = vshrl.u32 %v613_v43, 23  ;;  %v462_v62 = vadd.s32 %v461_v8, %v457_v41 }
  0xdd   :  { %v1250_v28 = vshrl.u32 %v9825_v38, %v1249_v4  ;;  %v1265_v56 = vor.u32 %v1264_v30, %v1263_v16  ;;  %v1271_v40 = vsel %vm1269_vm9, %v1259_v3, 2102212464  ;;  %vm1268_vm10 = vcmp.lt.s32.totalorder %v7450_v9, 3 }
  0xde   :  { %v1274_v32 = vsel %vm1266_vm6, %v1253_v37, %v1256_v47  ;;  %v1275_v22 = vsel %vm1269_vm9, %v1262_v58, 920167782  ;;  %v1278_v52 = vsel %vm1266_vm6, %v1256_v47, %v1259_v3  ;;  %v463_v29 = vadd.s32 536870912, %v462_v62 }
  0xdf   :  { %v1270_v19 = vsel %vm1266_vm6, %v1250_v28, %v1253_v37  ;;  %v1276_v25 = vsel %vm1268_vm10, %v1259_v3, %v1275_v22  ;;  %v1279_v43 = vsel %vm1269_vm9, %v1265_v56, 1326507024  ;;  %v1272_v41 = vsel %vm1268_vm10, %v1256_v47, %v1271_v40 }
  0xe0   :  { %v1277_v4 = vsel %vm1267_vm8, %v1274_v32, %v1276_v25  ;;  %v1280_v13 = vsel %vm1268_vm10, %v1262_v58, %v1279_v43  ;;  %v5818_v44 = vadd.s32 4294967169, %v614_v48  ;;  %v464_v16 = vshrl.u32 %v463_v29, 30 }
  0xe1   :  { %v1281_v31 = vsel %vm1267_vm8, %v1278_v52, %v1280_v13  ;;  %v7500_v21 = vmul.u32.u64.low %v7457_v7, %v1277_v4  ;;  %v7501_v30 = vmul.u32.u64.high %v7457_v7, %v1277_v4, %v7500_v21  ;;  %v210_v8 = vadd.f32 %v194_v60, %v7422_v51 }
  0xe2   :  { %v7506_v28 = vmul.u32.u64.low %v7457_v7, %v1281_v31  ;;  %v7507_v56 = vmul.u32.u64.high %v7457_v7, %v1281_v31, %v7506_v28  ;;  %v620_v40 = vadd.s32 1, %v5818_v44  ;;  %v465_v37 = vshll.u32 %v464_v16, 30 }
  0xe3   :  { %v1273_v47 = vsel %vm1267_vm8, %v1270_v19, %v1272_v41  ;;  %v9814_v3 = vand.u32 2147483647, %v7434_v11  ;;  %v277_v58 = vmul.f32 %v7419_v46, %v7332_v63  ;;  %v1292_v32 = vadd.s32 1, %v7501_v30 }
  0xe4   :  { %vm621_vm11 = vcmp.gt.s32.totalorder %v620_v40, 0  ;;  %v466_v48 = vsub.s32 %v462_v62, %v465_v37  ;;  %v1289_v51 = vmul.u32 %v7457_v7, %v1273_v47  ;;  %vm1291_vm12 = vc.u32 %v7507_v56, %v7500_v21 }
  0xe5   :  { %v622_v22 = vsel %vm621_vm11, %v620_v40, 0  ;;  %v7518_v60 = vadd.f32 %v277_v58, %v210_v8  ;;  %v1293_v9 = vsel %vm1291_vm12, %v1292_v32, %v7501_v30  ;;  %v7523_v29 = vand.u32 8388607, %v9814_v3 }
  0xe6   :  { %v468_v52 = vsub.s32 0, %v466_v48  ;;  %v624_v63 = vand.u32 31, %v622_v22  ;;  %v1294_v46 = vadd.s32 %v1293_v9, %v1289_v51  ;;  %v488_v25 = vsub.s32 4, %v464_v16 }
  0xe7   :  { %v458_v41 = vadd.s32 %v7464_v42, %v7461_v49  ;;  %v618_v13 = vor.u32 8388608, %v7523_v29  ;;  %v7530_v44 = vshrl.u32 %v622_v22, 5  ;;  %v9830_v40 = vand.u32 2147483647, %v7399_v24 }
  0xe8   :  { %v5811_v62 = vmin.u32 %v468_v52, %v466_v48  ;;  %v625_v19 = vsub.s32 32, %v624_v63  ;;  %v1295_v7 = vadd.s32 536870912, %v1294_v46  ;;  %v627_v30 = vshll.u32 %v9825_v38, %v624_v63 }
  0xe9   :  { %vm7539_vm14 = vcmp.le.f32.partialorder %v9830_v40, 0.7853982  ;;  %v630_v42 = vshll.u32 %v9826_v34, %v624_v63  ;;  %v7548_v32 = vsel %vm404_vm13, %v488_v25, %v464_v16  ;;  %v636_v51 = vshll.u32 %v9828_v1, %v624_v63 }
  0xea   :  { %v470_v4 = vclz %v5811_v62  ;;  %v7532_v31 = vshrl.u32 %v1295_v7, 30  ;;  %v628_v8 = vshrl.u32 %v9826_v34, %v625_v19  ;;  %v631_v28 = vshrl.u32 %v9827_v45, %v625_v19 }
  0xeb   :  { %v634_v47 = vshrl.u32 %v9828_v1, %v625_v19  ;;  %v637_v58 = vshrl.u32 %v9829_v50, %v625_v19  ;;  %v1445_v52 = vand.u32 2139095040, %v7518_v60  ;;  %v633_v62 = vshll.u32 %v9827_v45, %v624_v63 }
  0xec   :  { %v5812_v49 = vadd.s32 4294967294, %v470_v4  ;;  %v1297_v22 = vshll.u32 %v7532_v31, 30  ;;  %v629_v9 = vor.u32 %v628_v8, %v627_v30  ;;  %v632_v29 = vor.u32 %v631_v28, %v630_v42 }
  0xed   :  { %v638_v40 = vor.u32 %v637_v58, %v636_v51  ;;  %v640_v3 = vshrl.u32 %v7147_v15, %v625_v19  ;;  %v635_v25 = vor.u32 %v634_v47, %v633_v62  ;;  %vm642_vm0 = vcmp.lt.s32.totalorder %v7530_v44, 1 }
  0xee   :  { %vm5813_vm15 = vcmp.lt.s32.totalorder %v5812_v49, 0  ;;  %v7554_v4 = vsub.s32 %v1294_v46, %v1297_v22  ;;  %v626_v27 = vshrl.u32 %v9825_v38, %v625_v19  ;;  %v639_v30 = vshll.u32 %v9829_v50, %v624_v63 }
  0xef   :  { %v473_v7 = vsel %vm5813_vm15, 0, %v5812_v49  ;;  %vm644_vm1 = vcmp.lt.s32.totalorder %v7530_v44, 3  ;;  %vm645_vm2 = vcmp.lt.s32.totalorder %v7530_v44, 4  ;;  %v650_v47 = vsel %vm642_vm0, %v629_v9, %v632_v29 }
  0xf0   :  { %v474_v43 = vsub.s32 32, %v473_v7  ;;  %v478_v16 = vsub.s32 4294967266, %v473_v7  ;;  %v1300_v55 = vsub.s32 0, %v7554_v4  ;;  %v475_v8 = vshll.u32 %v466_v48, %v473_v7 }
  0xf1   :  { %v641_v42 = vor.u32 %v640_v3, %v639_v30  ;;  %v651_v58 = vsel %vm645_vm2, %v638_v40, 920167782  ;;  %v647_v63 = vsel %vm645_vm2, %v635_v25, 2102212464  ;;  %vm643_vm3 = vcmp.lt.s32.totalorder %v7530_v44, 2 }
  0xf2   :  { %v476_v28 = vshrl.u32 %v458_v41, %v474_v43  ;;  %v479_v46 = vadd.s32 127, %v478_v16  ;;  %v5843_v49 = vmin.u32 %v1300_v55, %v7554_v4  ;;  %v652_v48 = vsel %vm644_vm1, %v635_v25, %v651_v58 }
  0xf3   :  { %v491_v43 = vsel %vm7539_vm14, 0, %v7548_v32  ;;  %v1290_v55 = vadd.s32 %v7500_v21, %v7507_v56  ;;  %v646_v51 = vsel %vm642_vm0, %v626_v27, %v629_v9  ;;  %v653_v62 = vsel %vm643_vm3, %v650_v47, %v652_v48 }
  0xf4   :  { %v477_v22 = vor.u32 %v476_v28, %v475_v8  ;;  %v480_v19 = vshll.u32 %v479_v46, 23  ;;  %v1302_v3 = vclz %v5843_v49  ;;  %v654_v7 = vsel %vm642_vm0, %v632_v29, %v635_v25 }
  0xf5   :  { %vm1236_vm4 = vcmp.lt.s32.totalorder %v7409_v17, 0  ;;  %v648_v32 = vsel %vm644_vm1, %v632_v29, %v647_v63  ;;  %v655_v21 = vsel %vm645_vm2, %v641_v42, 1326507024  ;;  %v658_v56 = vshll.u32 %v618_v13, 8 }
  0xf6   :  { %v481_v41 = vor.u32 4788187, %v480_v19  ;;  %v5844_v16 = vadd.s32 4294967294, %v1302_v3  ;;  %v484_v8 = vcvt.s32.f32 %v477_v22  ;;  %v656_v27 = vsel %vm644_vm1, %v638_v40, %v655_v21 }
  0xf7   :  { %v1446_v9 = vshrl.u32 %v1445_v52, 23  ;;  %v657_v25 = vsel %vm643_vm3, %v654_v7, %v656_v27  ;;  %v7593_v28 = vmul.u32.u64.low %v658_v56, %v653_v62  ;;  %v7594_v46 = vmul.u32.u64.high %v658_v56, %v653_v62, %v7593_v28 }
  0xf8   :  { %v482_v30 = vand.u32 2147483647, %v481_v41  ;;  %vm5845_vm5 = vcmp.lt.s32.totalorder %v5844_v16, 0  ;;  %v9833_v29 = vand.u32 2147483647, %v7409_v17  ;;  %v1320_v22 = vsub.s32 4, %v7532_v31 }
  0xf9   :  { %v1305_v13 = vsel %vm5845_vm5, 0, %v5844_v16  ;;  %v7603_v47 = vmul.u32.u64.low %v658_v56, %v657_v25  ;;  %v7604_v58 = vmul.u32.u64.high %v658_v56, %v657_v25, %v7603_v47  ;;  %v649_v19 = vsel %vm643_vm3, %v646_v51, %v648_v32 }
  0xfa   :  { %v485_v49 = vmul.f32 %v484_v8, %v482_v30  ;;  %vm7599_vm6 = vcmp.le.f32.partialorder %v9833_v29, 0.7853982  ;;  %v1306_v52 = vsub.s32 32, %v1305_v13  ;;  %v1310_v40 = vsub.s32 4294967266, %v1305_v13 }
  0xfb   :  { %v1307_v48 = vshll.u32 %v7554_v4, %v1305_v13  ;;  %v5850_v3 = vadd.s32 4294967169, %v1446_v9  ;;  %v199_v41 = vadd.f32 %v7321_v57, %v7336_v0  ;;  %v668_v16 = vadd.s32 1, %v7594_v46 }
  0xfc   :  { %v486_v63 = vxor.u32 2147483648, %v485_v49  ;;  %v1308_v62 = vshrl.u32 %v1290_v55, %v1306_v52  ;;  %v1311_v7 = vadd.s32 127, %v1310_v40  ;;  %v7615_v21 = vadd.f32 %v7345_v5, %v7385_v33 }
  0xfd   :  { %v665_v44 = vmul.u32 %v658_v56, %v649_v19  ;;  %vm667_vm7 = vc.u32 %v7604_v58, %v7593_v28  ;;  %v1452_v4 = vadd.s32 1, %v5850_v3  ;;  %v1321_v5 = vsel %vm1236_vm4, %v1320_v22, %v7532_v31 }
  0xfe   :  { %v487_v30 = vsel %vm404_vm13, %v486_v63, %v485_v49  ;;  %v1309_v0 = vor.u32 %v1308_v62, %v1307_v48  ;;  %v1312_v55 = vshll.u32 %v1311_v7, 23  ;;  %v669_v51 = vsel %vm667_vm7, %v668_v16, %v7594_v46 }
  0xff   :  { %v490_v57 = vsel %vm7539_vm14, %v7399_v24, %v487_v30  ;;  %v670_v33 = vadd.s32 %v669_v51, %v665_v44  ;;  %vm1453_vm8 = vcmp.gt.s32.totalorder %v1452_v4, 0  ;;  %v495_v32 = vadd.s32 3, %v491_v43 }
 0x100   :  { %6907 = vcosq.f32 %v490_v57  ;;  %v1313_v56 = vor.u32 4788187, %v1312_v55  ;;  %v1454_v8 = vsel %vm1453_vm8, %v1452_v4, 0  ;;  %v9836_v9 = vand.u32 2147483647, %v7518_v60 }
 0x101   :  { %6909 = vsinq.f32 %v490_v57  ;;  %v671_v27 = vadd.s32 536870912, %v670_v33  ;;  %v1456_v25 = vand.u32 31, %v1454_v8  ;;  %v7631_v49 = vadd.f32 %v7300_v53, %v199_v41 }
 0x102   :  { %v1449_v37 = vand.u32 8388607, %v9836_v9  ;;  %v1314_v46 = vand.u32 2147483647, %v1313_v56  ;;  %v1316_v29 = vcvt.s32.f32 %v1309_v0  ;;  %v1323_v13 = vsel %vm7599_vm6, 0, %v1321_v5 }
 0x103   :  { %v7635_v31 = vshrl.u32 %v671_v27, 30  ;;  %v1457_v47 = vsub.s32 32, %v1456_v25  ;;  %v7637_v52 = vand.u32 3, %v495_v32  ;;  %v1327_v40 = vadd.s32 3, %v1323_v13 }
 0x104   :  { %v1317_v43 = vmul.f32 %v1316_v29, %v1314_v46  ;;  %v1450_v19 = vor.u32 8388608, %v1449_v37  ;;  %v1455_v7 = vshrl.u32 %v1454_v8, 5  ;;  %v1459_v16 = vshll.u32 %v9825_v38, %v1456_v25 }
 0x105   :  { %v673_v22 = vshll.u32 %v7635_v31, 30  ;;  %v1460_v63 = vshrl.u32 %v9826_v34, %v1457_v47  ;;  %v1463_v53 = vshrl.u32 %v9827_v45, %v1457_v47  ;;  %v1466_v3 = vshrl.u32 %v9828_v1, %v1457_v47 }
 0x106   :  { %v1318_v48 = vxor.u32 2147483648, %v1317_v43  ;;  %v1469_v41 = vshrl.u32 %v9829_v50, %v1457_v47  ;;  %v1462_v30 = vshll.u32 %v9826_v34, %v1456_v25  ;;  %v1465_v4 = vshll.u32 %v9827_v45, %v1456_v25 }
 0x107   :  { %v7644_v62 = vsub.s32 %v670_v33, %v673_v22  ;;  %v1468_v57 = vshll.u32 %v9828_v1, %v1456_v25  ;;  %v1472_v0 = vshrl.u32 %v7147_v15, %v1457_v47  ;;  %v1461_v5 = vor.u32 %v1460_v63, %v1459_v16 }
 0x108   :  { %v1319_v44 = vsel %vm1236_vm4, %v1318_v48, %v1317_v43  ;;  %v1471_v33 = vshll.u32 %v9829_v50, %v1456_v25  ;;  %vm498_vm9 = vcmp.eq.s32.totalorder %v7637_v52, 0  ;;  %v1464_v32 = vor.u32 %v1463_v53, %v1462_v30 }
 0x109   :  { %v1322_v55 = vsel %vm7599_vm6, %v7409_v17, %v1319_v44  ;;  %v676_v51 = vsub.s32 0, %v7644_v62  ;;  %v1467_v56 = vor.u32 %v1466_v3, %v1465_v4  ;;  %v1470_v8 = vor.u32 %v1469_v41, %v1468_v57 }
 0x10a   :  { %6911 = vcosq.f32 %v1322_v55  ;;  %vm501_vm10 = vcmp.eq.s32.totalorder %v7637_v52, 2  ;;  %v7660_v27 = vand.u32 3, %v1327_v40  ;;  %v666_v37 = vadd.s32 %v7593_v28, %v7604_v58 }
 0x10b   :  { %6913 = vsinq.f32 %v1322_v55  ;;  %v5819_v9 = vmin.u32 %v676_v51, %v7644_v62  ;;  %v1458_v46 = vshrl.u32 %v9825_v38, %v1457_v47  ;;  %v1473_v25 = vor.u32 %v1472_v0, %v1471_v33 }
 0x10c   :  { %v7666_v29 = vshll.u32 %v1450_v19, 8  ;;  %vm612_vm11 = vcmp.lt.s32.totalorder %v7434_v11, 0  ;;  %vm1474_vm12 = vcmp.lt.s32.totalorder %v1455_v7, 1  ;;  %vm1476_vm13 = vcmp.lt.s32.totalorder %v1455_v7, 3 }
 0x10d   :  { %v6908_v42 = vpop.eup %6907  ;;  %v678_v43 = vclz %v5819_v9  ;;  %vm1477_vm14 = vcmp.lt.s32.totalorder %v1455_v7, 4  ;;  %vm497_vm15 = vcmp.lt.s32.totalorder %v7637_v52, 2  ;;  %v1482_v63 = vsel %vm1474_vm12, %v1461_v5, %v1464_v32 }
 0x10e   :  { %v6910_v13 = vpop.eup %6909  ;;  %v502_v40 = vxor.u32 2147483648, %v6908_v42  ;;  %v1479_v22 = vsel %vm1477_vm14, %v1467_v56, 2102212464  ;;  %v1483_v48 = vsel %vm1477_vm14, %v1470_v8, 920167782  ;;  %v1486_v47 = vsel %vm1474_vm12, %v1464_v32, %v1467_v56 }
 0x10f   :  { %v499_v53 = vxor.u32 2147483648, %v6910_v13  ;;  %v5820_v28 = vadd.s32 4294967294, %v678_v43  ;;  %v1484_v58 = vsel %vm1476_vm13, %v1467_v56, %v1483_v48  ;;  %vm1475_vm0 = vcmp.lt.s32.totalorder %v1455_v7, 2 }
 0x110   :  { %v1478_v19 = vsel %vm1474_vm12, %v1458_v46, %v1461_v5  ;;  %v1480_v3 = vsel %vm1476_vm13, %v1464_v32, %v1479_v22  ;;  %v1487_v41 = vsel %vm1477_vm14, %v1473_v25, 1326507024  ;;  %v1485_v16 = vsel %vm1475_vm0, %v1482_v63, %v1484_v58 }
 0x111   :  { %vm5821_vm1 = vcmp.lt.s32.totalorder %v5820_v28, 0  ;;  %v1488_v30 = vsel %vm1476_vm13, %v1470_v8, %v1487_v41  ;;  %v1133_v44 = vand.u32 2139095040, %v7615_v21  ;;  %v503_v4 = vsel %vm501_vm10, %v502_v40, %v6910_v13 }
 0x112   :  { %v681_v57 = vsel %vm5821_vm1, 0, %v5820_v28  ;;  %v696_v0 = vsub.s32 4, %v7635_v31  ;;  %v1489_v55 = vsel %vm1475_vm0, %v1486_v47, %v1488_v30  ;;  %vm494_vm2 = vweird.f32 %v7399_v24 }
 0x113   :  { %v500_v51 = vsel %vm498_vm9, %v6908_v42, %v499_v53  ;;  %vm1329_vm3 = vcmp.lt.s32.totalorder %v7660_v27, 2  ;;  %v682_v5 = vsub.s32 32, %v681_v57  ;;  %v686_v33 = vsub.s32 4294967266, %v681_v57 }
 0x114   :  { %v1481_v32 = vsel %vm1475_vm0, %v1478_v19, %v1480_v3  ;;  %vm1326_vm4 = vweird.f32 %v7409_v17  ;;  %v7686_v56 = vmul.u32.u64.low %v7666_v29, %v1489_v55  ;;  %v7687_v8 = vmul.u32.u64.high %v7666_v29, %v1489_v55, %v7686_v56 }
 0x115   :  { %v7690_v9 = vmul.u32.u64.low %v7666_v29, %v1485_v16  ;;  %v7691_v46 = vmul.u32.u64.high %v7666_v29, %v1485_v16, %v7690_v9  ;;  %v683_v25 = vshll.u32 %v7644_v62, %v681_v57  ;;  %v684_v13 = vshrl.u32 %v666_v37, %v682_v5 }
 0x116   :  { %v687_v42 = vadd.s32 127, %v686_v33  ;;  %v301_v43 = vand.u32 2139095040, %v7631_v49  ;;  %vm1330_vm5 = vcmp.eq.s32.totalorder %v7660_v27, 0  ;;  %vm1333_vm6 = vcmp.eq.s32.totalorder %v7660_v27, 2 }
 0x117   :  { %v697_v7 = vsel %vm612_vm11, %v696_v0, %v7635_v31  ;;  %v1134_v40 = vshrl.u32 %v1133_v44, 23  ;;  %v6912_v22 = vpop.eup %6911  ;;  %v504_v63 = vsel %vm497_vm15, %v500_v51, %v503_v4  ;;  %v685_v48 = vor.u32 %v684_v13, %v683_v25 }
 0x118   :  { %v688_v53 = vshll.u32 %v687_v42, 23  ;;  %v302_v62 = vshrl.u32 %v301_v43, 23  ;;  %v6914_v37 = vpop.eup %6913  ;;  %v1334_v28 = vxor.u32 2147483648, %v6912_v22  ;;  %v1497_v58 = vmul.u32 %v7666_v29, %v1481_v32 }
 0x119   :  { %vm1499_vm7 = vc.u32 %v7687_v8, %v7690_v9  ;;  %v1500_v47 = vadd.s32 1, %v7691_v46  ;;  %v1331_v19 = vxor.u32 2147483648, %v6914_v37  ;;  %v298_v31 = vand.u32 2147483647, %v7631_v49 }
 0x11a   :  { %v689_v3 = vor.u32 4788187, %v688_v53  ;;  %v5806_v41 = vadd.s32 4294967169, %v302_v62  ;;  %v1335_v52 = vsel %vm1333_vm6, %v1334_v28, %v6914_v37  ;;  %v692_v16 = vcvt.s32.f32 %v685_v48 }
 0x11b   :  { %v1501_v30 = vsel %vm1499_vm7, %v1500_v47, %v7691_v46  ;;  %v5838_v44 = vadd.s32 4294967169, %v1134_v40  ;;  %v1332_v4 = vsel %vm1330_vm5, %v6912_v22, %v1331_v19  ;;  %v505_v55 = vsel %vm494_vm2, nan, %v504_v63 }
 0x11c   :  { %v690_v29 = vand.u32 2147483647, %v689_v3  ;;  %v1502_v57 = vadd.s32 %v1501_v30, %v1497_v58  ;;  %v308_v0 = vadd.s32 1, %v5806_v41  ;;  %v1336_v51 = vsel %vm1329_vm3, %v1332_v4, %v1335_v52 }
 0x11d   :  { %v9837_v5 = vand.u32 2147483647, %v7434_v11  ;;  %v1130_v32 = vand.u32 2147483647, %v7615_v21  ;;  %v1337_v56 = vsel %vm1326_vm4, nan, %v1336_v51  ;;  %v1140_v63 = vadd.s32 1, %v5838_v44 }
 0x11e   :  { %v693_v46 = vmul.f32 %v692_v16, %v690_v29  ;;  %v1503_v25 = vadd.s32 536870912, %v1502_v57  ;;  %vm309_vm9 = vcmp.gt.s32.totalorder %v308_v0, 0  ;;  %v7724_v13 = vpack.c.bf16 %v1337_v56, %v505_v55 }
 0x11f   :  { %vm7717_vm8 = vcmp.le.f32.partialorder %v9837_v5, 0.7853982  ;;  %v305_v27 = vand.u32 8388607, %v298_v31  ;;  %v310_v42 = vsel %vm309_vm9, %v308_v0, 0  ;;  %v7735_v17 = vadd.f32 %v7323_v59, %v7373_v14 }
 0x120   :  { %v699_v24 = vsel %vm7717_vm8, 0, %v697_v7  ;;  %v694_v43 = vxor.u32 2147483648, %v693_v46  ;;  %v7730_v40 = vshrl.u32 %v1503_v25, 30  ;;  %v312_v22 = vand.u32 31, %v310_v42  ;;  %3560 = vmatprep.mubr.bf16.mxu0 %v7724_v13 }
 0x121   :  { %v7739_v48 = vadd.f32 %v7348_v6, %v7389_v35  ;;  %v7744_v37 = vadd.s32 3, %v699_v24  ;;  %v1498_v28 = vadd.s32 %v7690_v9, %v7687_v8  ;;  %v7749_v58 = vand.u32 8388607, %v1130_v32 }
 0x122   :  { %v1505_v7 = vshll.u32 %v7730_v40, 30  ;;  %v313_v53 = vsub.s32 32, %v312_v22  ;;  %v695_v62 = vsel %vm612_vm11, %v694_v43, %v693_v46  ;;  %v306_v14 = vor.u32 8388608, %v305_v27 }
 0x123   :  { %v311_v47 = vshrl.u32 %v310_v42, 5  ;;  %vm1141_vm10 = vcmp.gt.s32.totalorder %v1140_v63, 0  ;;  %v315_v6 = vshll.u32 %v9825_v38, %v312_v22  ;;  %v318_v19 = vshll.u32 %v9826_v34, %v312_v22 }
 0x124   :  { %v7751_v59 = vsub.s32 %v1502_v57, %v1505_v7  ;;  %v316_v35 = vshrl.u32 %v9826_v34, %v313_v53  ;;  %v319_v3 = vshrl.u32 %v9827_v45, %v313_v53  ;;  %v698_v8 = vsel %vm7717_vm8, %v7434_v11, %v695_v62 }
 0x125   :  { %v321_v41 = vshll.u32 %v9827_v45, %v312_v22  ;;  %v322_v52 = vshrl.u32 %v9828_v1, %v313_v53  ;;  %vm1444_vm11 = vcmp.lt.s32.totalorder %v7518_v60, 0  ;;  %v324_v44 = vshll.u32 %v9828_v1, %v312_v22 }
 0x126   :  { %v1508_v9 = vsub.s32 0, %v7751_v59  ;;  %v317_v16 = vor.u32 %v316_v35, %v315_v6  ;;  %v320_v30 = vor.u32 %v319_v3, %v318_v19  ;;  %v325_v4 = vshrl.u32 %v9829_v50, %v313_v53 }
 0x127   :  { %v323_v57 = vor.u32 %v322_v52, %v321_v41  ;;  %v328_v0 = vshrl.u32 %v7147_v15, %v313_v53  ;;  %v346_v55 = vshll.u32 %v306_v14, 8  ;;  %v1528_v51 = vsub.s32 4, %v7730_v40 }
 0x128   :  { %v5851_v29 = vmin.u32 %v1508_v9, %v7751_v59  ;;  %v326_v5 = vor.u32 %v325_v4, %v324_v44  ;;  %v327_v33 = vshll.u32 %v9829_v50, %v312_v22  ;;  %v1142_v56 = vsel %vm1141_vm10, %v1140_v63, 0 }
 0x129   :  { %6915 = vcosq.f32 %v698_v8  ;;  %v314_v25 = vshrl.u32 %v9825_v38, %v313_v53  ;;  %vm330_vm12 = vcmp.lt.s32.totalorder %v311_v47, 1  ;;  %vm332_vm13 = vcmp.lt.s32.totalorder %v311_v47, 3 }
 0x12a   :  { %v1510_v46 = vclz %v5851_v29  ;;  %v329_v24 = vor.u32 %v328_v0, %v327_v33  ;;  %vm333_vm14 = vcmp.lt.s32.totalorder %v311_v47, 4  ;;  %v338_v27 = vsel %vm330_vm12, %v317_v16, %v320_v30 }
 0x12b   :  { %v335_v43 = vsel %vm333_vm14, %v323_v57, 2102212464  ;;  %v339_v7 = vsel %vm333_vm14, %v326_v5, 920167782  ;;  %v342_v62 = vsel %vm330_vm12, %v320_v30, %v323_v57  ;;  %vm331_vm15 = vcmp.lt.s32.totalorder %v311_v47, 2 }
 0x12c   :  { %v5852_v42 = vadd.s32 4294967294, %v1510_v46  ;;  %v334_v14 = vsel %vm330_vm12, %v314_v25, %v317_v16  ;;  %v340_v6 = vsel %vm332_vm13, %v323_v57, %v339_v7  ;;  %v343_v35 = vsel %vm333_vm14, %v329_v24, 1326507024 }
 0x12d   :  { %v336_v22 = vsel %vm332_vm13, %v320_v30, %v335_v43  ;;  %v341_v63 = vsel %vm331_vm15, %v338_v27, %v340_v6  ;;  %v344_v19 = vsel %vm332_vm13, %v326_v5, %v343_v35  ;;  %v1529_v16 = vsel %vm1444_vm11, %v1528_v51, %v7730_v40 }
 0x12e   :  { %vm5853_vm0 = vcmp.lt.s32.totalorder %v5852_v42, 0  ;;  %v345_v53 = vsel %vm331_vm15, %v342_v62, %v344_v19  ;;  %v7774_v9 = vmul.u32.u64.low %v346_v55, %v341_v63  ;;  %v7775_v41 = vmul.u32.u64.high %v346_v55, %v341_v63, %v7774_v9 }
 0x12f   :  { %v1513_v3 = vsel %vm5853_vm0, 0, %v5852_v42  ;;  %v1138_v4 = vor.u32 8388608, %v7749_v58  ;;  %6917 = vsinq.f32 %v698_v8  ;;  %v1144_v57 = vand.u32 31, %v1142_v56 }
 0x130   :  { %v1514_v52 = vsub.s32 32, %v1513_v3  ;;  %v1518_v44 = vsub.s32 4294967266, %v1513_v3  ;;  %v7782_v30 = vmul.u32.u64.low %v346_v55, %v345_v53  ;;  %v7783_v29 = vmul.u32.u64.high %v346_v55, %v345_v53, %v7782_v30 }
 0x131   :  { %v1515_v0 = vshll.u32 %v7751_v59, %v1513_v3  ;;  %v337_v46 = vsel %vm331_vm15, %v334_v14, %v336_v22  ;;  %v9840_v25 = vand.u32 2147483647, %v7518_v60  ;;  %v356_v40 = vadd.s32 1, %v7775_v41 }
 0x132   :  { %v1516_v5 = vshrl.u32 %v1498_v28, %v1514_v52  ;;  %v1519_v33 = vadd.s32 127, %v1518_v44  ;;  %v1145_v58 = vsub.s32 32, %v1144_v57  ;;  %v7795_v8 = vand.u32 3, %v7744_v37 }
 0x133   :  { %vm7789_vm1 = vcmp.le.f32.partialorder %v9840_v25, 0.7853982  ;;  %v7797_v42 = vshll.u32 %v1138_v4, 8  ;;  %v353_v59 = vmul.u32 %v346_v55, %v337_v46  ;;  %vm355_vm2 = vc.u32 %v7783_v29, %v7774_v9 }
 0x134   :  { %v1517_v51 = vor.u32 %v1516_v5, %v1515_v0  ;;  %v1520_v27 = vshll.u32 %v1519_v33, 23  ;;  %v1531_v28 = vsel %vm7789_vm1, 0, %v1529_v16  ;;  %v1143_v47 = vshrl.u32 %v1142_v56, 5 }
 0x135   :  { %v357_v7 = vsel %vm355_vm2, %v356_v40, %v7775_v41  ;;  %v1147_v62 = vshll.u32 %v9825_v38, %v1144_v57  ;;  %v1150_v37 = vshll.u32 %v9826_v34, %v1144_v57  ;;  %v1148_v22 = vshrl.u32 %v9826_v34, %v1145_v58 }
 0x136   :  { %v1521_v43 = vor.u32 4788187, %v1520_v27  ;;  %v7806_v14 = vpop.eup %6915  ;;  %v1524_v6 = vcvt.s32.f32 %v1517_v51  ;;  %v358_v35 = vadd.s32 %v357_v7, %v353_v59  ;;  %v1151_v63 = vshrl.u32 %v9827_v45, %v1145_v58 }
 0x137   :  { %v1153_v19 = vshll.u32 %v9827_v45, %v1144_v57  ;;  %v1154_v56 = vshrl.u32 %v9828_v1, %v1145_v58  ;;  %v1156_v3 = vshll.u32 %v9828_v1, %v1144_v57  ;;  %v1149_v41 = vor.u32 %v1148_v22, %v1147_v62 }
 0x138   :  { %v1522_v55 = vand.u32 2147483647, %v1521_v43  ;;  %v359_v53 = vadd.s32 536870912, %v358_v35  ;;  %v1152_v52 = vor.u32 %v1151_v63, %v1150_v37  ;;  %v1157_v44 = vshrl.u32 %v9829_v50, %v1145_v58 }
 0x139   :  { %v1155_v4 = vor.u32 %v1154_v56, %v1153_v19  ;;  %v1159_v30 = vshll.u32 %v9829_v50, %v1144_v57  ;;  %v1160_v0 = vshrl.u32 %v7147_v15, %v1145_v58  ;;  %v1535_v5 = vadd.s32 3, %v1531_v28 }
 0x13a   :  { %v1525_v16 = vmul.f32 %v1524_v6, %v1522_v55  ;;  %v7816_v33 = vshrl.u32 %v359_v53, 30  ;;  %v1158_v46 = vor.u32 %v1157_v44, %v1156_v3  ;;  %vm1162_vm3 = vcmp.lt.s32.totalorder %v1143_v47, 1 }
 0x13b   :  { %v710_v25 = vxor.u32 2147483648, %v7806_v14  ;;  %v1161_v51 = vor.u32 %v1160_v0, %v1159_v30  ;;  %vm1163_vm4 = vcmp.lt.s32.totalorder %v1143_v47, 2  ;;  %v1146_v59 = vshrl.u32 %v9825_v38, %v1145_v58 }
 0x13c   :  { %v1526_v40 = vxor.u32 2147483648, %v1525_v16  ;;  %v361_v27 = vshll.u32 %v7816_v33, 30  ;;  %vm1165_vm5 = vcmp.lt.s32.totalorder %v1143_v47, 4  ;;  %v1170_v43 = vsel %vm1162_vm3, %v1149_v41, %v1152_v52  ;;  %v6918_v57 = vpop.eup %6917 }
 0x13d   :  { %vm1164_vm6 = vcmp.lt.s32.totalorder %v1143_v47, 3  ;;  %v1167_v7 = vsel %vm1165_vm5, %v1155_v4, 2102212464  ;;  %v1171_v62 = vsel %vm1165_vm5, %v1158_v46, 920167782  ;;  %v1174_v63 = vsel %vm1162_vm3, %v1152_v52, %v1155_v4 }
 0x13e   :  { %v1527_v28 = vsel %vm1444_vm11, %v1526_v40, %v1525_v16  ;;  %v7827_v6 = vsub.s32 %v358_v35, %v361_v27  ;;  %v1172_v22 = vsel %vm1164_vm6, %v1155_v4, %v1171_v62  ;;  %v1166_v58 = vsel %vm1162_vm3, %v1146_v59, %v1149_v41 }
 0x13f   :  { %v1530_v37 = vsel %vm7789_vm1, %v7518_v60, %v1527_v28  ;;  %v1173_v55 = vsel %vm1163_vm4, %v1170_v43, %v1172_v22  ;;  %v1175_v19 = vsel %vm1165_vm5, %v1161_v51, 1326507024  ;;  %v1168_v3 = vsel %vm1164_vm6, %v1152_v52, %v1167_v7 }
 0x140   :  { %6919 = vcosq.f32 %v1530_v37  ;;  %v364_v56 = vsub.s32 0, %v7827_v6  ;;  %v1176_v53 = vsel %vm1164_vm6, %v1158_v46, %v1175_v19  ;;  %v707_v44 = vxor.u32 2147483648, %v6918_v57 }
 0x141   :  { %6921 = vsinq.f32 %v1530_v37  ;;  %v1177_v24 = vsel %vm1163_vm4, %v1174_v63, %v1176_v53  ;;  %v7835_v35 = vmul.u32.u64.low %v7797_v42, %v1173_v55  ;;  %v7836_v16 = vmul.u32.u64.high %v7797_v42, %v1173_v55, %v7835_v35 }
 0x142   :  { %vm702_vm7 = vweird.f32 %v7434_v11  ;;  %vm705_vm8 = vcmp.lt.s32.totalorder %v7795_v8, 2  ;;  %v5807_v41 = vmin.u32 %v364_v56, %v7827_v6  ;;  %vm706_vm9 = vcmp.eq.s32.totalorder %v7795_v8, 0 }
 0x143   :  { %v7843_v4 = vmul.u32.u64.low %v7797_v42, %v1177_v24  ;;  %v7844_v30 = vmul.u32.u64.high %v7797_v42, %v1177_v24, %v7843_v4  ;;  %vm709_vm10 = vcmp.eq.s32.totalorder %v7795_v8, 2  ;;  %v1169_v52 = vsel %vm1163_vm4, %v1166_v58, %v1168_v3 }
 0x144   :  { %v7851_v0 = vadd.f32 %v7303_v54, %v7735_v17  ;;  %v711_v46 = vsel %vm709_vm10, %v710_v25, %v6918_v57  ;;  %v1536_v40 = vand.u32 3, %v1535_v5  ;;  %vm300_vm11 = vcmp.lt.s32.totalorder %v7631_v49, 0 }
 0x145   :  { %v366_v51 = vclz %v5807_v41  ;;  %v708_v27 = vsel %vm706_vm9, %v7806_v14, %v707_v44  ;;  %v1188_v59 = vadd.s32 1, %v7836_v16  ;;  %v1341_v28 = vand.u32 2139095040, %v7739_v48 }
 0x146   :  { %v509_v43 = vand.u32 2139095040, %v7851_v0  ;;  %v384_v47 = vsub.s32 4, %v7816_v33  ;;  %v1185_v62 = vmul.u32 %v7797_v42, %v1169_v52  ;;  %vm1187_vm12 = vc.u32 %v7844_v30, %v7835_v35 }
 0x147   :  { %v5808_v7 = vadd.s32 4294967294, %v366_v51  ;;  %vm7864_vm13 = vcmp.le.f32.partialorder %v298_v31, 0.7853982  ;;  %v1189_v17 = vsel %vm1187_vm12, %v1188_v59, %v7836_v16  ;;  %v506_v14 = vand.u32 2147483647, %v7851_v0 }
 0x148   :  { %v510_v5 = vshrl.u32 %v509_v43, 23  ;;  %v712_v25 = vsel %vm705_vm8, %v708_v27, %v711_v46  ;;  %vm1537_vm14 = vcmp.lt.s32.totalorder %v1536_v40, 2  ;;  %vm1538_vm15 = vcmp.eq.s32.totalorder %v1536_v40, 0 }
 0x149   :  { %vm5809_vm0 = vcmp.lt.s32.totalorder %v5808_v7, 0  ;;  %v1190_v42 = vadd.s32 %v1189_v17, %v1185_v62  ;;  %vm1534_vm1 = vweird.f32 %v7518_v60  ;;  %v354_v31 = vadd.s32 %v7774_v9, %v7783_v29 }
 0x14a   :  { %v369_v57 = vsel %vm5809_vm0, 0, %v5808_v7  ;;  %v5814_v37 = vadd.s32 4294967169, %v510_v5  ;;  %v1342_v22 = vshrl.u32 %v1341_v28, 23  ;;  %v385_v55 = vsel %vm300_vm11, %v384_v47, %v7816_v33 }
 0x14b   :  { %v370_v63 = vsub.s32 32, %v369_v57  ;;  %v374_v58 = vsub.s32 4294967266, %v369_v57  ;;  %v1191_v8 = vadd.s32 536870912, %v1190_v42  ;;  %v713_v19 = vsel %vm702_vm7, nan, %v712_v25 }
 0x14c   :  { %vm1541_vm2 = vcmp.eq.s32.totalorder %v1536_v40, 2  ;;  %vm1132_vm3 = vcmp.lt.s32.totalorder %v7615_v21, 0  ;;  %v513_v56 = vand.u32 8388607, %v506_v14  ;;  %v516_v9 = vadd.s32 1, %v5814_v37 }
 0x14d   :  { %v6920_v29 = vpop.eup %6919  ;;  %v371_v3 = vshll.u32 %v7827_v6, %v369_v57  ;;  %v372_v53 = vshrl.u32 %v354_v31, %v370_v63  ;;  %v375_v44 = vadd.s32 127, %v374_v58  ;;  %v1192_v24 = vshrl.u32 %v1191_v8, 30 }
 0x14e   :  { %v6922_v16 = vpop.eup %6921  ;;  %v1542_v41 = vxor.u32 2147483648, %v6920_v29  ;;  %v387_v33 = vsel %vm7864_vm13, 0, %v385_v55  ;;  %vm517_vm4 = vcmp.gt.s32.totalorder %v516_v9, 0  ;;  %v5846_v11 = vadd.s32 4294967169, %v1342_v22 }
 0x14f   :  { %v1539_v4 = vxor.u32 2147483648, %v6922_v16  ;;  %v373_v52 = vor.u32 %v372_v53, %v371_v3  ;;  %v376_v46 = vshll.u32 %v375_v44, 23  ;;  %vm7888_vm5 = vcmp.le.f32.partialorder %v1130_v32, 0.7853982 }
 0x150   :  { %v1193_v6 = vshll.u32 %v1192_v24, 30  ;;  %v1543_v27 = vsel %vm1541_vm2, %v1542_v41, %v6922_v16  ;;  %v514_v59 = vor.u32 8388608, %v513_v56  ;;  %v518_v43 = vsel %vm517_vm4, %v516_v9, 0 }
 0x151   :  { %v1338_v28 = vand.u32 2147483647, %v7739_v48  ;;  %v1540_v7 = vsel %vm1538_vm15, %v6920_v29, %v1539_v4  ;;  %v377_v47 = vor.u32 4788187, %v376_v46  ;;  %v1216_v17 = vsub.s32 4, %v1192_v24 }
 0x152   :  { %v7895_v62 = vsub.s32 %v1190_v42, %v1193_v6  ;;  %v1544_v5 = vsel %vm1537_vm14, %v1540_v7, %v1543_v27  ;;  %v7898_v25 = vadd.s32 3, %v387_v33  ;;  %v520_v32 = vand.u32 31, %v518_v43 }
 0x153   :  { %v7900_v31 = vadd.s32 1, %v5846_v11  ;;  %v1545_v57 = vsel %vm1534_vm1, nan, %v1544_v5  ;;  %v378_v37 = vand.u32 2147483647, %v377_v47  ;;  %v380_v22 = vcvt.s32.f32 %v373_v52 }
 0x154   :  { %v1196_v63 = vsub.s32 0, %v7895_v62  ;;  %v7905_v58 = vpack.c.bf16 %v1545_v57, %v713_v19  ;;  %v1186_v42 = vadd.s32 %v7835_v35, %v7844_v30  ;;  %v521_v55 = vsub.s32 32, %v520_v32 }
 0x155   :  { %v7911_v40 = vand.u32 8388607, %v1338_v28  ;;  %v381_v8 = vmul.f32 %v380_v22, %v378_v37  ;;  %v1217_v60 = vsel %vm1132_vm3, %v1216_v17, %v1192_v24  ;;  %v7916_v9 = vshll.u32 %v514_v59, 8 }
 0x156   :  { %v5839_v56 = vmin.u32 %v1196_v63, %v7895_v62  ;;  %3603 = vmatprep.mubr.bf16.mxu1 %v7905_v58  ;;  %v519_v19 = vshrl.u32 %v518_v43, 5  ;;  %v523_v29 = vshll.u32 %v9825_v38, %v520_v32  ;;  %v524_v35 = vshrl.u32 %v9826_v34, %v521_v55 }
 0x157   :  { %v527_v30 = vshrl.u32 %v9827_v45, %v521_v55  ;;  %vm1349_vm6 = vcmp.gt.s32.totalorder %v7900_v31, 0  ;;  %v382_v3 = vxor.u32 2147483648, %v381_v8  ;;  %v526_v44 = vshll.u32 %v9826_v34, %v520_v32 }
 0x158   :  { %v1198_v53 = vclz %v5839_v56  ;;  %v530_v16 = vshrl.u32 %v9828_v1, %v521_v55  ;;  %v1219_v24 = vsel %vm7888_vm5, 0, %v1217_v60  ;;  %v522_v41 = vshrl.u32 %v9825_v38, %v521_v55 }
 0x159   :  { %v529_v33 = vshll.u32 %v9827_v45, %v520_v32  ;;  %v532_v11 = vshll.u32 %v9828_v1, %v520_v32  ;;  %v383_v4 = vsel %vm300_vm11, %v382_v3, %v381_v8  ;;  %v525_v46 = vor.u32 %v524_v35, %v523_v29 }
 0x15a   :  { %v5840_v52 = vadd.s32 4294967294, %v1198_v53  ;;  %v528_v6 = vor.u32 %v527_v30, %v526_v44  ;;  %v386_v27 = vsel %vm7864_vm13, %v7631_v49, %v383_v4  ;;  %v533_v59 = vshrl.u32 %v9829_v50, %v521_v55 }
 0x15b   :  { %v535_v43 = vshll.u32 %v9829_v50, %v520_v32  ;;  %v536_v7 = vshrl.u32 %v7147_v15, %v521_v55  ;;  %6923 = vcosq.f32 %v386_v27  ;;  %v531_v47 = vor.u32 %v530_v16, %v529_v33 }
 0x15c   :  { %vm5841_vm7 = vcmp.lt.s32.totalorder %v5840_v52, 0  ;;  %vm538_vm8 = vcmp.lt.s32.totalorder %v519_v19, 1  ;;  %v534_v5 = vor.u32 %v533_v59, %v532_v11  ;;  %vm539_vm9 = vcmp.lt.s32.totalorder %v519_v19, 2 }
 0x15d   :  { %v1201_v17 = vsel %vm5841_vm7, 0, %v5840_v52  ;;  %v537_v57 = vor.u32 %v536_v7, %v535_v43  ;;  %6925 = vsinq.f32 %v386_v27  ;;  %vm540_vm10 = vcmp.lt.s32.totalorder %v519_v19, 3 }
 0x15e   :  { %v1202_v37 = vsub.s32 32, %v1201_v17  ;;  %v1203_v22 = vshll.u32 %v7895_v62, %v1201_v17  ;;  %v1206_v54 = vsub.s32 4294967266, %v1201_v17  ;;  %vm541_vm11 = vcmp.lt.s32.totalorder %v519_v19, 4 }
 0x15f   :  { %v542_v63 = vsel %vm538_vm8, %v522_v41, %v525_v46  ;;  %v546_v32 = vsel %vm538_vm8, %v525_v46, %v528_v6  ;;  %v543_v56 = vsel %vm541_vm11, %v531_v47, 2102212464  ;;  %v547_v60 = vsel %vm541_vm11, %v534_v5, 920167782 }
 0x160   :  { %v1204_v55 = vshrl.u32 %v1186_v42, %v1202_v37  ;;  %v1207_v8 = vadd.s32 127, %v1206_v54  ;;  %v544_v29 = vsel %vm540_vm10, %v528_v6, %v543_v56  ;;  %v548_v35 = vsel %vm540_vm10, %v531_v47, %v547_v60 }
 0x161   :  { %v550_v30 = vsel %vm538_vm8, %v528_v6, %v531_v47  ;;  %v551_v3 = vsel %vm541_vm11, %v537_v57, 1326507024  ;;  %v549_v44 = vsel %vm539_vm9, %v546_v32, %v548_v35  ;;  %v1350_v16 = vsel %vm1349_vm6, %v7900_v31, 0 }
 0x162   :  { %v1205_v53 = vor.u32 %v1204_v55, %v1203_v22  ;;  %v1208_v62 = vshll.u32 %v1207_v8, 23  ;;  %v552_v42 = vsel %vm540_vm10, %v534_v5, %v551_v3  ;;  %v1346_v11 = vor.u32 8388608, %v7911_v40 }
 0x163   :  { %v7950_v41 = vmul.u32.u64.low %v7916_v9, %v549_v44  ;;  %v7951_v33 = vmul.u32.u64.high %v7916_v9, %v549_v44, %v7950_v41  ;;  %v1223_v52 = vadd.s32 3, %v1219_v24  ;;  %v545_v46 = vsel %vm539_vm9, %v542_v63, %v544_v29 }
 0x164   :  { %v1209_v4 = vor.u32 4788187, %v1208_v62  ;;  %v553_v6 = vsel %vm539_vm9, %v550_v30, %v552_v42  ;;  %v1352_v31 = vand.u32 31, %v1350_v16  ;;  %v7963_v43 = vadd.f32 %v7327_v61, %v7254_v18 }
 0x165   :  { %v7958_v27 = vmul.u32.u64.low %v7916_v9, %v553_v6  ;;  %v7959_v59 = vmul.u32.u64.high %v7916_v9, %v553_v6, %v7958_v27  ;;  %v1212_v47 = vcvt.s32.f32 %v1205_v53  ;;  %v1549_v17 = vand.u32 2139095040, %v7407_v39 }
 0x166   :  { %v1210_v7 = vand.u32 2147483647, %v1209_v4  ;;  %v7967_v40 = vand.u32 3, %v7898_v25  ;;  %v564_v24 = vadd.s32 1, %v7951_v33  ;;  %v1353_v19 = vsub.s32 32, %v1352_v31 }
 0x167   :  { %v7970_v57 = vand.u32 3, %v1223_v52  ;;  %v561_v37 = vmul.u32 %v7916_v9, %v545_v46  ;;  %v7973_v22 = vshll.u32 %v1346_v11, 8  ;;  %vm563_vm12 = vc.u32 %v7959_v59, %v7950_v41 }
 0x168   :  { %v1213_v5 = vmul.f32 %v1212_v47, %v1210_v7  ;;  %v6924_v54 = vpop.eup %6923  ;;  %v1351_v18 = vshrl.u32 %v1350_v16, 5  ;;  %v1355_v61 = vshll.u32 %v9825_v38, %v1352_v31  ;;  %v1356_v25 = vshrl.u32 %v9826_v34, %v1353_v19 }
 0x169   :  { %v565_v32 = vsel %vm563_vm12, %v564_v24, %v7951_v33  ;;  %v1358_v55 = vshll.u32 %v9826_v34, %v1352_v31  ;;  %v1359_v8 = vshrl.u32 %v9827_v45, %v1353_v19  ;;  %v1361_v60 = vshll.u32 %v9827_v45, %v1352_v31 }
 0x16a   :  { %v1214_v63 = vxor.u32 2147483648, %v1213_v5  ;;  %v6926_v56 = vpop.eup %6925  ;;  %v566_v9 = vadd.s32 %v565_v32, %v561_v37  ;;  %v1362_v29 = vshrl.u32 %v9828_v1, %v1353_v19  ;;  %v1364_v35 = vshll.u32 %v9828_v1, %v1352_v31 }
 0x16b   :  { %vm397_vm13 = vcmp.eq.s32.totalorder %v7967_v40, 2  ;;  %v1357_v3 = vor.u32 %v1356_v25, %v1355_v61  ;;  %v1360_v53 = vor.u32 %v1359_v8, %v1358_v55  ;;  %v1365_v62 = vshrl.u32 %v9829_v50, %v1353_v19 }
 0x16c   :  { %v1215_v30 = vsel %vm1132_vm3, %v1214_v63, %v1213_v5  ;;  %vm394_vm14 = vcmp.eq.s32.totalorder %v7967_v40, 0  ;;  %v567_v16 = vadd.s32 536870912, %v566_v9  ;;  %v1363_v42 = vor.u32 %v1362_v29, %v1361_v60 }
 0x16d   :  { %v1218_v44 = vsel %vm7888_vm5, %v7615_v21, %v1215_v30  ;;  %vm1370_vm15 = vcmp.lt.s32.totalorder %v1351_v18, 1  ;;  %v1366_v33 = vor.u32 %v1365_v62, %v1364_v35  ;;  %v1367_v11 = vshll.u32 %v9829_v50, %v1352_v31 }
 0x16e   :  { %6927 = vcosq.f32 %v1218_v44  ;;  %v1368_v4 = vshrl.u32 %v7147_v15, %v1353_v19  ;;  %v7995_v52 = vshrl.u32 %v567_v16, 30  ;;  %vm1371_vm0 = vcmp.lt.s32.totalorder %v1351_v18, 2 }
 0x16f   :  { %6929 = vsinq.f32 %v1218_v44  ;;  %vm1372_vm1 = vcmp.lt.s32.totalorder %v1351_v18, 3  ;;  %v1354_v46 = vshrl.u32 %v9825_v38, %v1353_v19  ;;  %vm1373_vm2 = vcmp.lt.s32.totalorder %v1351_v18, 4 }
 0x170   :  { %v1369_v6 = vor.u32 %v1368_v4, %v1367_v11  ;;  %v1378_v51 = vsel %vm1370_vm15, %v1357_v3, %v1360_v53  ;;  %v398_v27 = vxor.u32 2147483648, %v6924_v54  ;;  %v569_v7 = vshll.u32 %v7995_v52, 30  ;;  %v9848_v11 = vld [vmem:[#allocation18_spill] sm:$0xff] }
 0x171   :  { %v1375_v47 = vsel %vm1373_vm2, %v1363_v42, 2102212464  ;;  %v1379_v24 = vsel %vm1373_vm2, %v1366_v33, 920167782  ;;  %v395_v5 = vxor.u32 2147483648, %v6926_v56  ;;  %v1382_v37 = vsel %vm1370_vm15, %v1360_v53, %v1363_v42 }
 0x172   :  { %v1380_v31 = vsel %vm1372_vm1, %v1363_v42, %v1379_v24  ;;  %v1383_v61 = vsel %vm1373_vm2, %v1369_v6, 1326507024  ;;  %v8002_v25 = vsub.s32 %v566_v9, %v569_v7  ;;  %v1374_v63 = vsel %vm1370_vm15, %v1354_v46, %v1357_v3 }
 0x173   :  { %v1381_v19 = vsel %vm1371_vm0, %v1378_v51, %v1380_v31  ;;  %v1384_v32 = vsel %vm1372_vm1, %v1366_v33, %v1383_v61  ;;  %vm390_vm3 = vweird.f32 %v7631_v49  ;;  %v1376_v55 = vsel %vm1372_vm1, %v1360_v53, %v1375_v47 }
 0x174   :  { %v1385_v8 = vsel %vm1371_vm0, %v1382_v37, %v1384_v32  ;;  %v8011_v60 = vmul.u32.u64.low %v7973_v22, %v1381_v19  ;;  %v8012_v29 = vmul.u32.u64.high %v7973_v22, %v1381_v19, %v8011_v60  ;;  %v399_v9 = vsel %vm397_vm13, %v398_v27, %v6926_v56 }
 0x175   :  { %v572_v35 = vsub.s32 0, %v8002_v25  ;;  %v8019_v30 = vmul.u32.u64.low %v7973_v22, %v1385_v8  ;;  %v8020_v3 = vmul.u32.u64.high %v7973_v22, %v1385_v8, %v8019_v30  ;;  %v396_v62 = vsel %vm394_vm14, %v6924_v54, %v395_v5  ;;  %v9847_v54 = vld [vmem:[#allocation22_spill] sm:$0xff]  ;;  %v6507_v8 = vld [vmem:[#allocation5 + $0x4e0] ss:$16 sps:$4 sm:$0xff]  }
 0x176   :  { %v8026_v53 = vadd.f32 %v7311_v12, %v7963_v43  ;;  %v8030_v44 = vadd.f32 %v7355_v10, %v7393_v36  ;;  %v8034_v56 = vadd.f32 %v7340_v2, %v7260_v20  ;;  %v1377_v42 = vsel %vm1371_vm0, %v1374_v63, %v1376_v55 }
 0x177   :  { %v5815_v16 = vmin.u32 %v572_v35, %v8002_v25  ;;  %v8040_v33 = vadd.f32 %v7361_v26, %v7397_v23  ;;  %v8044_v12 = vadd.f32 %v9848_v11, %v9847_v54  ;;  %vm393_vm4 = vcmp.lt.s32.totalorder %v7967_v40, 2 }
 0x178   :  { %vm1222_vm5 = vweird.f32 %v7615_v21  ;;  %v1396_v10 = vadd.s32 1, %v8012_v29  ;;  %v821_v20 = vand.u32 2139095040, %v8026_v53  ;;  %vm1225_vm6 = vcmp.lt.s32.totalorder %v7970_v57, 2 }
 0x179   :  { %vm1226_vm7 = vcmp.eq.s32.totalorder %v7970_v57, 0  ;;  %vm508_vm8 = vcmp.lt.s32.totalorder %v7851_v0, 0  ;;  %v574_v2 = vclz %v5815_v16  ;;  %v400_v26 = vsel %vm393_vm4, %v396_v62, %v399_v9 }
 0x17a   :  { %v1393_v36 = vmul.u32 %v7973_v22, %v1377_v42  ;;  %vm1395_vm9 = vc.u32 %v8020_v3, %v8011_v60  ;;  %v822_v23 = vshrl.u32 %v821_v20, 23  ;;  %vm1229_vm10 = vcmp.eq.s32.totalorder %v7970_v57, 2 }
 0x17b   :  { %v6928_v43 = vpop.eup %6927  ;;  %v5816_v40 = vadd.s32 4294967294, %v574_v2  ;;  %v1397_v18 = vsel %vm1395_vm9, %v1396_v10, %v8012_v29  ;;  %v818_v4 = vand.u32 2147483647, %v8026_v53  ;;  %v562_v51 = vadd.s32 %v7950_v41, %v7959_v59 }
 0x17c   :  { %v6930_v46 = vpop.eup %6929  ;;  %v1230_v6 = vxor.u32 2147483648, %v6928_v43  ;;  %v1398_v27 = vadd.s32 %v1397_v18, %v1393_v36  ;;  %v5826_v7 = vadd.s32 4294967169, %v822_v23  ;;  %v401_v22 = vsel %vm390_vm3, nan, %v400_v26 }
 0x17d   :  { %v1227_v47 = vxor.u32 2147483648, %v6930_v46  ;;  %vm5817_vm11 = vcmp.lt.s32.totalorder %v5816_v40, 0  ;;  %v592_v24 = vsub.s32 4, %v7995_v52  ;;  %v825_v41 = vand.u32 8388607, %v818_v4 }
 0x17e   :  { %v1231_v5 = vsel %vm1229_vm10, %v1230_v6, %v6930_v46  ;;  %v577_v31 = vsel %vm5817_vm11, 0, %v5816_v40  ;;  %v1399_v37 = vadd.s32 536870912, %v1398_v27  ;;  %v828_v61 = vadd.s32 1, %v5826_v7 }
 0x17f   :  { %v1228_v63 = vsel %vm1226_vm7, %v6928_v43, %v1227_v47  ;;  %v578_v19 = vsub.s32 32, %v577_v31  ;;  %v582_v32 = vsub.s32 4294967266, %v577_v31  ;;  %v579_v59 = vshll.u32 %v8002_v25, %v577_v31 }
 0x180   :  { %v1232_v49 = vsel %vm1225_vm6, %v1228_v63, %v1231_v5  ;;  %v1400_v55 = vshrl.u32 %v1399_v37, 30  ;;  %vm829_vm12 = vcmp.gt.s32.totalorder %v828_v61, 0  ;;  %v8078_v16 = vsel %vm508_vm8, %v592_v24, %v7995_v52 }
 0x181   :  { %v1233_v29 = vsel %vm1222_vm5, nan, %v1232_v49  ;;  %v580_v9 = vshrl.u32 %v562_v51, %v578_v19  ;;  %v583_v35 = vadd.s32 127, %v582_v32  ;;  %v830_v30 = vsel %vm829_vm12, %v828_v61, 0 }
 0x182   :  { %v8073_v62 = vpack.c.bf16 %v1233_v29, %v401_v22  ;;  %v1401_v57 = vshll.u32 %v1400_v55, 30  ;;  %v826_v25 = vor.u32 8388608, %v825_v41  ;;  %v832_v11 = vand.u32 31, %v830_v30 }
 0x183   :  { %v581_v42 = vor.u32 %v580_v9, %v579_v59  ;;  %v584_v54 = vshll.u32 %v583_v35, 23  ;;  %v8082_v10 = vshrl.u32 %v1549_v17, 23  ;;  %vm8087_vm13 = vcmp.le.f32.partialorder %v506_v14, 0.7853982 }
 0x184   :  { %3561 = vmatmul.mubr.bf16.vlgmr.msra.gmra.mxu0 %v8073_v62  ;;  %v8091_v20 = vsub.s32 %v1398_v27, %v1401_v57  ;;  %v1424_v2 = vsub.s32 4, %v1400_v55  ;;  %v8093_v26 = vshrl.u32 %v830_v30, 5  ;;  %v833_v36 = vsub.s32 32, %v832_v11 }
 0x185   :  { %v585_v52 = vor.u32 4788187, %v584_v54  ;;  %3615 = vmatpush1.bf16.msra.mxu0 %v6507_v8  ;;  %v595_v17 = vsel %vm8087_vm13, 0, %v8078_v16  ;;  %vm1340_vm14 = vcmp.lt.s32.totalorder %v7739_v48, 0  ;;  %v1394_v14 = vadd.s32 %v8011_v60, %v8020_v3 }
 0x186   :  { %v1404_v23 = vsub.s32 0, %v8091_v20  ;;  %v588_v40 = vcvt.s32.f32 %v581_v42  ;;  %v836_v18 = vshrl.u32 %v9826_v34, %v833_v36  ;;  %v8103_v46 = vshll.u32 %v826_v25, 8 }
 0x187   :  { %v586_v43 = vand.u32 2147483647, %v585_v52  ;;  %v835_v51 = vshll.u32 %v9825_v38, %v832_v11  ;;  %v839_v27 = vshrl.u32 %v9827_v45, %v833_v36  ;;  %v842_v7 = vshrl.u32 %v9828_v1, %v833_v36 }
 0x188   :  { %v5847_v6 = vmin.u32 %v1404_v23, %v8091_v20  ;;  %v8111_v60 = vsel %vm1340_vm14, %v1424_v2, %v1400_v55  ;;  %v841_v3 = vshll.u32 %v9827_v45, %v832_v11  ;;  %vm850_vm15 = vcmp.lt.s32.totalorder %v8093_v26, 1 }
 0x189   :  { %v589_v22 = vmul.f32 %v588_v40, %v586_v43  ;;  %v837_v24 = vor.u32 %v836_v18, %v835_v51  ;;  %v838_v5 = vshll.u32 %v9826_v34, %v832_v11  ;;  %vm851_vm0 = vcmp.lt.s32.totalorder %v8093_v26, 2 }
 0x18a   :  { %v1406_v47 = vclz %v5847_v6  ;;  %v843_v37 = vor.u32 %v842_v7, %v841_v3  ;;  %v844_v61 = vshll.u32 %v9828_v1, %v832_v11  ;;  %v845_v63 = vshrl.u32 %v9829_v50, %v833_v36 }
 0x18b   :  { %v590_v31 = vxor.u32 2147483648, %v589_v22  ;;  %v840_v32 = vor.u32 %v839_v27, %v838_v5  ;;  %v847_v41 = vshll.u32 %v9829_v50, %v832_v11  ;;  %v848_v49 = vshrl.u32 %v7147_v15, %v833_v36  ;;  %v9851_v5 = vld [vmem:[#allocation24_spill] sm:$0xff] }
 0x18c   :  { %v5848_v19 = vadd.s32 4294967294, %v1406_v47  ;;  %v834_v55 = vshrl.u32 %v9825_v38, %v833_v36  ;;  %v846_v8 = vor.u32 %v845_v63, %v844_v61  ;;  %vm852_vm1 = vcmp.lt.s32.totalorder %v8093_v26, 3  ;;  %v9854_v63 = vld [vmem:[#allocation20_spill] sm:$0xff] }
 0x18d   :  { %v591_v59 = vsel %vm508_vm8, %v590_v31, %v589_v22  ;;  %v849_v9 = vor.u32 %v848_v49, %v847_v41  ;;  %vm853_vm3 = vcmp.lt.s32.totalorder %v8093_v26, 4  ;;  %v858_v54 = vsel %vm850_vm15, %v837_v24, %v840_v32 }
 0x18e   :  { %v594_v29 = vsel %vm8087_vm13, %v7851_v0, %v591_v59  ;;  %vm5849_vm2 = vcmp.lt.s32.totalorder %v5848_v19, 0  ;;  %v854_v30 = vsel %vm850_vm15, %v834_v55, %v837_v24  ;;  %v855_v16 = vsel %vm853_vm3, %v843_v37, 2102212464 }
 0x18f   :  { %6931 = vcosq.f32 %v594_v29  ;;  %v1409_v35 = vsel %vm5849_vm2, 0, %v5848_v19  ;;  %v859_v11 = vsel %vm853_vm3, %v846_v8, 920167782  ;;  %v862_v21 = vsel %vm850_vm15, %v840_v32, %v843_v37 }
 0x190   :  { %6933 = vsinq.f32 %v594_v29  ;;  %v1410_v57 = vsub.s32 32, %v1409_v35  ;;  %v1414_v42 = vsub.s32 4294967266, %v1409_v35  ;;  %v1411_v25 = vshll.u32 %v8091_v20, %v1409_v35 }
 0x191   :  { %v863_v52 = vsel %vm853_vm3, %v849_v9, 1326507024  ;;  %v860_v23 = vsel %vm852_vm1, %v843_v37, %v859_v11  ;;  %v856_v40 = vsel %vm852_vm1, %v840_v32, %v855_v16  ;;  %v1653_v6 = vand.u32 2139095040, %v8030_v44 }
 0x192   :  { %v1412_v2 = vshrl.u32 %v1394_v14, %v1410_v57  ;;  %v1415_v36 = vadd.s32 127, %v1414_v42  ;;  %v864_v43 = vsel %vm852_vm1, %v846_v8, %v863_v52  ;;  %v861_v18 = vsel %vm851_vm0, %v858_v54, %v860_v23 }
 0x193   :  { %v865_v20 = vsel %vm851_vm0, %v862_v21, %v864_v43  ;;  %v599_v22 = vadd.s32 3, %v595_v17  ;;  %v8152_v3 = vmul.u32.u64.low %v8103_v46, %v861_v18  ;;  %v8153_v47 = vmul.u32.u64.high %v8103_v46, %v861_v18, %v8152_v3 }
 0x194   :  { %v1413_v51 = vor.u32 %v1412_v2, %v1411_v25  ;;  %v1416_v14 = vshll.u32 %v1415_v36, 23  ;;  %v8148_v27 = vmul.u32.u64.low %v8103_v46, %v865_v20  ;;  %v8149_v7 = vmul.u32.u64.high %v8103_v46, %v865_v20, %v8148_v27 }
 0x195   :  { %v1654_v24 = vshrl.u32 %v1653_v6, 23  ;;  %v1757_v31 = vand.u32 2139095040, %v9851_v5  ;;  %vm8159_vm4 = vcmp.le.f32.partialorder %v1338_v28, 0.7853982  ;;  %v8165_v19 = vadd.f32 %v9854_v63, %v8034_v56  ;;  %v6515_v27 = vld [vmem:[#allocation5 + $0x4c4] ss:$16 sps:$4 sm:$0xff]  }
 0x196   :  { %v1417_v61 = vor.u32 4788187, %v1416_v14  ;;  %v5854_v17 = vadd.s32 4294967169, %v8082_v10  ;;  %v1427_v32 = vsel %vm8159_vm4, 0, %v8111_v60  ;;  %v857_v41 = vsel %vm851_vm0, %v854_v30, %v856_v40  ;;  %v6513_v14 = vld [vmem:[#allocation5 + $0x4c0] ss:$16 sps:$4 sm:$0xff]   ;;  %3616 = vmatprep.subr.bf16.mxu0 %v6515_v27 }
 0x197   :  { %v5858_v49 = vadd.s32 4294967169, %v1654_v24  ;;  %v1420_v28 = vcvt.s32.f32 %v1413_v51  ;;  %vm875_vm5 = vc.u32 %v8149_v7, %v8152_v3  ;;  %v1650_v55 = vand.u32 2147483647, %v8030_v44  ;;  %3617 = vmatpush1.bf16.msra.mxu0 %v6513_v14 }
 0x198   :  { %v1418_v59 = vand.u32 2147483647, %v1417_v61  ;;  %v8176_v8 = vand.u32 3, %v599_v22  ;;  %v876_v56 = vadd.s32 1, %v8153_v47  ;;  %v1431_v9 = vadd.s32 3, %v1427_v32 }
 0x199   :  { %v1660_v10 = vadd.s32 1, %v5858_v49  ;;  %v873_v60 = vmul.u32 %v8103_v46, %v857_v41  ;;  %v8180_v35 = vadd.s32 1, %v5854_v17  ;;  %v8182_v26 = vshrl.u32 %v1757_v31, 23  ;;  %v6521_v17 = vld [vmem:[#allocation5 + $0x4a4] ss:$16 sps:$4 sm:$0xff]  }
 0x19a   :  { %v1421_v29 = vmul.f32 %v1420_v28, %v1418_v59  ;;  %v877_v30 = vsel %vm875_vm5, %v876_v56, %v8153_v47  ;;  %v1657_v54 = vand.u32 8388607, %v1650_v55  ;;  %vm602_vm7 = vcmp.eq.s32.totalorder %v8176_v8, 0  ;;  %v6519_v28 = vld [vmem:[#allocation5 + $0x4a0] ss:$16 sps:$4 sm:$0xff]   ;;  %3618 = vmatprep.subr.bf16.mxu0 %v6521_v17 }
 0x19b   :  { %vm1661_vm6 = vcmp.gt.s32.totalorder %v1660_v10, 0  ;;  %v878_v42 = vadd.s32 %v877_v30, %v873_v60  ;;  %vm605_vm8 = vcmp.eq.s32.totalorder %v8176_v8, 2  ;;  %v1029_v21 = vand.u32 2139095040, %v8165_v19  ;;  %v6527_v60 = vld [vmem:[#allocation5 + $0x484] ss:$16 sps:$4 sm:$0xff]   ;;  %3619 = vmatpush1.bf16.msra.mxu0 %v6519_v28 }
 0x19c   :  { %v6932_v16 = vpop.eup %6931  ;;  %v1422_v57 = vxor.u32 2147483648, %v1421_v29  ;;  %v1662_v25 = vsel %vm1661_vm6, %v1660_v10, 0  ;;  %v8192_v36 = vand.u32 3, %v1431_v9  ;;  %v1026_v20 = vand.u32 2147483647, %v8165_v19  ;;  %3620 = vmatprep.subr.bf16.mxu0 %v6527_v60 }
 0x19d   :  { %v6934_v11 = vpop.eup %6933  ;;  %v1664_v46 = vand.u32 31, %v1662_v25  ;;  %v606_v52 = vxor.u32 2147483648, %v6932_v16  ;;  %v879_v23 = vadd.s32 536870912, %v878_v42  ;;  %v1658_v51 = vor.u32 8388608, %v1657_v54 }
 0x19e   :  { %v1423_v2 = vsel %vm1340_vm14, %v1422_v57, %v1421_v29  ;;  %v603_v43 = vxor.u32 2147483648, %v6934_v11  ;;  %v8200_v22 = vshrl.u32 %v1662_v25, 5  ;;  %v1030_v24 = vshrl.u32 %v1029_v21, 23 }
 0x19f   :  { %v1426_v40 = vsel %vm8159_vm4, %v7739_v48, %v1423_v2  ;;  %v1665_v18 = vsub.s32 32, %v1664_v46  ;;  %v8198_v6 = vshrl.u32 %v879_v23, 30  ;;  %v607_v31 = vsel %vm605_vm8, %v606_v52, %v6934_v11  ;;  %v6525_v23 = vld [vmem:[#allocation5 + $0x480] ss:$16 sps:$4 sm:$0xff]  }
 0x1a0   :  { %6935 = vcosq.f32 %v1426_v40  ;;  %v1667_v61 = vshll.u32 %v9825_v38, %v1664_v46  ;;  %v604_v32 = vsel %vm602_vm7, %v6932_v16, %v603_v43  ;;  %v1670_v41 = vshll.u32 %v9826_v34, %v1664_v46  ;;  %3621 = vmatpush1.bf16.msra.mxu0 %v6525_v23 }
 0x1a1   :  { %6937 = vsinq.f32 %v1426_v40  ;;  %v1668_v47 = vshrl.u32 %v9826_v34, %v1665_v18  ;;  %v881_v37 = vshll.u32 %v8198_v6, 30  ;;  %v1671_v63 = vshrl.u32 %v9827_v45, %v1665_v18 }
 0x1a2   :  { %v1673_v49 = vshll.u32 %v9827_v45, %v1664_v46  ;;  %v1674_v59 = vshrl.u32 %v9828_v1, %v1665_v18  ;;  %v1676_v29 = vshll.u32 %v9828_v1, %v1664_v46  ;;  %v1677_v9 = vshrl.u32 %v9829_v50, %v1665_v18 }
 0x1a3   :  { %v8213_v56 = vsub.s32 %v878_v42, %v881_v37  ;;  %v1669_v10 = vor.u32 %v1668_v47, %v1667_v61  ;;  %v1672_v30 = vor.u32 %v1671_v63, %v1670_v41  ;;  %v1679_v16 = vshll.u32 %v9829_v50, %v1664_v46  ;;  %v6531_v63 = vld [vmem:[#allocation5 + $0x460] ss:$16 sps:$4 sm:$0xff]  }
 0x1a4   :  { %v1675_v57 = vor.u32 %v1674_v59, %v1673_v49  ;;  %v1680_v54 = vshrl.u32 %v7147_v15, %v1665_v18  ;;  %vm601_vm9 = vcmp.lt.s32.totalorder %v8176_v8, 2  ;;  %v1678_v11 = vor.u32 %v1677_v9, %v1676_v29  ;;  %v6539_v49 = vld [vmem:[#allocation5 + $0x444] ss:$16 sps:$4 sm:$0xff]  }
 0x1a5   :  { %v884_v25 = vsub.s32 0, %v8213_v56  ;;  %v8221_v42 = vshll.u32 %v1658_v51, 8  ;;  %vm1437_vm10 = vcmp.eq.s32.totalorder %v8192_v36, 2  ;;  %v8226_v21 = vadd.s32 %v8152_v3, %v8149_v7  ;;  %v6533_v7 = vld [vmem:[#allocation5 + $0x464] ss:$16 sps:$4 sm:$0xff]  }
 0x1a6   :  { %v1681_v52 = vor.u32 %v1680_v54, %v1679_v16  ;;  %v5834_v2 = vadd.s32 4294967169, %v1030_v24  ;;  %v8230_v46 = vand.u32 8388607, %v1026_v20  ;;  %vm598_vm11 = vweird.f32 %v7851_v0  ;;  %3622 = vmatprep.subr.bf16.mxu0 %v6533_v7 }
 0x1a7   :  { %v608_v8 = vsel %vm601_vm9, %v604_v32, %v607_v31  ;;  %vm1434_vm12 = vcmp.eq.s32.totalorder %v8192_v36, 0  ;;  %v5827_v43 = vmin.u32 %v884_v25, %v8213_v56  ;;  %vm1682_vm13 = vcmp.lt.s32.totalorder %v8200_v22, 1  ;;  %3623 = vmatpush1.bf16.msra.mxu0 %v6531_v63  ;;  %v6543_v63 = vld [vmem:[#allocation5 + $0x420] ss:$16 sps:$4 sm:$0xff]  }
 0x1a8   :  { %vm1685_vm14 = vcmp.lt.s32.totalorder %v8200_v22, 4  ;;  %vm1433_vm15 = vcmp.lt.s32.totalorder %v8192_v36, 2  ;;  %v1666_v3 = vshrl.u32 %v9825_v38, %v1665_v18  ;;  %v1690_v51 = vsel %vm1682_vm13, %v1669_v10, %v1672_v30  ;;  %3624 = vmatprep.subr.bf16.mxu0 %v6539_v49 }
 0x1a9   :  { %v1687_v40 = vsel %vm1685_vm14, %v1675_v57, 2102212464  ;;  %v1691_v14 = vsel %vm1685_vm14, %v1678_v11, 920167782  ;;  %vm1430_vm0 = vweird.f32 %v7739_v48  ;;  %v886_v27 = vclz %v5827_v43 }
 0x1aa   :  { %vm1683_vm1 = vcmp.lt.s32.totalorder %v8200_v22, 2  ;;  %vm1684_vm2 = vcmp.lt.s32.totalorder %v8200_v22, 3  ;;  %v1694_v47 = vsel %vm1682_vm13, %v1672_v30, %v1675_v57  ;;  %v1686_v24 = vsel %vm1682_vm13, %v1666_v3, %v1669_v10  ;;  %v6545_v3 = vld [vmem:[#allocation5 + $0x424] ss:$16 sps:$4 sm:$0xff]  }
 0x1ab   :  { %v1692_v31 = vsel %vm1684_vm2, %v1675_v57, %v1691_v14  ;;  %v1695_v37 = vsel %vm1685_vm14, %v1681_v52, 1326507024  ;;  %v1036_v61 = vadd.s32 1, %v5834_v2  ;;  %v5828_v17 = vadd.s32 4294967294, %v886_v27  ;;  %v6537_v52 = vld [vmem:[#allocation5 + $0x440] ss:$16 sps:$4 sm:$0xff]  }
 0x1ac   :  { %v1688_v32 = vsel %vm1684_vm2, %v1672_v30, %v1687_v40  ;;  %v1693_v18 = vsel %vm1683_vm1, %v1690_v51, %v1692_v31  ;;  %v1696_v41 = vsel %vm1684_vm2, %v1678_v11, %v1695_v37  ;;  %v1034_v25 = vor.u32 8388608, %v8230_v46  ;;  %3625 = vmatpush1.bf16.msra.mxu0 %v6537_v52  ;;  %v6516_v52 = vld [vmem:[#allocation5 + $0x6c0] ss:$16 sps:$4 sm:$0xff]  }
 0x1ad   :  { %v6936_v59 = vpop.eup %6935  ;;  %v1697_v28 = vsel %vm1683_vm1, %v1694_v47, %v1696_v41  ;;  %v8247_v29 = vmul.u32.u64.low %v8221_v42, %v1693_v18  ;;  %v8248_v10 = vmul.u32.u64.high %v8221_v42, %v1693_v18, %v8247_v29  ;;  %vm1037_vm3 = vcmp.gt.s32.totalorder %v1036_v61, 0  ;;  %3626 = vmatprep.subr.bf16.mxu0 %v6545_v3  ;;  %v6551_v18 = vld [vmem:[#allocation5 + $0x404] ss:$16 sps:$4 sm:$0xff]  }
 0x1ae   :  { %v6938_v9 = vpop.eup %6937  ;;  %v1438_v60 = vxor.u32 2147483648, %v6936_v59  ;;  %vm5829_vm4 = vcmp.lt.s32.totalorder %v5828_v17, 0  ;;  %v8252_v30 = vmul.u32.u64.low %v8221_v42, %v1697_v28  ;;  %v8253_v57 = vmul.u32.u64.high %v8221_v42, %v1697_v28, %v8252_v30 }
 0x1af   :  { %v1435_v16 = vxor.u32 2147483648, %v6938_v9  ;;  %v889_v54 = vsel %vm5829_vm4, 0, %v5828_v17  ;;  %v1038_v11 = vsel %vm1037_vm3, %v1036_v61, 0  ;;  %v1689_v7 = vsel %vm1683_vm1, %v1686_v24, %v1688_v32  ;;  %v6510_v24 = vld [vmem:[#allocation5 + $0x6e0] ss:$16 sps:$4 sm:$0xff]  }
 0x1b0   :  { %v1439_v2 = vsel %vm1437_vm10, %v1438_v60, %v6938_v9  ;;  %v890_v23 = vsub.s32 32, %v889_v54  ;;  %v894_v43 = vsub.s32 4294967266, %v889_v54  ;;  %v609_v40 = vsel %vm598_vm11, nan, %v608_v8  ;;  %3627 = vmatpush1.bf16.msra.mxu0 %v6543_v63  ;;  %v6575_v60 = vld [vmem:[#allocation5 + $0x584] ss:$16 sps:$4 sm:$0xff]  }
 0x1b1   :  { %v1436_v51 = vsel %vm1434_vm12, %v6936_v59, %v1435_v16  ;;  %v1708_v14 = vadd.s32 1, %v8248_v10  ;;  %v1040_v27 = vand.u32 31, %v1038_v11  ;;  %v891_v31 = vshll.u32 %v8213_v56, %v889_v54  ;;  %3628 = vmatprep.subr.bf16.mxu0 %v6551_v18 }
 0x1b2   :  { %v1440_v47 = vsel %vm1433_vm15, %v1436_v51, %v1439_v2  ;;  %v892_v37 = vshrl.u32 %v8226_v21, %v890_v23  ;;  %v895_v22 = vadd.s32 127, %v894_v43  ;;  %v1705_v0 = vmul.u32 %v8221_v42, %v1689_v7  ;;  %v6518_v21 = vld [vmem:[#allocation5 + $0x6c4] ss:$16 sps:$4 sm:$0xff]   ;;  %v6549_v2 = vld [vmem:[#allocation5 + $0x400] ss:$16 sps:$4 sm:$0xff]  }
 0x1b3   :  { %v1441_v61 = vsel %vm1430_vm0, nan, %v1440_v47  ;;  %vm1707_vm5 = vc.u32 %v8253_v57, %v8247_v29  ;;  %v1041_v8 = vsub.s32 32, %v1040_v27  ;;  %vm820_vm6 = vcmp.lt.s32.totalorder %v8026_v53, 0 }
 0x1b4   :  { %v8274_v17 = vpack.c.bf16 %v1441_v61, %v609_v40  ;;  %v893_v36 = vor.u32 %v892_v37, %v891_v31  ;;  %v896_v32 = vshll.u32 %v895_v22, 23  ;;  %v1709_v56 = vsel %vm1707_vm5, %v1708_v14, %v8248_v10  ;;  %v6557_v40 = vld [vmem:[#allocation5 + $0x5e4] ss:$16 sps:$4 sm:$0xff]   ;;  %3629 = vmatpush1.bf16.msra.mxu0 %v6549_v2 }
 0x1b5   :  { %v1710_v48 = vadd.s32 %v1709_v56, %v1705_v0  ;;  %v8278_v41 = vshrl.u32 %v1038_v11, 5  ;;  %v1043_v42 = vshll.u32 %v9825_v38, %v1040_v27  ;;  %v1044_v49 = vshrl.u32 %v9826_v34, %v1041_v8  ;;  %3630 = vmatprep.subr.bf16.mxu0 %v6557_v40 }
 0x1b6   :  { %3604 = vmatmul.mubr.bf16.vlgmr.msra.gmra.mxu1 %v8274_v17  ;;  %v897_v59 = vor.u32 4788187, %v896_v32  ;;  %v900_v28 = vcvt.s32.f32 %v893_v36  ;;  %v1046_v9 = vshll.u32 %v9826_v34, %v1040_v27  ;;  %v1047_v10 = vshrl.u32 %v9827_v45, %v1041_v8  ;;  %v6522_v36 = vld [vmem:[#allocation5 + $0x6a0] ss:$16 sps:$4 sm:$0xff]  }
 0x1b7   :  { %3658 = vmatpush1.bf16.msra.mxu1 %v6510_v24  ;;  %vm8287_vm7 = vcmp.le.f32.partialorder %v818_v4, 0.7853982  ;;  %v1711_v30 = vadd.s32 536870912, %v1710_v48  ;;  %v1045_v16 = vor.u32 %v1044_v49, %v1043_v42  ;;  %v1049_v54 = vshll.u32 %v9827_v45, %v1040_v27  ;;  %v6524_v4 = vld [vmem:[#allocation5 + $0x6a4] ss:$16 sps:$4 sm:$0xff]  }
 0x1b8   :  { %v1050_v11 = vshrl.u32 %v9828_v1, %v1041_v8  ;;  %v898_v23 = vand.u32 2147483647, %v897_v59  ;;  %v1048_v43 = vor.u32 %v1047_v10, %v1046_v9  ;;  %v1052_v7 = vshll.u32 %v9828_v1, %v1040_v27  ;;  %3659 = vmatprep.subr.bf16.mxu1 %v6518_v21  ;;  %v6555_v32 = vld [vmem:[#allocation5 + $0x5e0] ss:$16 sps:$4 sm:$0xff]   ;;  %v6530_v21 = vld [vmem:[#allocation5 + $0x684] ss:$16 sps:$4 sm:$0xff]  }
 0x1b9   :  { %v1053_v3 = vshrl.u32 %v9829_v50, %v1041_v8  ;;  %v8295_v51 = vshrl.u32 %v1711_v30, 30  ;;  %v1056_v47 = vshrl.u32 %v7147_v15, %v1041_v8  ;;  %v8300_v31 = vshll.u32 %v1034_v25, 8  ;;  %3631 = vmatpush2.bf16.msra.mxu0 %v6555_v32 }
 0x1ba   :  { %v1051_v14 = vor.u32 %v1050_v11, %v1049_v54  ;;  %v901_v37 = vmul.f32 %v900_v28, %v898_v23  ;;  %v904_v22 = vsub.s32 4, %v8198_v6  ;;  %v1055_v61 = vshll.u32 %v9829_v50, %v1040_v27  ;;  %v6563_v27 = vld [vmem:[#allocation5 + $0x5c4] ss:$16 sps:$4 sm:$0xff]   ;;  %v6528_v54 = vld [vmem:[#allocation5 + $0x680] ss:$16 sps:$4 sm:$0xff]  }
 0x1bb   :  { %v1054_v24 = vor.u32 %v1053_v3, %v1052_v7  ;;  %v1713_v0 = vshll.u32 %v8295_v51, 30  ;;  %v1042_v63 = vshrl.u32 %v9825_v38, %v1041_v8  ;;  %vm1058_vm8 = vcmp.lt.s32.totalorder %v8278_v41, 1  ;;  %3660 = vmatpush1.bf16.msra.mxu1 %v6516_v52  ;;  %v6561_v11 = vld [vmem:[#allocation5 + $0x5c0] ss:$16 sps:$4 sm:$0xff]   ;;  %v6536_v23 = vld [vmem:[#allocation5 + $0x664] ss:$16 sps:$4 sm:$0xff]   ;;  %3632 = vmatprep.subr.bf16.mxu0 %v6563_v27 }
 0x1bc   :  { %v902_v56 = vxor.u32 2147483648, %v901_v37  ;;  %v1057_v46 = vor.u32 %v1056_v47, %v1055_v61  ;;  %vm1061_vm9 = vcmp.lt.s32.totalorder %v8278_v41, 4  ;;  %v1066_v25 = vsel %vm1058_vm8, %v1045_v16, %v1048_v43  ;;  %3661 = vmatprep.subr.bf16.mxu1 %v6524_v4  ;;  %v6569_v7 = vld [vmem:[#allocation5 + $0x5a4] ss:$16 sps:$4 sm:$0xff]  }
 0x1bd   :  { %v8310_v18 = vsub.s32 %v1710_v48, %v1713_v0  ;;  %vm1060_vm10 = vcmp.lt.s32.totalorder %v8278_v41, 3  ;;  %v1063_v8 = vsel %vm1061_vm9, %v1051_v14, 2102212464  ;;  %v1067_v42 = vsel %vm1061_vm9, %v1054_v24, 920167782  ;;  %3633 = vmatpush2.bf16.msra.mxu0 %v6561_v11 }
 0x1be   :  { %v903_v49 = vsel %vm820_vm6, %v902_v56, %v901_v37  ;;  %vm1059_vm11 = vcmp.lt.s32.totalorder %v8278_v41, 2  ;;  %v1068_v59 = vsel %vm1060_vm10, %v1051_v14, %v1067_v42  ;;  %v1861_v28 = vand.u32 2139095040, %v8040_v33  ;;  %3634 = vmatprep.subr.bf16.mxu0 %v6569_v7 }
 0x1bf   :  { %v905_v48 = vsel %vm820_vm6, %v904_v22, %v8198_v6  ;;  %v1716_v9 = vsub.s32 0, %v8310_v18  ;;  %v1062_v10 = vsel %vm1058_vm8, %v1042_v63, %v1045_v16  ;;  %v1069_v30 = vsel %vm1059_vm11, %v1066_v25, %v1068_v59  ;;  %3662 = vmatpush1.bf16.msra.mxu1 %v6522_v36  ;;  %v6567_v36 = vld [vmem:[#allocation5 + $0x5a0] ss:$16 sps:$4 sm:$0xff]   ;;  %v6542_v25 = vld [vmem:[#allocation5 + $0x644] ss:$16 sps:$4 sm:$0xff]  }
 0x1c0   :  { %v906_v52 = vsel %vm8287_vm7, %v8026_v53, %v903_v49  ;;  %v1064_v2 = vsel %vm1060_vm10, %v1048_v43, %v1063_v8  ;;  %v1070_v6 = vsel %vm1058_vm8, %v1048_v43, %v1051_v14  ;;  %v1071_v16 = vsel %vm1061_vm9, %v1057_v46, 1326507024  ;;  %3663 = vmatprep.subr.bf16.mxu1 %v6530_v21 }
 0x1c1   :  { %v5859_v3 = vmin.u32 %v1716_v9, %v8310_v18  ;;  %v1736_v4 = vsub.s32 4, %v8295_v51  ;;  %v1072_v40 = vsel %vm1060_vm10, %v1054_v24, %v1071_v16  ;;  %v1858_v47 = vand.u32 2147483647, %v8040_v33  ;;  %v6534_v24 = vld [vmem:[#allocation5 + $0x660] ss:$16 sps:$4 sm:$0xff]   ;;  %3635 = vmatpush2.bf16.msra.mxu0 %v6567_v36 }
 0x1c2   :  { %v1073_v37 = vsel %vm1059_vm11, %v1070_v6, %v1072_v40  ;;  %v8348_v43 = vmul.u32.u64.low %v8300_v31, %v1069_v30  ;;  %v8349_v14 = vmul.u32.u64.high %v8300_v31, %v1069_v30, %v8348_v43  ;;  %v1862_v22 = vshrl.u32 %v1861_v28, 23  ;;  %v6540_v28 = vld [vmem:[#allocation5 + $0x640] ss:$16 sps:$4 sm:$0xff]   ;;  %3636 = vmatprep.subr.bf16.mxu0 %v6575_v60  ;;  %v6581_v30 = vld [vmem:[#allocation5 + $0x564] ss:$16 sps:$4 sm:$0xff]  }
 0x1c3   :  { %v907_v61 = vsel %vm8287_vm7, 0, %v905_v48  ;;  %6939 = vcosq.f32 %v906_v52  ;;  %v1718_v0 = vclz %v5859_v3  ;;  %v1065_v63 = vsel %vm1059_vm11, %v1062_v10, %v1064_v2  ;;  %3664 = vmatpush1.bf16.msra.mxu1 %v6528_v54  ;;  %v6548_v48 = vld [vmem:[#allocation5 + $0x624] ss:$16 sps:$4 sm:$0xff]   ;;  %v6573_v9 = vld [vmem:[#allocation5 + $0x580] ss:$16 sps:$4 sm:$0xff]  }
 0x1c4   :  { %6941 = vsinq.f32 %v906_v52  ;;  %v8357_v32 = vmul.u32.u64.low %v8300_v31, %v1073_v37  ;;  %v8358_v56 = vmul.u32.u64.high %v8300_v31, %v1073_v37, %v8357_v32  ;;  %v5866_v46 = vadd.s32 4294967169, %v1862_v22  ;;  %3665 = vmatprep.subr.bf16.mxu1 %v6536_v23  ;;  %v6546_v16 = vld [vmem:[#allocation5 + $0x620] ss:$16 sps:$4 sm:$0xff]   ;;  %v6554_v40 = vld [vmem:[#allocation5 + $0x604] ss:$16 sps:$4 sm:$0xff]  }
 0x1c5   :  { %v5862_v21 = vadd.s32 4294967169, %v8182_v26  ;;  %vm8363_vm12 = vcmp.le.f32.partialorder %v1650_v55, 0.7853982  ;;  %vm1652_vm13 = vcmp.lt.s32.totalorder %v8030_v44, 0  ;;  %v5860_v27 = vadd.s32 4294967294, %v1718_v0  ;;  %3637 = vmatpush2.bf16.msra.mxu0 %v6573_v9 }
 0x1c6   :  { %v911_v8 = vadd.s32 3, %v907_v61  ;;  %v1737_v42 = vsel %vm1652_vm13, %v1736_v4, %v8295_v51  ;;  %v1084_v49 = vadd.s32 1, %v8349_v14  ;;  %v1868_v59 = vadd.s32 1, %v5866_v46  ;;  %v6579_v37 = vld [vmem:[#allocation5 + $0x560] ss:$16 sps:$4 sm:$0xff]   ;;  %3638 = vmatprep.subr.bf16.mxu0 %v6581_v30 }
 0x1c7   :  { %vm1557_vm14 = vcmp.gt.s32.totalorder %v8180_v35, 0  ;;  %v1706_v55 = vadd.s32 %v8247_v29, %v8253_v57  ;;  %vm5861_vm15 = vcmp.lt.s32.totalorder %v5860_v27, 0  ;;  %v1081_v26 = vmul.u32 %v8300_v31, %v1065_v63  ;;  %3666 = vmatpush1.bf16.msra.mxu1 %v6534_v24 }
 0x1c8   :  { %v1721_v10 = vsel %vm5861_vm15, 0, %v5860_v27  ;;  %vm1083_vm0 = vc.u32 %v8358_v56, %v8348_v43  ;;  %v1865_v51 = vand.u32 8388607, %v1858_v47  ;;  %vm1869_vm1 = vcmp.gt.s32.totalorder %v1868_v59, 0  ;;  %3667 = vmatprep.subr.bf16.mxu1 %v6542_v25  ;;  %v6552_v25 = vld [vmem:[#allocation5 + $0x600] ss:$16 sps:$4 sm:$0xff]  }
 0x1c9   :  { %v1722_v54 = vsub.s32 32, %v1721_v10  ;;  %v1726_v29 = vsub.s32 4294967266, %v1721_v10  ;;  %v1739_v57 = vsel %vm8363_vm12, 0, %v1737_v42  ;;  %v1085_v31 = vsel %vm1083_vm0, %v1084_v49, %v8349_v14  ;;  %v6560_v27 = vld [vmem:[#allocation5 + $0x7e4] ss:$16 sps:$4 sm:$0xff]   ;;  %3639 = vmatpush2.bf16.msra.mxu0 %v6579_v37 }
 0x1ca   :  { %v8386_v11 = vsel %vm1557_vm14, %v8180_v35, 0  ;;  %v8388_v52 = vand.u32 3, %v911_v8  ;;  %v1086_v2 = vadd.s32 %v1085_v31, %v1081_v26  ;;  %v1870_v6 = vsel %vm1869_vm1, %v1868_v59, 0  ;;  %v6587_v35 = vld [vmem:[#allocation5 + $0x544] ss:$16 sps:$4 sm:$0xff]  }
 0x1cb   :  { %v1723_v23 = vshll.u32 %v8310_v18, %v1721_v10  ;;  %v1724_v7 = vshrl.u32 %v1706_v55, %v1722_v54  ;;  %v1727_v3 = vadd.s32 127, %v1726_v29  ;;  %v1872_v4 = vand.u32 31, %v1870_v6  ;;  %3668 = vmatpush1.bf16.msra.mxu1 %v6540_v28  ;;  %v6585_v8 = vld [vmem:[#allocation5 + $0x540] ss:$16 sps:$4 sm:$0xff]   ;;  %3640 = vmatprep.subr.bf16.mxu0 %v6587_v35  ;;  %v6593_v55 = vld [vmem:[#allocation5 + $0x524] ss:$16 sps:$4 sm:$0xff]  }
 0x1cc   :  { %v1743_v14 = vadd.s32 3, %v1739_v57  ;;  %v1087_v22 = vadd.s32 536870912, %v1086_v2  ;;  %v1866_v61 = vor.u32 8388608, %v1865_v51  ;;  %3669 = vmatprep.subr.bf16.mxu1 %v6548_v48  ;;  %v717_v24 = vand.u32 2139095040, %v8044_v12  ;;  %v6566_v37 = vld [vmem:[#allocation5 + $0x7c4] ss:$16 sps:$4 sm:$0xff]  }
 0x1cd   :  { %v1725_v0 = vor.u32 %v1724_v7, %v1723_v23  ;;  %v1728_v63 = vshll.u32 %v1727_v3, 23  ;;  %v8393_v36 = vand.u32 31, %v8386_v11  ;;  %v8395_v18 = vadd.s32 1, %v5862_v21  ;;  %v6558_v23 = vld [vmem:[#allocation5 + $0x7e0] ss:$16 sps:$4 sm:$0xff]   ;;  %3641 = vmatpush2.bf16.msra.mxu0 %v6585_v8 }
 0x1ce   :  { %v8397_v32 = vshrl.u32 %v1087_v22, 30  ;;  %v1873_v46 = vsub.s32 32, %v1872_v4  ;;  %vm917_vm2 = vcmp.eq.s32.totalorder %v8388_v52, 2  ;;  %vm914_vm3 = vcmp.eq.s32.totalorder %v8388_v52, 0  ;;  %3642 = vmatprep.subr.bf16.mxu0 %v6593_v55  ;;  %v6564_v55 = vld [vmem:[#allocation5 + $0x7c0] ss:$16 sps:$4 sm:$0xff]  }
 0x1cf   :  { %v1729_v60 = vor.u32 4788187, %v1728_v63  ;;  %3670 = vmatpush1.bf16.msra.mxu1 %v6546_v16  ;;  %v8401_v49 = vand.u32 3, %v1743_v14  ;;  %v8405_v21 = vadd.s32 %v8348_v43, %v8358_v56  ;;  %v8408_v28 = vshll.u32 %v1866_v61, 8  ;;  %v6599_v14 = vld [vmem:[#allocation5 + $0x504] ss:$16 sps:$4 sm:$0xff]  }
 0x1d0   :  { %v6940_v42 = vpop.eup %6939  ;;  %v1089_v59 = vshll.u32 %v8397_v32, 30  ;;  %3671 = vmatprep.subr.bf16.mxu1 %v6554_v40  ;;  %v1732_v9 = vcvt.s32.f32 %v1725_v0  ;;  %v8410_v10 = vshrl.u32 %v1870_v6, 5  ;;  %v718_v51 = vshrl.u32 %v717_v24, 23  ;;  %v6591_v6 = vld [vmem:[#allocation5 + $0x520] ss:$16 sps:$4 sm:$0xff]  }
 0x1d1   :  { %v6942_v26 = vpop.eup %6941  ;;  %v1730_v48 = vand.u32 2147483647, %v1729_v60  ;;  %v1876_v54 = vshrl.u32 %v9826_v34, %v1873_v46  ;;  %v1879_v43 = vshrl.u32 %v9827_v45, %v1873_v46  ;;  %v1882_v56 = vshrl.u32 %v9828_v1, %v1873_v46  ;;  %3643 = vmatpush2.bf16.msra.mxu0 %v6591_v6  ;;  %v6578_v6 = vld [vmem:[#allocation5 + $0x784] ss:$16 sps:$4 sm:$0xff]  }
 0x1d2   :  { %v8412_v30 = vsub.s32 %v1086_v2, %v1089_v59  ;;  %v918_v29 = vxor.u32 2147483648, %v6940_v42  ;;  %v1875_v31 = vshll.u32 %v9825_v38, %v1872_v4  ;;  %v1878_v16 = vshll.u32 %v9826_v34, %v1872_v4  ;;  %3644 = vmatprep.subr.bf16.mxu0 %v6599_v14 }
 0x1d3   :  { %v1733_v57 = vmul.f32 %v1732_v9, %v1730_v48  ;;  %3672 = vmatpush1.bf16.msra.mxu1 %v6552_v25  ;;  %v915_v7 = vxor.u32 2147483648, %v6942_v26  ;;  %v1881_v3 = vshll.u32 %v9827_v45, %v1872_v4  ;;  %v1884_v40 = vshll.u32 %v9828_v1, %v1872_v4  ;;  %v6597_v48 = vld [vmem:[#allocation5 + $0x500] ss:$16 sps:$4 sm:$0xff]  }
 0x1d4   :  { %v1092_v2 = vsub.s32 0, %v8412_v30  ;;  %3673 = vmatprep.subr.bf16.mxu1 %v6560_v27  ;;  %v1885_v61 = vshrl.u32 %v9829_v50, %v1873_v46  ;;  %v1887_v35 = vshll.u32 %v9829_v50, %v1872_v4  ;;  %v1888_v0 = vshrl.u32 %v7147_v15, %v1873_v46 }
 0x1d5   :  { %v1734_v22 = vxor.u32 2147483648, %v1733_v57  ;;  %v1877_v24 = vor.u32 %v1876_v54, %v1875_v31  ;;  %v1880_v25 = vor.u32 %v1879_v43, %v1878_v16  ;;  %v1883_v60 = vor.u32 %v1882_v56, %v1881_v3  ;;  %v6572_v56 = vld [vmem:[#allocation5 + $0x7a4] ss:$16 sps:$4 sm:$0xff]   ;;  %3645 = vmatpush2.bf16.msra.mxu0 %v6597_v48 }
 0x1d6   :  { %v5835_v63 = vmin.u32 %v1092_v2, %v8412_v30  ;;  %v1886_v59 = vor.u32 %v1885_v61, %v1884_v40  ;;  %v1889_v27 = vor.u32 %v1888_v0, %v1887_v35  ;;  %v5822_v9 = vadd.s32 4294967169, %v718_v51  ;;  %v6570_v51 = vld [vmem:[#allocation5 + $0x7a0] ss:$16 sps:$4 sm:$0xff]   ;;  %v6584_v48 = vld [vmem:[#allocation5 + $0x764] ss:$16 sps:$4 sm:$0xff]  }
 0x1d7   :  { %v1735_v8 = vsel %vm1652_vm13, %v1734_v22, %v1733_v57  ;;  %3674 = vmatpush2.bf16.msra.mxu1 %v6558_v23  ;;  %v919_v4 = vsel %vm917_vm2, %v918_v29, %v6942_v26  ;;  %v1874_v43 = vshrl.u32 %v9825_v38, %v1873_v46  ;;  %v916_v57 = vsel %vm914_vm3, %v6940_v42, %v915_v7 }
 0x1d8   :  { %v1738_v2 = vsel %vm8363_vm12, %v8030_v44, %v1735_v8  ;;  %v1094_v54 = vclz %v5835_v63  ;;  %3675 = vmatprep.subr.bf16.mxu1 %v6566_v37  ;;  %vm1890_vm4 = vcmp.lt.s32.totalorder %v8410_v10, 1  ;;  %vm1892_vm5 = vcmp.lt.s32.totalorder %v8410_v10, 3 }
 0x1d9   :  { %6943 = vcosq.f32 %v1738_v2  ;;  %vm1893_vm6 = vcmp.lt.s32.totalorder %v8410_v10, 4  ;;  %v1898_v41 = vsel %vm1890_vm4, %v1877_v24, %v1880_v25  ;;  %v1902_v31 = vsel %vm1890_vm4, %v1880_v25, %v1883_v60 }
 0x1da   :  { %6945 = vsinq.f32 %v1738_v2  ;;  %v5836_v26 = vadd.s32 4294967294, %v1094_v54  ;;  %v1895_v46 = vsel %vm1893_vm6, %v1883_v60, 2102212464  ;;  %v1899_v29 = vsel %vm1893_vm6, %v1886_v59, 920167782 }
 0x1db   :  { %v1903_v16 = vsel %vm1893_vm6, %v1889_v27, 1326507024  ;;  %3676 = vmatpush2.bf16.msra.mxu1 %v6564_v55  ;;  %vm910_vm7 = vweird.f32 %v8026_v53  ;;  %vm1891_vm9 = vcmp.lt.s32.totalorder %v8410_v10, 2  ;;  %v1900_v42 = vsel %vm1892_vm5, %v1883_v60, %v1899_v29  ;;  %v6588_v53 = vld [vmem:[#allocation5 + $0x740] ss:$16 sps:$4 sm:$0xff]  }
 0x1dc   :  { %vm5837_vm8 = vcmp.lt.s32.totalorder %v5836_v26, 0  ;;  %v1904_v23 = vsel %vm1892_vm5, %v1886_v59, %v1903_v16  ;;  %3677 = vmatprep.subr.bf16.mxu1 %v6572_v56  ;;  %v1894_v3 = vsel %vm1890_vm4, %v1874_v43, %v1877_v24  ;;  %v1901_v40 = vsel %vm1891_vm9, %v1898_v41, %v1900_v42  ;;  %v6576_v24 = vld [vmem:[#allocation5 + $0x780] ss:$16 sps:$4 sm:$0xff]  }
 0x1dd   :  { %v1097_v7 = vsel %vm5837_vm8, 0, %v5836_v26  ;;  %v1905_v37 = vsel %vm1891_vm9, %v1902_v31, %v1904_v23  ;;  %v1896_v61 = vsel %vm1892_vm5, %v1880_v25, %v1895_v46  ;;  %v724_v35 = vadd.s32 1, %v5822_v9 }
 0x1de   :  { %v1098_v14 = vsub.s32 32, %v1097_v7  ;;  %v1102_v22 = vsub.s32 4294967266, %v1097_v7  ;;  %v8458_v0 = vmul.u32.u64.low %v8408_v28, %v1905_v37  ;;  %v8459_v63 = vmul.u32.u64.high %v8408_v28, %v1905_v37, %v8458_v0 }
 0x1df   :  { %v8462_v60 = vmul.u32.u64.low %v8408_v28, %v1901_v40  ;;  %v8463_v8 = vmul.u32.u64.high %v8408_v28, %v1901_v40, %v8462_v60  ;;  %3678 = vmatpush2.bf16.msra.mxu1 %v6570_v51  ;;  %v1099_v59 = vshll.u32 %v8412_v30, %v1097_v7  ;;  %vm725_vm10 = vcmp.gt.s32.totalorder %v724_v35, 0 }
 0x1e0   :  { %v1100_v27 = vshrl.u32 %v8405_v21, %v1098_v14  ;;  %v1103_v55 = vadd.s32 127, %v1102_v22  ;;  %3679 = vmatprep.subr.bf16.mxu1 %v6578_v6  ;;  %vm913_vm11 = vcmp.lt.s32.totalorder %v8388_v52, 2  ;;  %v1897_v25 = vsel %vm1891_vm9, %v1894_v3, %v1896_v61  ;;  %v6582_v52 = vld [vmem:[#allocation5 + $0x760] ss:$16 sps:$4 sm:$0xff]   ;;  %v6596_v61 = vld [vmem:[#allocation5 + $0x724] ss:$16 sps:$4 sm:$0xff]  }
 0x1e1   :  { %v714_v9 = vand.u32 2147483647, %v8044_v12  ;;  %v726_v2 = vsel %vm725_vm10, %v724_v35, 0  ;;  %v920_v54 = vsel %vm913_vm11, %v916_v57, %v919_v4  ;;  %vm1742_vm12 = vweird.f32 %v8030_v44  ;;  %v6590_v4 = vld [vmem:[#allocation5 + $0x744] ss:$16 sps:$4 sm:$0xff]  }
 0x1e2   :  { %v1101_v43 = vor.u32 %v1100_v27, %v1099_v59  ;;  %v1104_v56 = vshll.u32 %v1103_v55, 23  ;;  %v728_v26 = vand.u32 31, %v726_v2  ;;  %vm1745_vm13 = vcmp.lt.s32.totalorder %v8401_v49, 2 }
 0x1e3   :  { %vm1915_vm14 = vc.u32 %v8459_v63, %v8462_v60  ;;  %v1916_v21 = vadd.s32 1, %v8463_v8  ;;  %3680 = vmatpush2.bf16.msra.mxu1 %v6576_v24  ;;  %vm1746_vm15 = vcmp.eq.s32.totalorder %v8401_v49, 0  ;;  %v1913_v30 = vmul.u32 %v8408_v28, %v1897_v25 }
 0x1e4   :  { %v1105_v10 = vor.u32 4788187, %v1104_v56  ;;  %3681 = vmatprep.subr.bf16.mxu1 %v6584_v48  ;;  %v729_v57 = vsub.s32 32, %v728_v26  ;;  %v921_v41 = vsel %vm910_vm7, nan, %v920_v54  ;;  %vm1749_vm0 = vcmp.eq.s32.totalorder %v8401_v49, 2 }
 0x1e5   :  { %v1917_v51 = vsel %vm1915_vm14, %v1916_v21, %v8463_v8  ;;  %v8485_v46 = vand.u32 8388607, %v714_v9  ;;  %vm1028_vm1 = vcmp.lt.s32.totalorder %v8165_v19, 0  ;;  %v1108_v16 = vcvt.s32.f32 %v1101_v43  ;;  %v6594_v56 = vld [vmem:[#allocation5 + $0x720] ss:$16 sps:$4 sm:$0xff]  }
 0x1e6   :  { %v6944_v29 = vpop.eup %6943  ;;  %v1106_v31 = vand.u32 2147483647, %v1105_v10  ;;  %v1918_v28 = vadd.s32 %v1917_v51, %v1913_v30  ;;  %v8488_v42 = vshrl.u32 %v726_v2, 5  ;;  %v732_v7 = vshrl.u32 %v9826_v34, %v729_v57  ;;  %v6602_v49 = vld [vmem:[#allocation5 + $0x704] ss:$16 sps:$4 sm:$0xff]  }
 0x1e7   :  { %v6946_v23 = vpop.eup %6945  ;;  %v1750_v6 = vxor.u32 2147483648, %v6944_v29  ;;  %3682 = vmatpush2.bf16.msra.mxu1 %v6582_v52  ;;  %v737_v3 = vshll.u32 %v9827_v45, %v728_v26  ;;  %v738_v40 = vshrl.u32 %v9828_v1, %v729_v57  ;;  %v735_v35 = vshrl.u32 %v9827_v45, %v729_v57 }
 0x1e8   :  { %v1747_v37 = vxor.u32 2147483648, %v6946_v23  ;;  %v1109_v14 = vmul.f32 %v1108_v16, %v1106_v31  ;;  %v1919_v22 = vadd.s32 536870912, %v1918_v28  ;;  %3683 = vmatprep.subr.bf16.mxu1 %v6590_v4  ;;  %v731_v8 = vshll.u32 %v9825_v38, %v728_v26 }
 0x1e9   :  { %v1751_v0 = vsel %vm1749_vm0, %v1750_v6, %v6946_v23  ;;  %v734_v24 = vshll.u32 %v9826_v34, %v728_v26  ;;  %v741_v59 = vshrl.u32 %v9829_v50, %v729_v57  ;;  %v739_v48 = vor.u32 %v738_v40, %v737_v3 }
 0x1ea   :  { %v1748_v27 = vsel %vm1746_vm15, %v6944_v29, %v1747_v37  ;;  %v8501_v55 = vshrl.u32 %v1919_v22, 30  ;;  %v740_v25 = vshll.u32 %v9828_v1, %v728_v26  ;;  %vm1765_vm2 = vcmp.gt.s32.totalorder %v8395_v18, 0 }
 0x1eb   :  { %v1752_v2 = vsel %vm1745_vm13, %v1748_v27, %v1751_v0  ;;  %vm8509_vm3 = vcmp.le.f32.partialorder %v1026_v20, 0.7853982  ;;  %v1110_v43 = vxor.u32 2147483648, %v1109_v14  ;;  %3684 = vmatpush2.bf16.msra.mxu1 %v6588_v53  ;;  %v743_v21 = vshll.u32 %v9829_v50, %v728_v26  ;;  %v6600_v53 = vld [vmem:[#allocation5 + $0x700] ss:$16 sps:$4 sm:$0xff]  }
 0x1ec   :  { %v744_v52 = vshrl.u32 %v7147_v15, %v729_v57  ;;  %v1753_v10 = vsel %vm1742_vm12, nan, %v1752_v2  ;;  %v1921_v30 = vshll.u32 %v8501_v55, 30  ;;  %3685 = vmatprep.subr.bf16.mxu1 %v6596_v61  ;;  %v733_v4 = vor.u32 %v732_v7, %v731_v8 }
 0x1ed   :  { %v736_v51 = vor.u32 %v735_v35, %v734_v24  ;;  %v8518_v20 = vpack.c.bf16 %v1753_v10, %v921_v41  ;;  %v722_v29 = vor.u32 8388608, %v8485_v46  ;;  %v742_v31 = vor.u32 %v741_v59, %v740_v25 }
 0x1ee   :  { %v745_v16 = vor.u32 %v744_v52, %v743_v21  ;;  %v8521_v23 = vsub.s32 %v1918_v28, %v1921_v30  ;;  %v730_v26 = vshrl.u32 %v9825_v38, %v729_v57  ;;  %vm749_vm4 = vcmp.lt.s32.totalorder %v8488_v42, 4 }
 0x1ef   :  { %v1546_v44 = vand.u32 2147483647, %v7407_v39  ;;  %3646 = vmatprep.mubr.bf16.mxu0 %v8518_v20  ;;  %v1111_v6 = vsel %vm1028_vm1, %v1110_v43, %v1109_v14  ;;  %v1112_v41 = vsub.s32 4, %v8397_v32  ;;  %3686 = vmatpush2.bf16.msra.mxu1 %v6594_v56  ;;  %vm746_vm5 = vcmp.lt.s32.totalorder %v8488_v42, 1 }
 0x1f0   :  { %v751_v46 = vsel %vm749_vm4, %v739_v48, 2102212464  ;;  %v1924_v57 = vsub.s32 0, %v8521_v23  ;;  %3687 = vmatprep.subr.bf16.mxu1 %v6602_v49  ;;  %vm748_vm6 = vcmp.lt.s32.totalorder %v8488_v42, 3  ;;  %v750_v28 = vsel %vm746_vm5, %v730_v26, %v733_v4 }
 0x1f1   :  { %v754_v7 = vsel %vm746_vm5, %v733_v4, %v736_v51  ;;  %v752_v3 = vsel %vm748_vm6, %v736_v51, %v751_v46  ;;  %v755_v40 = vsel %vm749_vm4, %v742_v31, 920167782  ;;  %v758_v37 = vsel %vm746_vm5, %v736_v51, %v739_v48  ;;  %v6605_v51 = vld [vmem:[#allocation5 + $0xec] ss:$16 sps:$4 sm:$0xff]  }
 0x1f2   :  { %v759_v14 = vsel %vm749_vm4, %v745_v16, 1326507024  ;;  %v5867_v22 = vmin.u32 %v1924_v57, %v8521_v23  ;;  %vm747_vm7 = vcmp.lt.s32.totalorder %v8488_v42, 2  ;;  %v756_v61 = vsel %vm748_vm6, %v739_v48, %v755_v40  ;;  %3700 = vmatprep.subr.bf16.mxu0 %v6605_v51 }
 0x1f3   :  { %v760_v35 = vsel %vm748_vm6, %v742_v31, %v759_v14  ;;  %v1113_v0 = vsel %vm1028_vm1, %v1112_v41, %v8397_v32  ;;  %3688 = vmatpush2.bf16.msra.mxu1 %v6600_v53  ;;  %v757_v8 = vsel %vm747_vm7, %v754_v7, %v756_v61  ;;  %v762_v59 = vshll.u32 %v722_v29, 8 }
 0x1f4   :  { %v761_v24 = vsel %vm747_vm7, %v758_v37, %v760_v35  ;;  %v1114_v27 = vsel %vm8509_vm3, %v8165_v19, %v1111_v6  ;;  %v1926_v25 = vclz %v5867_v22  ;;  %v753_v2 = vsel %vm747_vm7, %v750_v28, %v752_v3 }
 0x1f5   :  { %v1561_v43 = vsub.s32 32, %v8393_v36  ;;  %v8548_v56 = vmul.u32.u64.low %v762_v59, %v761_v24  ;;  %v8549_v42 = vmul.u32.u64.high %v762_v59, %v761_v24, %v8548_v56  ;;  %v8556_v32 = vshrl.u32 %v8386_v11, 5 }
 0x1f6   :  { %v8551_v48 = vmul.u32.u64.low %v762_v59, %v757_v8  ;;  %v8552_v21 = vmul.u32.u64.high %v762_v59, %v757_v8, %v8551_v48  ;;  %v8561_v52 = vsel %vm1765_vm2, %v8395_v18, 0  ;;  %v1115_v10 = vsel %vm8509_vm3, 0, %v1113_v0 }
 0x1f7   :  { %v5868_v30 = vadd.s32 4294967294, %v1926_v25  ;;  %6947 = vcosq.f32 %v1114_v27  ;;  %vm1860_vm8 = vcmp.lt.s32.totalorder %v8040_v33, 0  ;;  %v1914_v49 = vadd.s32 %v8462_v60, %v8459_v63  ;;  %v6608_v60 = vld [vmem:[#allocation5 + $0x2ec] ss:$16 sps:$4 sm:$0xff]  }
 0x1f8   :  { %v1944_v4 = vsub.s32 4, %v8501_v55  ;;  %v8571_v11 = vand.u32 8388607, %v1546_v44  ;;  %6949 = vsinq.f32 %v1114_v27  ;;  %v769_v18 = vmul.u32 %v762_v59, %v753_v2  ;;  %3743 = vmatprep.subr.bf16.mxu1 %v6608_v60 }
 0x1f9   :  { %vm5869_vm9 = vcmp.lt.s32.totalorder %v5868_v30, 0  ;;  %v1563_v54 = vshll.u32 %v9825_v38, %v8393_v36  ;;  %vm771_vm10 = vc.u32 %v8549_v42, %v8551_v48  ;;  %v772_v31 = vadd.s32 1, %v8552_v21 }
 0x1fa   :  { %v1929_v29 = vsel %vm5869_vm9, 0, %v5868_v30  ;;  %v1564_v63 = vshrl.u32 %v9826_v34, %v1561_v43  ;;  %v1566_v6 = vshll.u32 %v9826_v34, %v8393_v36  ;;  %v1567_v41 = vshrl.u32 %v9827_v45, %v1561_v43 }
 0x1fb   :  { %v1930_v16 = vsub.s32 32, %v1929_v29  ;;  %v1934_v26 = vsub.s32 4294967266, %v1929_v29  ;;  %v773_v53 = vsel %vm771_vm10, %v772_v31, %v8552_v21  ;;  %v1569_v46 = vshll.u32 %v9827_v45, %v8393_v36 }
 0x1fc   :  { %v1570_v57 = vshrl.u32 %v9828_v1, %v1561_v43  ;;  %v1573_v28 = vshrl.u32 %v9829_v50, %v1561_v43  ;;  %v1931_v7 = vshll.u32 %v8521_v23, %v1929_v29  ;;  %v774_v37 = vadd.s32 %v773_v53, %v769_v18 }
 0x1fd   :  { %v1932_v3 = vshrl.u32 %v1914_v49, %v1930_v16  ;;  %v1935_v40 = vadd.s32 127, %v1934_v26  ;;  %v1565_v14 = vor.u32 %v1564_v63, %v1563_v54  ;;  %v1572_v22 = vshll.u32 %v9828_v1, %v8393_v36 }
 0x1fe   :  { %v1575_v61 = vshll.u32 %v9829_v50, %v8393_v36  ;;  %v1576_v35 = vshrl.u32 %v7147_v15, %v1561_v43  ;;  %v775_v24 = vadd.s32 536870912, %v774_v37  ;;  %v1568_v59 = vor.u32 %v1567_v41, %v1566_v6 }
 0x1ff   :  { %v1933_v0 = vor.u32 %v1932_v3, %v1931_v7  ;;  %v1936_v8 = vshll.u32 %v1935_v40, 23  ;;  %v1119_v27 = vadd.s32 3, %v1115_v10  ;;  %vm8595_vm11 = vcmp.le.f32.partialorder %v1858_v47, 0.7853982 }
 0x200   :  { %v1571_v25 = vor.u32 %v1570_v57, %v1569_v46  ;;  %v1574_v2 = vor.u32 %v1573_v28, %v1572_v22  ;;  %v1577_v56 = vor.u32 %v1576_v35, %v1575_v61  ;;  %v1945_v36 = vsel %vm1860_vm8, %v1944_v4, %v8501_v55 }
 0x201   :  { %v1937_v21 = vor.u32 4788187, %v1936_v8  ;;  %v8602_v30 = vshrl.u32 %v775_v24, 30  ;;  %v1554_v49 = vor.u32 8388608, %v8571_v11  ;;  %v1562_v10 = vshrl.u32 %v9825_v38, %v1561_v43  ;;  %v9863_v24 = vld [vmem:[#allocation23_spill] sm:$0xff] }
 0x202   :  { %vm1578_vm12 = vcmp.lt.s32.totalorder %v8556_v32, 1  ;;  %vm1580_vm13 = vcmp.lt.s32.totalorder %v8556_v32, 3  ;;  %vm1581_vm14 = vcmp.lt.s32.totalorder %v8556_v32, 4  ;;  %v1940_v18 = vcvt.s32.f32 %v1933_v0 }
 0x203   :  { %v1938_v47 = vand.u32 2147483647, %v1937_v21  ;;  %v777_v54 = vshll.u32 %v8602_v30, 30  ;;  %v1586_v51 = vsel %vm1578_vm12, %v1565_v14, %v1568_v59  ;;  %v1583_v55 = vsel %vm1581_vm14, %v1571_v25, 2102212464 }
 0x204   :  { %v1587_v4 = vsel %vm1581_vm14, %v1574_v2, 920167782  ;;  %v1590_v11 = vsel %vm1578_vm12, %v1568_v59, %v1571_v25  ;;  %v1591_v29 = vsel %vm1581_vm14, %v1577_v56, 1326507024  ;;  %v6948_v43 = vpop.eup %6947  ;;  %vm1579_vm15 = vcmp.lt.s32.totalorder %v8556_v32, 2 }
 0x205   :  { %v1941_v31 = vmul.f32 %v1940_v18, %v1938_v47  ;;  %v8614_v63 = vsub.s32 %v774_v37, %v777_v54  ;;  %v1588_v60 = vsel %vm1580_vm13, %v1571_v25, %v1587_v4  ;;  %v6950_v16 = vpop.eup %6949  ;;  %v1582_v26 = vsel %vm1578_vm12, %v1562_v10, %v1565_v14 }
 0x206   :  { %v1589_v6 = vsel %vm1579_vm15, %v1586_v51, %v1588_v60  ;;  %v1592_v41 = vsel %vm1580_vm13, %v1574_v2, %v1591_v29  ;;  %v1594_v53 = vshll.u32 %v1554_v49, 8  ;;  %v1584_v28 = vsel %vm1580_vm13, %v1568_v59, %v1583_v55  ;;  %v9864_v59 = vld [vmem:[#allocation19_spill] sm:$0xff] }
 0x207   :  { %v1942_v46 = vxor.u32 2147483648, %v1941_v31  ;;  %v780_v57 = vsub.s32 0, %v8614_v63  ;;  %v1593_v7 = vsel %vm1579_vm15, %v1590_v11, %v1592_v41  ;;  %v1947_v61 = vsel %vm8595_vm11, 0, %v1945_v36 }
 0x208   :  { %v8630_v3 = vmul.u32.u64.low %v1594_v53, %v1593_v7  ;;  %v8631_v40 = vmul.u32.u64.high %v1594_v53, %v1593_v7, %v8630_v3  ;;  %v8633_v37 = vmul.u32.u64.low %v1594_v53, %v1589_v6  ;;  %v8634_v14 = vmul.u32.u64.high %v1594_v53, %v1589_v6, %v8633_v37 }
 0x209   :  { %v1943_v22 = vsel %vm1860_vm8, %v1942_v46, %v1941_v31  ;;  %v5823_v35 = vmin.u32 %v780_v57, %v8614_v63  ;;  %v1120_v0 = vand.u32 3, %v1119_v27  ;;  %v8647_v25 = vadd.f32 %v9864_v59, %v9863_v24 }
 0x20a   :  { %v1946_v8 = vsel %vm8595_vm11, %v8040_v33, %v1943_v22  ;;  %v8650_v2 = vshrl.u32 %v8561_v52, 5  ;;  %v1585_v21 = vsel %vm1579_vm15, %v1582_v26, %v1584_v28  ;;  %v8655_v36 = vand.u32 31, %v8561_v52 }
 0x20b   :  { %6951 = vcosq.f32 %v1946_v8  ;;  %v782_v56 = vclz %v5823_v35  ;;  %v1951_v27 = vadd.s32 3, %v1947_v61  ;;  %vm1603_vm0 = vc.u32 %v8631_v40, %v8633_v37 }
 0x20c   :  { %6953 = vsinq.f32 %v1946_v8  ;;  %v1126_v23 = vxor.u32 2147483648, %v6948_v43  ;;  %vm716_vm1 = vcmp.lt.s32.totalorder %v8044_v12, 0  ;;  %v1604_v10 = vadd.s32 1, %v8634_v14 }
 0x20d   :  { %v5824_v49 = vadd.s32 4294967294, %v782_v56  ;;  %vm1122_vm2 = vcmp.eq.s32.totalorder %v1120_v0, 0  ;;  %v1123_v47 = vxor.u32 2147483648, %v6950_v16  ;;  %v1601_v18 = vmul.u32 %v1594_v53, %v1585_v21 }
 0x20e   :  { %v925_v32 = vand.u32 2139095040, %v8647_v25  ;;  %vm1118_vm3 = vweird.f32 %v8165_v19  ;;  %vm1125_vm4 = vcmp.eq.s32.totalorder %v1120_v0, 2  ;;  %v1605_v52 = vsel %vm1603_vm0, %v1604_v10, %v8634_v14 }
 0x20f   :  { %vm5825_vm5 = vcmp.lt.s32.totalorder %v5824_v49, 0  ;;  %v922_v54 = vand.u32 2147483647, %v8647_v25  ;;  %v1952_v51 = vand.u32 3, %v1951_v27  ;;  %vm8667_vm6 = vcmp.le.f32.partialorder %v714_v9, 0.7853982 }
 0x210   :  { %v785_v4 = vsel %vm5825_vm5, 0, %v5824_v49  ;;  %v1606_v11 = vadd.s32 %v1605_v52, %v1601_v18  ;;  %v926_v29 = vshrl.u32 %v925_v32, 23  ;;  %v1127_v31 = vsel %vm1125_vm4, %v1126_v23, %v6950_v16 }
 0x211   :  { %v770_v60 = vadd.s32 %v8551_v48, %v8549_v42  ;;  %v786_v26 = vsub.s32 32, %v785_v4  ;;  %v790_v6 = vsub.s32 4294967266, %v785_v4  ;;  %v1124_v41 = vsel %vm1122_vm2, %v6948_v43, %v1123_v47 }
 0x212   :  { %v800_v53 = vsub.s32 4, %v8602_v30  ;;  %v1607_v46 = vadd.s32 536870912, %v1606_v11  ;;  %v5830_v57 = vadd.s32 4294967169, %v926_v29  ;;  %v929_v7 = vand.u32 8388607, %v922_v54 }
 0x213   :  { %v788_v28 = vshrl.u32 %v770_v60, %v786_v26  ;;  %v791_v9 = vadd.s32 127, %v790_v6  ;;  %v1754_v3 = vand.u32 2147483647, %v9851_v5  ;;  %vm1121_vm7 = vcmp.lt.s32.totalorder %v1120_v0, 2 }
 0x214   :  { %v787_v16 = vshll.u32 %v8614_v63, %v785_v4  ;;  %v8679_v14 = vshrl.u32 %v1607_v46, 30  ;;  %v932_v42 = vadd.s32 1, %v5830_v57  ;;  %v1128_v48 = vsel %vm1121_vm7, %v1124_v41, %v1127_v31 }
 0x215   :  { %vm1950_vm8 = vweird.f32 %v8040_v33  ;;  %vm1953_vm9 = vcmp.lt.s32.totalorder %v1952_v51, 2  ;;  %vm1954_vm10 = vcmp.eq.s32.totalorder %v1952_v51, 0  ;;  %v792_v43 = vshll.u32 %v791_v9, 23 }
 0x216   :  { %v789_v22 = vor.u32 %v788_v28, %v787_v16  ;;  %v8685_v61 = vsel %vm716_vm1, %v800_v53, %v8602_v30  ;;  %v1609_v35 = vshll.u32 %v8679_v14, 30  ;;  %vm933_vm11 = vcmp.gt.s32.totalorder %v932_v42, 0 }
 0x217   :  { %v793_v0 = vor.u32 4788187, %v792_v43  ;;  %v930_v63 = vor.u32 8388608, %v929_v7  ;;  %v934_v8 = vsel %vm933_vm11, %v932_v42, 0  ;;  %v8690_v24 = vand.u32 8388607, %v1754_v3 }
 0x218   :  { %v6952_v59 = vpop.eup %6951  ;;  %v1129_v56 = vsel %vm1118_vm3, nan, %v1128_v48  ;;  %vm1957_vm12 = vcmp.eq.s32.totalorder %v1952_v51, 2  ;;  %v8694_v21 = vsub.s32 %v1606_v11, %v1609_v35  ;;  %v936_v27 = vand.u32 31, %v934_v8 }
 0x219   :  { %v6954_v30 = vpop.eup %6953  ;;  %v1958_v23 = vxor.u32 2147483648, %v6952_v59  ;;  %v794_v49 = vand.u32 2147483647, %v793_v0  ;;  %v803_v10 = vsel %vm8667_vm6, 0, %v8685_v61  ;;  %v8700_v47 = vsub.s32 32, %v8655_v36 }
 0x21a   :  { %v1955_v18 = vxor.u32 2147483648, %v6954_v30  ;;  %v796_v32 = vcvt.s32.f32 %v789_v22  ;;  %v1612_v52 = vsub.s32 0, %v8694_v21  ;;  %v937_v19 = vsub.s32 32, %v936_v27 }
 0x21b   :  { %v1959_v4 = vsel %vm1957_vm12, %v1958_v23, %v6954_v30  ;;  %v1602_v11 = vadd.s32 %v8633_v37, %v8631_v40  ;;  %v8705_v29 = vshll.u32 %v930_v63, 8  ;;  %v1762_v31 = vor.u32 8388608, %v8690_v24 }
 0x21c   :  { %v1956_v60 = vsel %vm1954_vm10, %v6952_v59, %v1955_v18  ;;  %v797_v26 = vmul.f32 %v796_v32, %v794_v49  ;;  %v5855_v6 = vmin.u32 %v1612_v52, %v8694_v21  ;;  %v8712_v41 = vshll.u32 %v9825_v38, %v8655_v36 }
 0x21d   :  { %v1960_v53 = vsel %vm1953_vm9, %v1956_v60, %v1959_v4  ;;  %v940_v46 = vshrl.u32 %v9826_v34, %v937_v19  ;;  %v8718_v40 = vshrl.u32 %v9826_v34, %v8700_v47  ;;  %v8722_v37 = vshll.u32 %v9826_v34, %v8655_v36 }
 0x21e   :  { %v1961_v57 = vsel %vm1950_vm8, nan, %v1960_v53  ;;  %v1614_v28 = vclz %v5855_v6  ;;  %v939_v9 = vshll.u32 %v9825_v38, %v936_v27  ;;  %v943_v7 = vshrl.u32 %v9827_v45, %v937_v19 }
 0x21f   :  { %v8728_v51 = vpack.c.bf16 %v1961_v57, %v1129_v56  ;;  %v1632_v16 = vsub.s32 4, %v8679_v14  ;;  %v935_v42 = vshrl.u32 %v934_v8, 5  ;;  %v1775_v48 = vshrl.u32 %v9827_v45, %v8700_v47 }
 0x220   :  { %v798_v43 = vxor.u32 2147483648, %v797_v26  ;;  %v5856_v22 = vadd.s32 4294967294, %v1614_v28  ;;  %v941_v35 = vor.u32 %v940_v46, %v939_v9  ;;  %v942_v0 = vshll.u32 %v9826_v34, %v936_v27 }
 0x221   :  { %3689 = vmatprep.mubr.bf16.mxu1 %v8728_v51  ;;  %v945_v33 = vshll.u32 %v9827_v45, %v936_v27  ;;  %v946_v63 = vshrl.u32 %v9828_v1, %v937_v19  ;;  %v948_v59 = vshll.u32 %v9828_v1, %v936_v27  ;;  %v949_v56 = vshrl.u32 %v9829_v50, %v937_v19 }
 0x222   :  { %vm5857_vm13 = vcmp.lt.s32.totalorder %v5856_v22, 0  ;;  %v944_v8 = vor.u32 %v943_v7, %v942_v0  ;;  %v951_v30 = vshll.u32 %v9829_v50, %v936_v27  ;;  %v952_v23 = vshrl.u32 %v7147_v15, %v937_v19 }
 0x223   :  { %v1617_v49 = vsel %vm5857_vm13, 0, %v5856_v22  ;;  %v947_v18 = vor.u32 %v946_v63, %v945_v33  ;;  %v950_v32 = vor.u32 %v949_v56, %v948_v59  ;;  %v1777_v52 = vshll.u32 %v9827_v45, %v8655_v36 }
 0x224   :  { %v1618_v4 = vsub.s32 32, %v1617_v49  ;;  %v1622_v60 = vsub.s32 4294967266, %v1617_v49  ;;  %v938_v6 = vshrl.u32 %v9825_v38, %v937_v19  ;;  %v953_v53 = vor.u32 %v952_v23, %v951_v30 }
 0x225   :  { %v799_v46 = vsel %vm716_vm1, %v798_v43, %v797_v26  ;;  %v1619_v57 = vshll.u32 %v8694_v21, %v1617_v49  ;;  %vm954_vm14 = vcmp.lt.s32.totalorder %v935_v42, 1  ;;  %vm956_vm15 = vcmp.lt.s32.totalorder %v935_v42, 3 }
 0x226   :  { %v1620_v27 = vshrl.u32 %v1602_v11, %v1618_v4  ;;  %v1623_v28 = vadd.s32 127, %v1622_v60  ;;  %vm957_vm0 = vcmp.lt.s32.totalorder %v935_v42, 4  ;;  %v962_v9 = vsel %vm954_vm14, %v941_v35, %v944_v8 }
 0x227   :  { %vm1548_vm2 = vcmp.lt.s32.totalorder %v7407_v39, 0  ;;  %v959_v7 = vsel %vm957_vm0, %v947_v18, 2102212464  ;;  %v963_v22 = vsel %vm957_vm0, %v950_v32, 920167782  ;;  %v966_v0 = vsel %vm954_vm14, %v944_v8, %v947_v18 }
 0x228   :  { %v967_v19 = vsel %vm957_vm0, %v953_v53, 1326507024  ;;  %v1621_v33 = vor.u32 %v1620_v27, %v1619_v57  ;;  %v1624_v63 = vshll.u32 %v1623_v28, 23  ;;  %vm955_vm3 = vcmp.lt.s32.totalorder %v935_v42, 2 }
 0x229   :  { %v964_v26 = vsel %vm956_vm15, %v947_v18, %v963_v22  ;;  %v802_v21 = vsel %vm8667_vm6, %v8044_v12, %v799_v46  ;;  %v958_v11 = vsel %vm954_vm14, %v938_v6, %v941_v35  ;;  %v968_v59 = vsel %vm956_vm15, %v950_v32, %v967_v19 }
 0x22a   :  { %v965_v43 = vsel %vm955_vm3, %v962_v9, %v964_v26  ;;  %vm8759_vm1 = vcmp.le.f32.partialorder %v1546_v44, 0.7853982  ;;  %v1625_v30 = vor.u32 4788187, %v1624_v63  ;;  %v960_v23 = vsel %vm956_vm15, %v944_v8, %v959_v7 }
 0x22b   :  { %v969_v49 = vsel %vm955_vm3, %v966_v0, %v968_v59  ;;  %v1778_v18 = vshrl.u32 %v9828_v1, %v8700_v47  ;;  %v8772_v32 = vmul.u32.u64.low %v8705_v29, %v965_v43  ;;  %v8773_v60 = vmul.u32.u64.high %v8705_v29, %v965_v43, %v8772_v32 }
 0x22c   :  { %v8768_v35 = vmul.u32.u64.low %v8705_v29, %v969_v49  ;;  %v8769_v4 = vmul.u32.u64.high %v8705_v29, %v969_v49, %v8768_v35  ;;  %6955 = vcosq.f32 %v802_v21  ;;  %v1626_v44 = vand.u32 2147483647, %v1625_v30 }
 0x22d   :  { %v1628_v6 = vcvt.s32.f32 %v1621_v33  ;;  %v1781_v8 = vshrl.u32 %v9829_v50, %v8700_v47  ;;  %6957 = vsinq.f32 %v802_v21  ;;  %v961_v53 = vsel %vm955_vm3, %v958_v11, %v960_v23 }
 0x22e   :  { %v1780_v46 = vshll.u32 %v9828_v1, %v8655_v36  ;;  %v1784_v57 = vshrl.u32 %v7147_v15, %v8700_v47  ;;  %v1773_v28 = vor.u32 %v8718_v40, %v8712_v41  ;;  %v1776_v9 = vor.u32 %v1775_v48, %v8722_v37 }
 0x22f   :  { %v1629_v27 = vmul.f32 %v1628_v6, %v1626_v44  ;;  %v1779_v7 = vor.u32 %v1778_v18, %v1777_v52  ;;  %vm979_vm4 = vc.u32 %v8769_v4, %v8772_v32  ;;  %v980_v22 = vadd.s32 1, %v8773_v60 }
 0x230   :  { %v1782_v42 = vor.u32 %v1781_v8, %v1780_v46  ;;  %v1783_v0 = vshll.u32 %v9829_v50, %v8655_v36  ;;  %v1633_v33 = vsel %vm1548_vm2, %v1632_v16, %v8679_v14  ;;  %v977_v41 = vmul.u32 %v8705_v29, %v961_v53 }
 0x231   :  { %v1630_v19 = vxor.u32 2147483648, %v1629_v27  ;;  %v1770_v40 = vshrl.u32 %v9825_v38, %v8700_v47  ;;  %v981_v37 = vsel %vm979_vm4, %v980_v22, %v8773_v60  ;;  %vm1786_vm5 = vcmp.lt.s32.totalorder %v8650_v2, 1 }
 0x232   :  { %v1785_v48 = vor.u32 %v1784_v57, %v1783_v0  ;;  %vm1787_vm7 = vcmp.lt.s32.totalorder %v8650_v2, 2  ;;  %v982_v52 = vadd.s32 %v981_v37, %v977_v41  ;;  %vm1789_vm8 = vcmp.lt.s32.totalorder %v8650_v2, 4 }
 0x233   :  { %v1631_v36 = vsel %vm1548_vm2, %v1630_v19, %v1629_v27  ;;  %v1794_v14 = vsel %vm1786_vm5, %v1773_v28, %v1776_v9  ;;  %vm1788_vm9 = vcmp.lt.s32.totalorder %v8650_v2, 3  ;;  %v1791_v29 = vsel %vm1789_vm8, %v1779_v7, 2102212464 }
 0x234   :  { %v1634_v47 = vsel %vm8759_vm1, %v7407_v39, %v1631_v36  ;;  %v1795_v16 = vsel %vm1789_vm8, %v1782_v42, 920167782  ;;  %v983_v63 = vadd.s32 536870912, %v982_v52  ;;  %v1798_v21 = vsel %vm1786_vm5, %v1776_v9, %v1779_v7 }
 0x235   :  { %6959 = vcosq.f32 %v1634_v47  ;;  %v1796_v26 = vsel %vm1788_vm9, %v1779_v7, %v1795_v16  ;;  %v1799_v43 = vsel %vm1789_vm8, %v1785_v48, 1326507024  ;;  %v1802_v59 = vshll.u32 %v1762_v31, 8 }
 0x236   :  { %6961 = vsinq.f32 %v1634_v47  ;;  %v1797_v11 = vsel %vm1787_vm7, %v1794_v14, %v1796_v26  ;;  %v8817_v30 = vshrl.u32 %v983_v63, 30  ;;  %v1790_v23 = vsel %vm1786_vm5, %v1770_v40, %v1773_v28 }
 0x237   :  { %v1792_v49 = vsel %vm1788_vm9, %v1776_v9, %v1791_v29  ;;  %v1800_v18 = vsel %vm1788_vm9, %v1782_v42, %v1799_v43  ;;  %v807_v35 = vadd.s32 3, %v803_v10  ;;  %v1635_v24 = vsel %vm8759_vm1, 0, %v1633_v33 }
 0x238   :  { %v1801_v60 = vsel %vm1787_vm7, %v1798_v21, %v1800_v18  ;;  %v8827_v44 = vmul.u32.u64.low %v1802_v59, %v1797_v11  ;;  %v8828_v6 = vmul.u32.u64.high %v1802_v59, %v1797_v11, %v8827_v44  ;;  %v985_v31 = vshll.u32 %v8817_v30, 30 }
 0x239   :  { %v8834_v8 = vmul.u32.u64.low %v1802_v59, %v1801_v60  ;;  %v8835_v53 = vmul.u32.u64.high %v1802_v59, %v1801_v60, %v8834_v8  ;;  %v6956_v46 = vpop.eup %6955  ;;  %v1793_v55 = vsel %vm1787_vm7, %v1790_v23, %v1792_v49  ;;  %v1639_v57 = vadd.s32 3, %v1635_v24 }
 0x23a   :  { %v6958_v61 = vpop.eup %6957  ;;  %v986_v10 = vsub.s32 %v982_v52, %v985_v31  ;;  %v1812_v27 = vadd.s32 1, %v8828_v6  ;;  %v808_v28 = vand.u32 3, %v807_v35  ;;  %v1809_v7 = vmul.u32 %v1802_v59, %v1793_v55  ;;  %v6611_v55 = vld [vmem:[#allocation5 + $0xcc] ss:$16 sps:$4 sm:$0xff]  }
 0x23b   :  { %vm1811_vm6 = vc.u32 %v8835_v53, %v8827_v44  ;;  %v811_v56 = vxor.u32 2147483648, %v6958_v61  ;;  %v814_v22 = vxor.u32 2147483648, %v6956_v46  ;;  %v1640_v33 = vand.u32 3, %v1639_v57 }
 0x23c   :  { %v988_v9 = vsub.s32 0, %v986_v10  ;;  %v1813_v42 = vsel %vm1811_vm6, %v1812_v27, %v8828_v6  ;;  %vm810_vm10 = vcmp.eq.s32.totalorder %v808_v28, 0  ;;  %vm813_vm11 = vcmp.eq.s32.totalorder %v808_v28, 2  ;;  %v6603_v6 = vld [vmem:[#allocation5 + $0xe8] ss:$16 sps:$4 sm:$0xff]  }
 0x23d   :  { %v1814_v19 = vadd.s32 %v1813_v42, %v1809_v7  ;;  %v812_v40 = vsel %vm810_vm10, %v6956_v46, %v811_v56  ;;  %v815_v37 = vsel %vm813_vm11, %v814_v22, %v6958_v61  ;;  %vm806_vm12 = vweird.f32 %v8044_v12  ;;  %v6609_v12 = vld [vmem:[#allocation5 + $0xc8] ss:$16 sps:$4 sm:$0xff]   ;;  %v6617_v27 = vld [vmem:[#allocation5 + $0xac] ss:$16 sps:$4 sm:$0xff]  }
 0x23e   :  { %v5831_v0 = vmin.u32 %v988_v9, %v986_v10  ;;  %vm1638_vm13 = vweird.f32 %v7407_v39  ;;  %vm809_vm14 = vcmp.lt.s32.totalorder %v808_v28, 2  ;;  %vm1645_vm15 = vcmp.eq.s32.totalorder %v1640_v33, 2  ;;  %v6615_v56 = vld [vmem:[#allocation5 + $0xa8] ss:$16 sps:$4 sm:$0xff]   ;;  %v6623_v42 = vld [vmem:[#allocation5 + $0x8c] ss:$16 sps:$4 sm:$0xff]  }
 0x23f   :  { %v1815_v48 = vadd.s32 536870912, %v1814_v19  ;;  %v816_v16 = vsel %vm809_vm14, %v812_v40, %v815_v37  ;;  %vm1642_vm0 = vcmp.eq.s32.totalorder %v1640_v33, 0  ;;  %vm1641_vm3 = vcmp.lt.s32.totalorder %v1640_v33, 2  ;;  %v6629_v40 = vld [vmem:[#allocation5 + $0x6c] ss:$16 sps:$4 sm:$0xff]  }
 0x240   :  { %v990_v2 = vclz %v5831_v0  ;;  %v978_v59 = vadd.s32 %v8772_v32, %v8769_v4  ;;  %v817_v18 = vsel %vm806_vm12, nan, %v816_v16  ;;  %v1810_v33 = vadd.s32 %v8827_v44, %v8835_v53 }
 0x241   :  { %v8845_v29 = vshrl.u32 %v1815_v48, 30  ;;  %vm924_vm4 = vcmp.lt.s32.totalorder %v8647_v25, 0  ;;  %vm8865_vm5 = vcmp.le.f32.partialorder %v922_v54, 0.7853982  ;;  %v6641_v54 = vld [vmem:[#allocation5 + $0x2c] ss:$16 sps:$4 sm:$0xff]   ;;  %vm1014_vm14 = vweird.f32 %v8647_v25 }
 0x242   :  { %v6960_v41 = vpop.eup %6959  ;;  %v5832_v14 = vadd.s32 4294967294, %v990_v2  ;;  %vm1756_vm7 = vcmp.lt.s32.totalorder %v9851_v5, 0  ;;  %vm8880_vm8 = vcmp.le.f32.partialorder %v1754_v3, 0.7853982 }
 0x243   :  { %v6962_v36 = vpop.eup %6961  ;;  %v1646_v52 = vxor.u32 2147483648, %v6960_v41  ;;  %v1817_v11 = vshll.u32 %v8845_v29, 30 }
 0x244   :  { %v1643_v47 = vxor.u32 2147483648, %v6962_v36  ;;  %vm5833_vm2 = vcmp.lt.s32.totalorder %v5832_v14, 0 }
 0x245   :  { %v1647_v63 = vsel %vm1645_vm15, %v1646_v52, %v6962_v36  ;;  %v993_v21 = vsel %vm5833_vm2, 0, %v5832_v14  ;;  %v1818_v60 = vsub.s32 %v1814_v19, %v1817_v11  ;;  %v6677_v14 = vld [vmem:[#allocation5 + $0x16c] ss:$16 sps:$4 sm:$0xff]   ;;  %vm1846_vm15 = vweird.f32 %v9851_v5 }
 0x246   :  { %v1644_v26 = vsel %vm1642_vm0, %v6960_v41, %v1643_v47  ;;  %v994_v23 = vsub.s32 32, %v993_v21  ;;  %v998_v49 = vsub.s32 4294967266, %v993_v21  ;;  %v995_v31 = vshll.u32 %v986_v10, %v993_v21  ;;  %v6621_v41 = vld [vmem:[#allocation5 + $0x88] ss:$16 sps:$4 sm:$0xff]  }
 0x247   :  { %v1648_v43 = vsel %vm1641_vm3, %v1644_v26, %v1647_v63  ;;  %v1820_v61 = vsub.s32 0, %v1818_v60  ;;  %v6627_v47 = vld [vmem:[#allocation5 + $0x68] ss:$16 sps:$4 sm:$0xff]   ;;  %v6635_v63 = vld [vmem:[#allocation5 + $0x4c] ss:$16 sps:$4 sm:$0xff]  }
 0x248   :  { %v1649_v35 = vsel %vm1638_vm13, nan, %v1648_v43  ;;  %v996_v8 = vshrl.u32 %v978_v59, %v994_v23  ;;  %v999_v46 = vadd.s32 127, %v998_v49  ;;  %v6633_v43 = vld [vmem:[#allocation5 + $0x48] ss:$16 sps:$4 sm:$0xff]   ;;  %v1008_v59 = vsub.s32 4, %v8817_v30 }
 0x249   :  { %v8854_v24 = vpack.c.bf16 %v1649_v35, %v817_v18  ;;  %v5863_v57 = vmin.u32 %v1820_v61, %v1818_v60  ;;  %v6639_v18 = vld [vmem:[#allocation5 + $0x28] ss:$16 sps:$4 sm:$0xff]   ;;  %v1840_v35 = vsub.s32 4, %v8845_v29 }
 0x24a   :  { %v997_v4 = vor.u32 %v996_v8, %v995_v31  ;;  %v1000_v32 = vshll.u32 %v999_v46, 23  ;;  %v6630_v31 = vld [vmem:[#allocation5 + $0x268] ss:$16 sps:$4 sm:$0xff]  }
 0x24b   :  { %3647 = vmatmul.mubr.bf16.vlgmr.msra.gmra.mxu0 %v8854_v24  ;;  %v1822_v28 = vclz %v5863_v57  ;;  %v6651_v57 = vld [vmem:[#allocation5 + $0x1e8] ss:$16 sps:$4 sm:$0xff]  }
 0x24c   :  { %3701 = vmatpush1.bf16.msra.mxu0 %v6603_v6  ;;  %3732 = vmatprep.mubr.bf16.mxu0 %v7724_v13  ;;  %v1001_v39 = vor.u32 4788187, %v1000_v32  ;;  %v1004_v7 = vcvt.s32.f32 %v997_v4  ;;  %v1009_v6 = vsel %vm924_vm4, %v1008_v59, %v8817_v30  ;;  %v1841_v4 = vsel %vm1756_vm7, %v1840_v35, %v8845_v29  ;;  %v6653_v30 = vld [vmem:[#allocation5 + $0x1ec] ss:$16 sps:$4 sm:$0xff]   ;;  %v6618_v59 = vld [vmem:[#allocation5 + $0x2a8] ss:$16 sps:$4 sm:$0xff]  }
 0x24d   :  { %3702 = vmatprep.subr.bf16.mxu0 %v6611_v55  ;;  %v5864_v10 = vadd.s32 4294967294, %v1822_v28  ;;  %v6645_v55 = vld [vmem:[#allocation5 + $0x8] ss:$16 sps:$4 sm:$0xff]   ;;  %v1011_v61 = vsel %vm8865_vm5, 0, %v1009_v6  ;;  %v1843_v32 = vsel %vm8880_vm8, 0, %v1841_v4 }
 0x24e   :  { %v1002_v9 = vand.u32 2147483647, %v1001_v39  ;;  %v1015_v3 = vadd.s32 3, %v1011_v61  ;;  %v6659_v39 = vld [vmem:[#allocation5 + $0x1cc] ss:$16 sps:$4 sm:$0xff]   ;;  %v1847_v28 = vadd.s32 3, %v1843_v32 }
 0x24f   :  { %vm5865_vm1 = vcmp.lt.s32.totalorder %v5864_v10, 0  ;;  %v6665_v29 = vld [vmem:[#allocation5 + $0x1ac] ss:$16 sps:$4 sm:$0xff]   ;;  %v6624_v35 = vld [vmem:[#allocation5 + $0x288] ss:$16 sps:$4 sm:$0xff]  }
 0x250   :  { %3703 = vmatpush1.bf16.msra.mxu0 %v6609_v12  ;;  %v1005_v22 = vmul.f32 %v1004_v7, %v1002_v9  ;;  %v1825_v19 = vsel %vm5865_vm1, 0, %v5864_v10  ;;  %v1016_v9 = vand.u32 3, %v1015_v3  ;;  %v6657_v7 = vld [vmem:[#allocation5 + $0x1c8] ss:$16 sps:$4 sm:$0xff]   ;;  %v6701_v6 = vld [vmem:[#allocation5 + $0x4ec] ss:$16 sps:$4 sm:$0xff]  }
 0x251   :  { %3704 = vmatprep.subr.bf16.mxu0 %v6617_v27  ;;  %v1826_v13 = vsub.s32 32, %v1825_v19  ;;  %v1830_v2 = vsub.s32 4294967266, %v1825_v19  ;;  %v1827_v48 = vshll.u32 %v1818_v60, %v1825_v19  ;;  %v6647_v60 = vld [vmem:[#allocation5 + $0xc] ss:$16 sps:$4 sm:$0xff]   ;;  %v6636_v61 = vld [vmem:[#allocation5 + $0x248] ss:$16 sps:$4 sm:$0xff]  }
 0x252   :  { %v1006_v0 = vxor.u32 2147483648, %v1005_v22  ;;  %vm1018_vm9 = vcmp.eq.s32.totalorder %v1016_v9, 0  ;;  %vm1021_vm6 = vcmp.eq.s32.totalorder %v1016_v9, 2  ;;  %vm1017_vm10 = vcmp.lt.s32.totalorder %v1016_v9, 2  ;;  %v6644_v4 = vld [vmem:[#allocation5 + $0x22c] ss:$16 sps:$4 sm:$0xff]  }
 0x253   :  { %v1828_v36 = vshrl.u32 %v1810_v33, %v1826_v13  ;;  %v1831_v52 = vadd.s32 127, %v1830_v2  ;;  %v6671_v13 = vld [vmem:[#allocation5 + $0x18c] ss:$16 sps:$4 sm:$0xff]   ;;  %v6642_v32 = vld [vmem:[#allocation5 + $0x228] ss:$16 sps:$4 sm:$0xff]  }
 0x254   :  { %3705 = vmatpush1.bf16.msra.mxu0 %v6615_v56  ;;  %v1007_v37 = vsel %vm924_vm4, %v1006_v0, %v1005_v22  ;;  %v1848_v22 = vand.u32 3, %v1847_v28  ;;  %v6713_v3 = vld [vmem:[#allocation5 + $0x4ac] ss:$16 sps:$4 sm:$0xff]   ;;  %v6717_v28 = vld [vmem:[#allocation5 + $0x488] ss:$16 sps:$4 sm:$0xff]  }
 0x255   :  { %3706 = vmatprep.subr.bf16.mxu0 %v6623_v42  ;;  %v1829_v44 = vor.u32 %v1828_v36, %v1827_v48  ;;  %v1832_v53 = vshll.u32 %v1831_v52, 23  ;;  %v1010_v16 = vsel %vm8865_vm5, %v8647_v25, %v1007_v37  ;;  %v6663_v42 = vld [vmem:[#allocation5 + $0x1a8] ss:$16 sps:$4 sm:$0xff]   ;;  %v6620_v25 = vld [vmem:[#allocation5 + $0x2ac] ss:$16 sps:$4 sm:$0xff]  }
 0x256   :  { %6963 = vcosq.f32 %v1010_v16  ;;  %vm1853_vm11 = vcmp.eq.s32.totalorder %v1848_v22, 2  ;;  %vm1850_vm12 = vcmp.eq.s32.totalorder %v1848_v22, 0  ;;  %v6669_v36 = vld [vmem:[#allocation5 + $0x188] ss:$16 sps:$4 sm:$0xff]   ;;  %vm1849_vm13 = vcmp.lt.s32.totalorder %v1848_v22, 2 }
 0x257   :  { %v1833_v26 = vor.u32 4788187, %v1832_v53  ;;  %v1836_v11 = vcvt.s32.f32 %v1829_v44  ;;  %6965 = vsinq.f32 %v1010_v16  ;;  %v6606_v16 = vld [vmem:[#allocation5 + $0x2e8] ss:$16 sps:$4 sm:$0xff]   ;;  %v6725_v9 = vld [vmem:[#allocation5 + $0x46c] ss:$16 sps:$4 sm:$0xff]  }
 0x258   :  { %3707 = vmatpush1.bf16.msra.mxu0 %v6621_v41  ;;  %v6668_v22 = vld [vmem:[#allocation5 + $0x3ac] ss:$16 sps:$4 sm:$0xff]  }
 0x259   :  { %3708 = vmatprep.subr.bf16.mxu0 %v6629_v40  ;;  %v1834_v21 = vand.u32 2147483647, %v1833_v26  ;;  %v6614_v26 = vld [vmem:[#allocation5 + $0x2cc] ss:$16 sps:$4 sm:$0xff]  }
 0x25b   :  { %v1837_v23 = vmul.f32 %v1836_v11, %v1834_v21  ;;  %v6675_v21 = vld [vmem:[#allocation5 + $0x168] ss:$16 sps:$4 sm:$0xff]   ;;  %v6683_v11 = vld [vmem:[#allocation5 + $0x14c] ss:$16 sps:$4 sm:$0xff]  }
 0x25c   :  { %3709 = vmatpush1.bf16.msra.mxu0 %v6627_v47 }
 0x25d   :  { %3710 = vmatprep.subr.bf16.mxu0 %v6635_v63  ;;  %v1838_v49 = vxor.u32 2147483648, %v1837_v23 }
 0x25f   :  { %v1839_v8 = vsel %vm1756_vm7, %v1838_v49, %v1837_v23  ;;  %v6626_v23 = vld [vmem:[#allocation5 + $0x28c] ss:$16 sps:$4 sm:$0xff]   ;;  %v6687_v49 = vld [vmem:[#allocation5 + $0x128] ss:$16 sps:$4 sm:$0xff]  }
 0x260   :  { %3711 = vmatpush1.bf16.msra.mxu0 %v6633_v43  ;;  %v1842_v46 = vsel %vm8880_vm8, %v9851_v5, %v1839_v8  ;;  %v6612_v43 = vld [vmem:[#allocation5 + $0x2c8] ss:$16 sps:$4 sm:$0xff]   ;;  %v6638_v8 = vld [vmem:[#allocation5 + $0x24c] ss:$16 sps:$4 sm:$0xff]  }
 0x261   :  { %3712 = vmatprep.subr.bf16.mxu0 %v6641_v54  ;;  %6967 = vcosq.f32 %v1842_v46  ;;  %v6681_v5 = vld [vmem:[#allocation5 + $0x148] ss:$16 sps:$4 sm:$0xff]   ;;  %v6689_v54 = vld [vmem:[#allocation5 + $0x12c] ss:$16 sps:$4 sm:$0xff]  }
 0x262   :  { %6969 = vsinq.f32 %v1842_v46  ;;  %v6699_v46 = vld [vmem:[#allocation5 + $0x4e8] ss:$16 sps:$4 sm:$0xff]  }
 0x263   :  { %v6964_v12 = vpop.eup %6963 }
 0x264   :  { %3713 = vmatpush1.bf16.msra.mxu0 %v6639_v18  ;;  %v6966_v27 = vpop.eup %6965  ;;  %v1022_v56 = vxor.u32 2147483648, %v6964_v12  ;;  %v6695_v18 = vld [vmem:[#allocation5 + $0x10c] ss:$16 sps:$4 sm:$0xff]  }
 0x265   :  { %3714 = vmatprep.subr.bf16.mxu0 %v6647_v60  ;;  %v1019_v10 = vxor.u32 2147483648, %v6966_v27  ;;  %v6632_v60 = vld [vmem:[#allocation5 + $0x26c] ss:$16 sps:$4 sm:$0xff]  }
 0x266   :  { %v1023_v33 = vsel %vm1021_vm6, %v1022_v56, %v6966_v27  ;;  %v6648_v27 = vld [vmem:[#allocation5 + $0x208] ss:$16 sps:$4 sm:$0xff]   ;;  %v6731_v56 = vld [vmem:[#allocation5 + $0x44c] ss:$16 sps:$4 sm:$0xff]  }
 0x267   :  { %v1020_v19 = vsel %vm1018_vm9, %v6964_v12, %v1019_v10  ;;  %v6711_v12 = vld [vmem:[#allocation5 + $0x4a8] ss:$16 sps:$4 sm:$0xff]  }
 0x268   :  { %3715 = vmatpush1.bf16.msra.mxu0 %v6645_v55  ;;  %v1024_v37 = vsel %vm1017_vm10, %v1020_v19, %v1023_v33  ;;  %v6707_v55 = vld [vmem:[#allocation5 + $0x4cc] ss:$16 sps:$4 sm:$0xff]   ;;  %v6723_v10 = vld [vmem:[#allocation5 + $0x468] ss:$16 sps:$4 sm:$0xff]  }
 0x269   :  { %3716 = vmatprep.subr.bf16.mxu0 %v6653_v30  ;;  %v1025_v53 = vsel %vm1014_vm14, nan, %v1024_v37  ;;  %v6705_v30 = vld [vmem:[#allocation5 + $0x4c8] ss:$16 sps:$4 sm:$0xff]   ;;  %v6674_v33 = vld [vmem:[#allocation5 + $0x38c] ss:$16 sps:$4 sm:$0xff]  }
 0x26a   :  { %v6666_v19 = vld [vmem:[#allocation5 + $0x3a8] ss:$16 sps:$4 sm:$0xff]  }
 0x26b   :  { %v6741_v37 = vld [vmem:[#allocation5 + $0x408] ss:$16 sps:$4 sm:$0xff]  }
 0x26c   :  { %3717 = vmatpush2.bf16.msra.mxu0 %v6651_v57  ;;  %v6650_v57 = vld [vmem:[#allocation5 + $0x20c] ss:$16 sps:$4 sm:$0xff]  }
 0x26d   :  { %3718 = vmatprep.subr.bf16.mxu0 %v6659_v39  ;;  %v6719_v39 = vld [vmem:[#allocation5 + $0x48c] ss:$16 sps:$4 sm:$0xff]  }
 0x26e   :  { %v6968_v0 = vpop.eup %6967 }
 0x26f   :  { %v6970_v2 = vpop.eup %6969  ;;  %v1854_v41 = vxor.u32 2147483648, %v6968_v0 }
 0x270   :  { %3719 = vmatpush2.bf16.msra.mxu0 %v6657_v7  ;;  %v1851_v40 = vxor.u32 2147483648, %v6970_v2  ;;  %v6662_v7 = vld [vmem:[#allocation5 + $0x3cc] ss:$16 sps:$4 sm:$0xff]  }
 0x271   :  { %3720 = vmatprep.subr.bf16.mxu0 %v6665_v29  ;;  %v1855_v48 = vsel %vm1853_vm11, %v1854_v41, %v6970_v2  ;;  %v6660_v29 = vld [vmem:[#allocation5 + $0x3c8] ss:$16 sps:$4 sm:$0xff]   ;;  %v6743_v2 = vld [vmem:[#allocation5 + $0x40c] ss:$16 sps:$4 sm:$0xff]  }
 0x272   :  { %v1852_v52 = vsel %vm1850_vm12, %v6968_v0, %v1851_v40  ;;  %v6737_v0 = vld [vmem:[#allocation5 + $0x42c] ss:$16 sps:$4 sm:$0xff]   ;;  %v6672_v41 = vld [vmem:[#allocation5 + $0x388] ss:$16 sps:$4 sm:$0xff]  }
 0x273   :  { %v1856_v44 = vsel %vm1849_vm13, %v1852_v52, %v1855_v48  ;;  %v6680_v40 = vld [vmem:[#allocation5 + $0x36c] ss:$16 sps:$4 sm:$0xff]  }
 0x274   :  { %3721 = vmatpush2.bf16.msra.mxu0 %v6663_v42  ;;  %v1857_v47 = vsel %vm1846_vm15, nan, %v1856_v44  ;;  %v6729_v42 = vld [vmem:[#allocation5 + $0x448] ss:$16 sps:$4 sm:$0xff]   ;;  %v6749_v48 = vld [vmem:[#allocation5 + $0x5ec] ss:$16 sps:$4 sm:$0xff]  }
 0x275   :  { %3722 = vmatprep.subr.bf16.mxu0 %v6671_v13  ;;  %v8894_v63 = vpack.c.bf16 %v1857_v47, %v1025_v53  ;;  %v6735_v13 = vld [vmem:[#allocation5 + $0x428] ss:$16 sps:$4 sm:$0xff]   ;;  %v6686_v52 = vld [vmem:[#allocation5 + $0x34c] ss:$16 sps:$4 sm:$0xff]  }
 0x276   :  { %v6755_v44 = vld [vmem:[#allocation5 + $0x5cc] ss:$16 sps:$4 sm:$0xff]   ;;  %v6684_v53 = vld [vmem:[#allocation5 + $0x348] ss:$16 sps:$4 sm:$0xff]  }
 0x277   :  { %3690 = vmatmul.mubr.bf16.vlgmr.msra.gmra.mxu1 %v8894_v63  ;;  %v6692_v47 = vld [vmem:[#allocation5 + $0x32c] ss:$16 sps:$4 sm:$0xff]  }
 0x278   :  { %3723 = vmatpush2.bf16.msra.mxu0 %v6669_v36  ;;  %3744 = vmatpush1.bf16.msra.mxu1 %v6606_v16  ;;  %v6678_v36 = vld [vmem:[#allocation5 + $0x368] ss:$16 sps:$4 sm:$0xff]  }
 0x279   :  { %3724 = vmatprep.subr.bf16.mxu0 %v6677_v14  ;;  %3775 = vmatprep.mubr.bf16.mxu1 %v7905_v58  ;;  %v6693_v58 = vld [vmem:[#allocation5 + $0x108] ss:$16 sps:$4 sm:$0xff]  }
 0x27a   :  { %3745 = vmatprep.subr.bf16.mxu1 %v6614_v26  ;;  %v6747_v14 = vld [vmem:[#allocation5 + $0x5e8] ss:$16 sps:$4 sm:$0xff]   ;;  %v6761_v26 = vld [vmem:[#allocation5 + $0x5ac] ss:$16 sps:$4 sm:$0xff]  }
 0x27b   :  { %v6753_v16 = vld [vmem:[#allocation5 + $0x5c8] ss:$16 sps:$4 sm:$0xff]  }
 0x27c   :  { %3725 = vmatpush2.bf16.msra.mxu0 %v6675_v21  ;;  %3746 = vmatpush1.bf16.msra.mxu1 %v6612_v43  ;;  %v6690_v21 = vld [vmem:[#allocation5 + $0x328] ss:$16 sps:$4 sm:$0xff]  }
 0x27d   :  { %3726 = vmatprep.subr.bf16.mxu0 %v6683_v11  ;;  %3747 = vmatprep.subr.bf16.mxu1 %v6620_v25  ;;  %v6698_v11 = vld [vmem:[#allocation5 + $0x30c] ss:$16 sps:$4 sm:$0xff]   ;;  %v6759_v43 = vld [vmem:[#allocation5 + $0x5a8] ss:$16 sps:$4 sm:$0xff]  }
 0x27e   :  { %v6767_v25 = vld [vmem:[#allocation5 + $0x58c] ss:$16 sps:$4 sm:$0xff]  }
 0x280   :  { %3727 = vmatpush2.bf16.msra.mxu0 %v6681_v5  ;;  %3748 = vmatpush1.bf16.msra.mxu1 %v6618_v59  ;;  %v6696_v5 = vld [vmem:[#allocation5 + $0x308] ss:$16 sps:$4 sm:$0xff]  }
 0x281   :  { %3728 = vmatprep.subr.bf16.mxu0 %v6689_v54  ;;  %3749 = vmatprep.subr.bf16.mxu1 %v6626_v23  ;;  %v6704_v54 = vld [vmem:[#allocation5 + $0x6ec] ss:$16 sps:$4 sm:$0xff]   ;;  %v6765_v59 = vld [vmem:[#allocation5 + $0x588] ss:$16 sps:$4 sm:$0xff]  }
 0x282   :  { %v6773_v23 = vld [vmem:[#allocation5 + $0x56c] ss:$16 sps:$4 sm:$0xff]  }
 0x284   :  { %3729 = vmatpush2.bf16.msra.mxu0 %v6687_v49  ;;  %3750 = vmatpush1.bf16.msra.mxu1 %v6624_v35  ;;  %v6702_v49 = vld [vmem:[#allocation5 + $0x6e8] ss:$16 sps:$4 sm:$0xff]  }
 0x285   :  { %3730 = vmatprep.subr.bf16.mxu0 %v6695_v18  ;;  %3751 = vmatprep.subr.bf16.mxu1 %v6632_v60  ;;  %v6710_v18 = vld [vmem:[#allocation5 + $0x6cc] ss:$16 sps:$4 sm:$0xff]   ;;  %v6771_v35 = vld [vmem:[#allocation5 + $0x568] ss:$16 sps:$4 sm:$0xff]  }
 0x286   :  { %v6779_v60 = vld [vmem:[#allocation5 + $0x54c] ss:$16 sps:$4 sm:$0xff]  }
 0x288   :  { %3731 = vmatpush2.bf16.msra.mxu0 %v6693_v58  ;;  %3752 = vmatpush1.bf16.msra.mxu1 %v6630_v31  ;;  %v6708_v58 = vld [vmem:[#allocation5 + $0x6c8] ss:$16 sps:$4 sm:$0xff]  }
 0x289   :  { %3786 = vmatprep.subr.bf16.mxu0 %v6701_v6  ;;  %3753 = vmatprep.subr.bf16.mxu1 %v6638_v8  ;;  %v6716_v6 = vld [vmem:[#allocation5 + $0x6ac] ss:$16 sps:$4 sm:$0xff]   ;;  %v6777_v31 = vld [vmem:[#allocation5 + $0x548] ss:$16 sps:$4 sm:$0xff]  }
 0x28a   :  { %v6785_v8 = vld [vmem:[#allocation5 + $0x52c] ss:$16 sps:$4 sm:$0xff]  }
 0x28b   :  { %3733 = vmatmul.mubr.bf16.vlgmr.msra.gmra.mxu0 %v8073_v62  ;;  %v6656_v62 = vld [vmem:[#allocation5 + $0x3ec] ss:$16 sps:$4 sm:$0xff]  }
 0x28c   :  { %3787 = vmatpush1.bf16.msra.mxu0 %v6699_v46  ;;  %3818 = vmatprep.mubr.bf16.mxu0 %v8518_v20  ;;  %v6654_v20 = vld [vmem:[#allocation5 + $0x3e8] ss:$16 sps:$4 sm:$0xff]  }
 0x28d   :  { %3788 = vmatprep.subr.bf16.mxu0 %v6707_v55  ;;  %3754 = vmatpush1.bf16.msra.mxu1 %v6636_v61  ;;  %v6714_v46 = vld [vmem:[#allocation5 + $0x6a8] ss:$16 sps:$4 sm:$0xff]   ;;  %v6722_v55 = vld [vmem:[#allocation5 + $0x68c] ss:$16 sps:$4 sm:$0xff]  }
 0x28e   :  { %3755 = vmatprep.subr.bf16.mxu1 %v6644_v4  ;;  %v6783_v61 = vld [vmem:[#allocation5 + $0x528] ss:$16 sps:$4 sm:$0xff]   ;;  %v6791_v4 = vld [vmem:[#allocation5 + $0x50c] ss:$16 sps:$4 sm:$0xff]  }
 0x290   :  { %3789 = vmatpush1.bf16.msra.mxu0 %v6705_v30  ;;  %v6728_v30 = vld [vmem:[#allocation5 + $0x66c] ss:$16 sps:$4 sm:$0xff]  }
 0x291   :  { %3790 = vmatprep.subr.bf16.mxu0 %v6713_v3  ;;  %3756 = vmatpush1.bf16.msra.mxu1 %v6642_v32  ;;  %v6726_v3 = vld [vmem:[#allocation5 + $0x668] ss:$16 sps:$4 sm:$0xff]   ;;  %v6734_v32 = vld [vmem:[#allocation5 + $0x64c] ss:$16 sps:$4 sm:$0xff]  }
 0x292   :  { %3757 = vmatprep.subr.bf16.mxu1 %v6650_v57  ;;  %v6732_v57 = vld [vmem:[#allocation5 + $0x648] ss:$16 sps:$4 sm:$0xff]  }
 0x294   :  { %3791 = vmatpush1.bf16.msra.mxu0 %v6711_v12  ;;  %v6740_v12 = vld [vmem:[#allocation5 + $0x62c] ss:$16 sps:$4 sm:$0xff]  }
 0x295   :  { %3792 = vmatprep.subr.bf16.mxu0 %v6719_v39  ;;  %3758 = vmatpush1.bf16.msra.mxu1 %v6648_v27  ;;  %v6738_v39 = vld [vmem:[#allocation5 + $0x628] ss:$16 sps:$4 sm:$0xff]   ;;  %v6746_v27 = vld [vmem:[#allocation5 + $0x60c] ss:$16 sps:$4 sm:$0xff]  }
 0x296   :  { %3759 = vmatprep.subr.bf16.mxu1 %v6656_v62  ;;  %v6744_v62 = vld [vmem:[#allocation5 + $0x608] ss:$16 sps:$4 sm:$0xff]  }
 0x298   :  { %3793 = vmatpush1.bf16.msra.mxu0 %v6717_v28  ;;  %v6752_v28 = vld [vmem:[#allocation5 + $0x7ec] ss:$16 sps:$4 sm:$0xff]  }
 0x299   :  { %3794 = vmatprep.subr.bf16.mxu0 %v6725_v9  ;;  %3760 = vmatpush2.bf16.msra.mxu1 %v6654_v20  ;;  %v6750_v9 = vld [vmem:[#allocation5 + $0x7e8] ss:$16 sps:$4 sm:$0xff]   ;;  %v6758_v20 = vld [vmem:[#allocation5 + $0x7cc] ss:$16 sps:$4 sm:$0xff]  }
 0x29a   :  { %3761 = vmatprep.subr.bf16.mxu1 %v6662_v7  ;;  %v6756_v7 = vld [vmem:[#allocation5 + $0x7c8] ss:$16 sps:$4 sm:$0xff]  }
 0x29c   :  { %3795 = vmatpush1.bf16.msra.mxu0 %v6723_v10  ;;  %v6764_v10 = vld [vmem:[#allocation5 + $0x7ac] ss:$16 sps:$4 sm:$0xff]  }
 0x29d   :  { %3796 = vmatprep.subr.bf16.mxu0 %v6731_v56  ;;  %3762 = vmatpush2.bf16.msra.mxu1 %v6660_v29  ;;  %v6770_v56 = vld [vmem:[#allocation5 + $0x78c] ss:$16 sps:$4 sm:$0xff]   ;;  %v6768_v29 = vld [vmem:[#allocation5 + $0x788] ss:$16 sps:$4 sm:$0xff]  }
 0x29e   :  { %3763 = vmatprep.subr.bf16.mxu1 %v6668_v22  ;;  %v6776_v22 = vld [vmem:[#allocation5 + $0x76c] ss:$16 sps:$4 sm:$0xff]  }
 0x2a0   :  { %3797 = vmatpush1.bf16.msra.mxu0 %v6729_v42  ;;  %v6774_v42 = vld [vmem:[#allocation5 + $0x768] ss:$16 sps:$4 sm:$0xff]  }
 0x2a1   :  { %3798 = vmatprep.subr.bf16.mxu0 %v6737_v0  ;;  %3764 = vmatpush2.bf16.msra.mxu1 %v6666_v19  ;;  %v6782_v0 = vld [vmem:[#allocation5 + $0x74c] ss:$16 sps:$4 sm:$0xff]   ;;  %v6780_v19 = vld [vmem:[#allocation5 + $0x748] ss:$16 sps:$4 sm:$0xff]  }
 0x2a2   :  { %3765 = vmatprep.subr.bf16.mxu1 %v6674_v33  ;;  %v6788_v33 = vld [vmem:[#allocation5 + $0x72c] ss:$16 sps:$4 sm:$0xff]  }
 0x2a4   :  { %3799 = vmatpush1.bf16.msra.mxu0 %v6735_v13  ;;  %v6786_v13 = vld [vmem:[#allocation5 + $0x728] ss:$16 sps:$4 sm:$0xff]  }
 0x2a5   :  { %3800 = vmatprep.subr.bf16.mxu0 %v6743_v2  ;;  %3766 = vmatpush2.bf16.msra.mxu1 %v6672_v41  ;;  %v6794_v2 = vld [vmem:[#allocation5 + $0x70c] ss:$16 sps:$4 sm:$0xff]   ;;  %v6792_v41 = vld [vmem:[#allocation5 + $0x708] ss:$16 sps:$4 sm:$0xff]  }
 0x2a6   :  { %3767 = vmatprep.subr.bf16.mxu1 %v6680_v40  ;;  %v3562_v40 = vpop.f32.mrf.mxu0 }
 0x2a8   :  { %3801 = vmatpush1.bf16.msra.mxu0 %v6741_v37  ;;  %v3564_v37 = vpop.f32.mrf.mxu0 }
 0x2a9   :  { %3802 = vmatprep.subr.bf16.mxu0 %v6749_v48  ;;  %3768 = vmatpush2.bf16.msra.mxu1 %v6678_v36  ;;  %v8907_v48 = vld [vmem:[%s9789_s4] sm:$0xf] }
 0x2aa   :  { %3769 = vmatprep.subr.bf16.mxu1 %v6686_v52  ;;  %v3566_v36 = vpop.f32.mrf.mxu0  ;;  %v6797_v52 = vld [vmem:[#allocation7 + $0x74] ss:$8 sps:$4 sm:$0xff]  }
 0x2ac   :  { %3803 = vmatpush2.bf16.msra.mxu0 %v6747_v14  ;;  %v3605_v14 = vpop.f32.mrf.mxu1 }
 0x2ad   :  { %3804 = vmatprep.subr.bf16.mxu0 %v6755_v44  ;;  %3770 = vmatpush2.bf16.msra.mxu1 %v6684_v53  ;;  %v6795_v44 = vld [vmem:[#allocation7 + $0x70] ss:$8 sps:$4 sm:$0xff]  }
 0x2ae   :  { %3771 = vmatprep.subr.bf16.mxu1 %v6692_v47  ;;  %v9873_v53 = vld [vmem:[#allocation15_spill] sm:$0xff] }
 0x2af   :  { %v2231_v47 = vrot.slane %v8907_v48, %v9873_v53 }
 0x2b0   :  { %3805 = vmatpush2.bf16.msra.mxu0 %v6753_v16  ;;  %v9874_v16 = vld [vmem:[#allocation16_spill] sm:$0xff] }
 0x2b1   :  { %3806 = vmatprep.subr.bf16.mxu0 %v6761_v26  ;;  %3772 = vmatpush2.bf16.msra.mxu1 %v6690_v21  ;;  %v2235_v26 = vrot.slane %v8907_v48, %v9874_v16  ;;  %v6800_v21 = vld [vmem:[#allocation7 + $0x64] ss:$8 sps:$4 sm:$0xff]  }
 0x2b2   :  { %3773 = vmatprep.subr.bf16.mxu1 %v6698_v11  ;;  %v3607_v11 = vpop.f32.mrf.mxu1 }
 0x2b4   :  { %3807 = vmatpush2.bf16.msra.mxu0 %v6759_v43  ;;  %v6798_v43 = vld [vmem:[#allocation7 + $0x60] ss:$8 sps:$4 sm:$0xff]  }
 0x2b5   :  { %3808 = vmatprep.subr.bf16.mxu0 %v6767_v25  ;;  %3774 = vmatpush2.bf16.msra.mxu1 %v6696_v5  ;;  %v3563_v25 = vadd.f32 %v3562_v40, %v2231_v47 }
 0x2b6   :  { %3829 = vmatprep.subr.bf16.mxu1 %v6704_v54  ;;  %v3565_v54 = vadd.f32 %v3564_v37, %v2235_v26 }
 0x2b8   :  { %3809 = vmatpush2.bf16.msra.mxu0 %v6765_v59  ;;  %3776 = vmatmul.mubr.bf16.vlgmr.msra.gmra.mxu1 %v8274_v17  ;;  %v6720_v17 = vld [vmem:[#allocation5 + $0x688] ss:$16 sps:$4 sm:$0xff]   ;;  %v6803_v59 = vld [vmem:[#allocation7 + $0x54] ss:$8 sps:$4 sm:$0xff]  }
 0x2b9   :  { %3810 = vmatprep.subr.bf16.mxu0 %v6773_v23  ;;  %3830 = vmatpush1.bf16.msra.mxu1 %v6702_v49  ;;  %v3609_v23 = vpop.f32.mrf.mxu1  ;;  %v6801_v49 = vld [vmem:[#allocation7 + $0x50] ss:$8 sps:$4 sm:$0xff]  }
 0x2ba   :  { %3861 = vmatprep.mubr.bf16.mxu1 %v8728_v51  ;;  %3831 = vmatprep.subr.bf16.mxu1 %v6710_v18  ;;  %v6789_v51 = vld [vmem:[#allocation5 + $0x508] ss:$16 sps:$4 sm:$0xff]   ;;  %v3606_v18 = vadd.f32 %v3605_v14, %v3563_v25 }
 0x2bc   :  { %3811 = vmatpush2.bf16.msra.mxu0 %v6771_v35 }
 0x2bd   :  { %3812 = vmatprep.subr.bf16.mxu0 %v6779_v60  ;;  %3832 = vmatpush1.bf16.msra.mxu1 %v6708_v58  ;;  %v3567_v60 = vadd.f32 %v3566_v36, %v2231_v47  ;;  %v6804_v58 = vld [vmem:[#allocation7 + $0x40] ss:$8 sps:$4 sm:$0xff]  }
 0x2be   :  { %3833 = vmatprep.subr.bf16.mxu1 %v6716_v6  ;;  %v6806_v6 = vld [vmem:[#allocation7 + $0x44] ss:$8 sps:$4 sm:$0xff]  }
 0x2c0   :  { %3813 = vmatpush2.bf16.msra.mxu0 %v6777_v31  ;;  %v3608_v31 = vadd.f32 %v3607_v11, %v3565_v54  ;;  %v6821_v11 = vld [vmem:[#allocation7 + $0xf4] ss:$8 sps:$4 sm:$0xff]  }
 0x2c1   :  { %3814 = vmatprep.subr.bf16.mxu0 %v6785_v8  ;;  %3834 = vmatpush1.bf16.msra.mxu1 %v6714_v46  ;;  %v6809_v46 = vld [vmem:[#allocation7 + $0x34] ss:$8 sps:$4 sm:$0xff]  }
 0x2c2   :  { %3835 = vmatprep.subr.bf16.mxu1 %v6722_v55  ;;  %v3611_v55 = vpop.f32.mrf.mxu1 }
 0x2c4   :  { %3815 = vmatpush2.bf16.msra.mxu0 %v6783_v61 }
 0x2c5   :  { %3816 = vmatprep.subr.bf16.mxu0 %v6791_v4  ;;  %3836 = vmatpush1.bf16.msra.mxu1 %v6720_v17  ;;  %v3610_v17 = vadd.f32 %v3609_v23, %v3567_v60 }
 0x2c6   :  { %3837 = vmatprep.subr.bf16.mxu1 %v6728_v30 }
 0x2c8   :  { %3817 = vmatpush2.bf16.msra.mxu0 %v6789_v51  ;;  %v6807_v51 = vld [vmem:[#allocation7 + $0x30] ss:$8 sps:$4 sm:$0xff]  }
 0x2c9   :  { %3838 = vmatpush1.bf16.msra.mxu1 %v6726_v3  ;;  %5104 = vmatprep.subr.bf16.mxu0 %v6797_v52 }
 0x2ca   :  { %3839 = vmatprep.subr.bf16.mxu1 %v6734_v32  ;;  %v6812_v32 = vld [vmem:[#allocation7 + $0x24] ss:$8 sps:$4 sm:$0xff]  }
 0x2cb   :  { %3819 = vmatmul.mubr.bf16.vlgmr.msra.gmra.mxu0 %v8854_v24  ;;  %v6762_v24 = vld [vmem:[#allocation5 + $0x7a8] ss:$16 sps:$4 sm:$0xff]  }
 0x2cc   :  { %5105 = vmatpush1.bf16.msra.mxu0 %v6795_v44 }
 0x2cd   :  { %3840 = vmatpush1.bf16.msra.mxu1 %v6732_v57  ;;  %5106 = vmatprep.subr.bf16.mxu0 %v6800_v21 }
 0x2ce   :  { %3841 = vmatprep.subr.bf16.mxu1 %v6740_v12 }
 0x2d0   :  { %5107 = vmatpush1.bf16.msra.mxu0 %v6798_v43 }
 0x2d1   :  { %3842 = vmatpush1.bf16.msra.mxu1 %v6738_v39  ;;  %5108 = vmatprep.subr.bf16.mxu0 %v6803_v59 }
 0x2d2   :  { %3843 = vmatprep.subr.bf16.mxu1 %v6746_v27 }
 0x2d4   :  { %5109 = vmatpush1.bf16.msra.mxu0 %v6801_v49 }
 0x2d5   :  { %3844 = vmatpush1.bf16.msra.mxu1 %v6744_v62  ;;  %5110 = vmatprep.subr.bf16.mxu0 %v6806_v6 }
 0x2d6   :  { %3845 = vmatprep.subr.bf16.mxu1 %v6752_v28  ;;  %v6810_v28 = vld [vmem:[#allocation7 + $0x20] ss:$8 sps:$4 sm:$0xff]  }
 0x2d8   :  { %5111 = vmatpush1.bf16.msra.mxu0 %v6804_v58  ;;  %v6819_v58 = vld [vmem:[#allocation7 + $0xf0] ss:$8 sps:$4 sm:$0xff]  }
 0x2d9   :  { %3846 = vmatpush2.bf16.msra.mxu1 %v6750_v9  ;;  %5112 = vmatprep.subr.bf16.mxu0 %v6809_v46  ;;  %v6824_v46 = vld [vmem:[#allocation7 + $0xe4] ss:$8 sps:$4 sm:$0xff]  }
 0x2da   :  { %3847 = vmatprep.subr.bf16.mxu1 %v6758_v20 }
 0x2dc   :  { %5113 = vmatpush1.bf16.msra.mxu0 %v6807_v51 }
 0x2dd   :  { %3848 = vmatpush2.bf16.msra.mxu1 %v6756_v7  ;;  %5114 = vmatprep.subr.bf16.mxu0 %v6812_v32  ;;  %v6815_v7 = vld [vmem:[#allocation7 + $0x14] ss:$8 sps:$4 sm:$0xff]  }
 0x2de   :  { %3849 = vmatprep.subr.bf16.mxu1 %v6764_v10 }
 0x2e0   :  { %5115 = vmatpush1.bf16.msra.mxu0 %v6810_v28  ;;  %v6822_v28 = vld [vmem:[#allocation7 + $0xe0] ss:$8 sps:$4 sm:$0xff]  }
 0x2e1   :  { %3850 = vmatpush2.bf16.msra.mxu1 %v6762_v24  ;;  %5116 = vmatprep.subr.bf16.mxu0 %v6815_v7 }
 0x2e2   :  { %3851 = vmatprep.subr.bf16.mxu1 %v6770_v56 }
 0x2e5   :  { %3852 = vmatpush2.bf16.msra.mxu1 %v6768_v29 }
 0x2e6   :  { %3853 = vmatprep.subr.bf16.mxu1 %v6776_v22 }
 0x2e9   :  { %3854 = vmatpush2.bf16.msra.mxu1 %v6774_v42 }
 0x2ea   :  { %3855 = vmatprep.subr.bf16.mxu1 %v6782_v0 }
 0x2ed   :  { %3856 = vmatpush2.bf16.msra.mxu1 %v6780_v19 }
 0x2ee   :  { %3857 = vmatprep.subr.bf16.mxu1 %v6788_v33  ;;  %v6813_v33 = vld [vmem:[#allocation7 + $0x10] ss:$8 sps:$4 sm:$0xff]  }
 0x2ef   :  { %5117 = vmatpush1.bf16.msra.mxu0 %v6813_v33 }
 0x2f1   :  { %3858 = vmatpush2.bf16.msra.mxu1 %v6786_v13 }
 0x2f2   :  { %3859 = vmatprep.subr.bf16.mxu1 %v6794_v2  ;;  %v6818_v2 = vld [vmem:[#allocation7 + $0x4] ss:$8 sps:$4 sm:$0xff]  }
 0x2f3   :  { %5118 = vmatprep.subr.bf16.mxu0 %v6818_v2 }
 0x2f5   :  { %3860 = vmatpush2.bf16.msra.mxu1 %v6792_v41 }
 0x2f8   :  { %3862 = vmatmul.mubr.bf16.vlgmr.msra.gmra.mxu1 %v8894_v63  ;;  %v3568_v63 = vpop.f32.mrf.mxu0 }
 0x2f9   :  { %v3569_v42 = vadd.f32 %v3568_v63, %v2235_v26  ;;  %v6816_v26 = vld [vmem:[#allocation7] ss:$8 sps:$4 sm:$0xff]  }
 0x2fa   :  { %5119 = vmatpush1.bf16.msra.mxu0 %v6816_v26 }
 0x2fb   :  { %v3612_v14 = vadd.f32 %v3611_v55, %v3569_v42  ;;  %5120 = vmatprep.subr.bf16.mxu0 %v6821_v11  ;;  %v6830_v11 = vld [vmem:[#allocation7 + $0xc4] ss:$8 sps:$4 sm:$0xff]  }
 0x2fe   :  { %5121 = vmatpush2.bf16.msra.mxu0 %v6819_v58 }
 0x2ff   :  { %5122 = vmatprep.subr.bf16.mxu0 %v6824_v46 }
 0x302   :  { %5123 = vmatpush2.bf16.msra.mxu0 %v6822_v28 }
 0x30b   :  { %v3648_v5 = vpop.f32.mrf.mxu0 }
 0x30c   :  { %v3649_v8 = vadd.f32 %v3648_v5, %v3606_v18 }
 0x30d   :  { %v3650_v35 = vpop.f32.mrf.mxu0 }
 0x30e   :  { %v3651_v61 = vadd.f32 %v3650_v35, %v3608_v31 }
 0x30f   :  { %v3652_v4 = vpop.f32.mrf.mxu0 }
 0x310   :  { %v3653_v12 = vadd.f32 %v3652_v4, %v3610_v17 }
 0x311   :  { %v3654_v52 = vpop.f32.mrf.mxu0 }
 0x312   :  { %v8932_v54 = vadd.f32 %v3654_v52, %v3612_v14  ;;  %v6825_v14 = vld [vmem:[#allocation7 + $0xd0] ss:$8 sps:$4 sm:$0xff]  }
 0x337   :  { %v3691_v30 = vpop.f32.mrf.mxu1 }
 0x338   :  { %v8913_v3 = vadd.f32 %v3691_v30, %v3649_v8 }
 0x339   :  { %v3693_v57 = vpop.f32.mrf.mxu1 }
 0x33a   :  { %v3872_v39 = vand.u32 2147483647, %v8913_v3  ;;  %v3875_v27 = vand.u32 2139095040, %v8913_v3  ;;  %v8917_v62 = vadd.f32 %v3693_v57, %v3651_v61 }
 0x33b   :  { %v3695_v20 = vpop.f32.mrf.mxu1 }
 0x33c   :  { %v3876_v9 = vshrl.u32 %v3875_v27, 23  ;;  %v3879_v10 = vand.u32 8388607, %v3872_v39  ;;  %v3976_v24 = vand.u32 2147483647, %v8917_v62  ;;  %v3979_v56 = vand.u32 2139095040, %v8917_v62 }
 0x33d   :  { %v8923_v29 = vadd.f32 %v3695_v20, %v3653_v12 }
 0x33e   :  { %v6126_v22 = vadd.s32 4294967169, %v3876_v9  ;;  %v3980_v0 = vshrl.u32 %v3979_v56, 23  ;;  %v3983_v19 = vand.u32 8388607, %v3976_v24  ;;  %v3880_v41 = vor.u32 8388608, %v3879_v10 }
 0x33f   :  { %v4291_v36 = vand.u32 2139095040, %v8923_v29  ;;  %v6827_v56 = vld [vmem:[#allocation7 + $0xd4] ss:$8 sps:$4 sm:$0xff]  }
 0x340   :  { %v3882_v13 = vadd.s32 1, %v6126_v22  ;;  %v6130_v40 = vadd.s32 4294967169, %v3980_v0  ;;  %v3984_v37 = vor.u32 8388608, %v3983_v19  ;;  %v8928_v43 = vshll.u32 %v3880_v41, 8  ;;  %5124 = vmatprep.subr.bf16.mxu0 %v6827_v56 }
 0x341   :  { %v4292_v5 = vshrl.u32 %v4291_v36, 23  ;;  %5125 = vmatpush2.bf16.msra.mxu0 %v6825_v14  ;;  %v6834_v14 = vld [vmem:[#allocation7 + $0xa0] ss:$8 sps:$4 sm:$0xff]  }
 0x342   :  { %vm3883_vm0 = vcmp.gt.s32.totalorder %v3882_v13, 0  ;;  %v3986_v47 = vadd.s32 1, %v6130_v40  ;;  %v8930_v25 = vshll.u32 %v3984_v37, 8  ;;  %5126 = vmatprep.subr.bf16.mxu0 %v6830_v11  ;;  %v3697_v11 = vpop.f32.mrf.mxu1 }
 0x343   :  { %v3884_v44 = vsel %vm3883_vm0, %v3882_v13, 0  ;;  %v6142_v41 = vadd.s32 4294967169, %v4292_v5 }
 0x344   :  { %v3885_v63 = vshrl.u32 %v3884_v44, 5  ;;  %v3886_v21 = vand.u32 31, %v3884_v44  ;;  %vm3987_vm2 = vcmp.gt.s32.totalorder %v3986_v47, 0 }
 0x345   :  { %v3988_v32 = vsel %vm3987_vm2, %v3986_v47, 0  ;;  %v4298_v56 = vadd.s32 1, %v6142_v41 }
 0x346   :  { %v3887_v59 = vsub.s32 32, %v3886_v21  ;;  %v3889_v23 = vshll.u32 %v9825_v38, %v3886_v21  ;;  %v3892_v49 = vshll.u32 %v9826_v34, %v3886_v21  ;;  %v3895_v18 = vshll.u32 %v9827_v45, %v3886_v21 }
 0x347   :  { %v3898_v35 = vshll.u32 %v9828_v1, %v3886_v21  ;;  %v3901_v60 = vshll.u32 %v9829_v50, %v3886_v21  ;;  %vm3904_vm3 = vcmp.lt.s32.totalorder %v3885_v63, 1  ;;  %vm3905_vm1 = vcmp.lt.s32.totalorder %v3885_v63, 2 }
 0x348   :  { %v3890_v6 = vshrl.u32 %v9826_v34, %v3887_v59  ;;  %v3893_v31 = vshrl.u32 %v9827_v45, %v3887_v59  ;;  %v3896_v8 = vshrl.u32 %v9828_v1, %v3887_v59  ;;  %v3888_v55 = vshrl.u32 %v9825_v38, %v3887_v59 }
 0x349   :  { %v3899_v61 = vshrl.u32 %v9829_v50, %v3887_v59  ;;  %v3902_v4 = vshrl.u32 %v7147_v15, %v3887_v59  ;;  %vm3906_vm4 = vcmp.lt.s32.totalorder %v3885_v63, 3  ;;  %vm3907_vm5 = vcmp.lt.s32.totalorder %v3885_v63, 4 }
 0x34a   :  { %v3891_v17 = vor.u32 %v3890_v6, %v3889_v23  ;;  %v3894_v30 = vor.u32 %v3893_v31, %v3892_v49  ;;  %v3897_v51 = vor.u32 %v3896_v8, %v3895_v18  ;;  %v3990_v27 = vand.u32 31, %v3988_v32  ;;  %v6828_v8 = vld [vmem:[#allocation7 + $0xc0] ss:$8 sps:$4 sm:$0xff]  }
 0x34b   :  { %v3900_v57 = vor.u32 %v3899_v61, %v3898_v35  ;;  %v3903_v12 = vor.u32 %v3902_v4, %v3901_v60  ;;  %v8955_v36 = vshrl.u32 %v3988_v32, 5  ;;  %v6833_v4 = vld [vmem:[#allocation7 + $0xb4] ss:$8 sps:$4 sm:$0xff]   ;;  %5127 = vmatpush2.bf16.msra.mxu0 %v6828_v8  ;;  %vm4299_vm11 = vcmp.gt.s32.totalorder %v4298_v56, 0 }
 0x34c   :  { %v3908_v9 = vsel %vm3904_vm3, %v3888_v55, %v3891_v17  ;;  %v3909_v20 = vsel %vm3907_vm5, %v3897_v51, 2102212464  ;;  %v3912_v7 = vsel %vm3904_vm3, %v3891_v17, %v3894_v30  ;;  %v3916_v10 = vsel %vm3904_vm3, %v3894_v30, %v3897_v51  ;;  %5128 = vmatprep.subr.bf16.mxu0 %v6833_v4 }
 0x34d   :  { %v3910_v22 = vsel %vm3906_vm4, %v3894_v30, %v3909_v20  ;;  %v3913_v42 = vsel %vm3907_vm5, %v3900_v57, 920167782  ;;  %v3917_v0 = vsel %vm3907_vm5, %v3903_v12, 1326507024  ;;  %v3991_v19 = vsub.s32 32, %v3990_v27 }
 0x34e   :  { %v3911_v33 = vsel %vm3905_vm1, %v3908_v9, %v3910_v22  ;;  %v3914_v13 = vsel %vm3906_vm4, %v3897_v51, %v3913_v42  ;;  %v3918_v2 = vsel %vm3906_vm4, %v3900_v57, %v3917_v0  ;;  %v3993_v52 = vshll.u32 %v9825_v38, %v3990_v27  ;;  %v6831_v9 = vld [vmem:[#allocation7 + $0xb0] ss:$8 sps:$4 sm:$0xff]   ;;  %v6836_v22 = vld [vmem:[#allocation7 + $0xa4] ss:$8 sps:$4 sm:$0xff]  }
 0x34f   :  { %v3915_v40 = vsel %vm3905_vm1, %v3912_v7, %v3914_v13  ;;  %v3919_v37 = vsel %vm3905_vm1, %v3916_v10, %v3918_v2  ;;  %v3927_v63 = vmul.u32 %v8928_v43, %v3911_v33  ;;  %v3994_v5 = vshrl.u32 %v9826_v34, %v3991_v19  ;;  %5129 = vmatpush2.bf16.msra.mxu0 %v6831_v9 }
 0x350   :  { %v8959_v44 = vmul.u32.u64.low %v8928_v43, %v3919_v37  ;;  %v8960_v47 = vmul.u32.u64.high %v8928_v43, %v3919_v37, %v8959_v44  ;;  %v8963_v26 = vmul.u32.u64.low %v8928_v43, %v3915_v40  ;;  %v8964_v21 = vmul.u32.u64.high %v8928_v43, %v3915_v40, %v8963_v26  ;;  %5130 = vmatprep.subr.bf16.mxu0 %v6836_v22 }
 0x351   :  { %v3996_v59 = vshll.u32 %v9826_v34, %v3990_v27  ;;  %v3997_v23 = vshrl.u32 %v9827_v45, %v3991_v19  ;;  %v3999_v49 = vshll.u32 %v9827_v45, %v3990_v27  ;;  %v4000_v18 = vshrl.u32 %v9828_v1, %v3991_v19 }
 0x352   :  { %v4002_v35 = vshll.u32 %v9828_v1, %v3990_v27  ;;  %v4003_v60 = vshrl.u32 %v9829_v50, %v3991_v19  ;;  %v3995_v58 = vor.u32 %v3994_v5, %v3993_v52  ;;  %v4005_v31 = vshll.u32 %v9829_v50, %v3990_v27 }
 0x353   :  { %v3998_v6 = vor.u32 %v3997_v23, %v3996_v59  ;;  %v4006_v43 = vshrl.u32 %v7147_v15, %v3991_v19  ;;  %vm3929_vm7 = vc.u32 %v8960_v47, %v8963_v26  ;;  %v3930_v46 = vadd.s32 1, %v8964_v21  ;;  %5131 = vmatpush2.bf16.msra.mxu0 %v6834_v14 }
 0x354   :  { %v3992_v55 = vshrl.u32 %v9825_v38, %v3991_v19  ;;  %v4001_v61 = vor.u32 %v4000_v18, %v3999_v49  ;;  %v4004_v17 = vor.u32 %v4003_v60, %v4002_v35  ;;  %vm4008_vm8 = vcmp.lt.s32.totalorder %v8955_v36, 1 }
 0x355   :  { %v4007_v30 = vor.u32 %v4006_v43, %v4005_v31  ;;  %vm4009_vm9 = vcmp.lt.s32.totalorder %v8955_v36, 2  ;;  %v3931_v51 = vsel %vm3929_vm7, %v3930_v46, %v8964_v21  ;;  %vm4010_vm6 = vcmp.lt.s32.totalorder %v8955_v36, 3 }
 0x356   :  { %vm4011_vm10 = vcmp.lt.s32.totalorder %v8955_v36, 4  ;;  %v4016_v32 = vsel %vm4008_vm8, %v3995_v58, %v3998_v6  ;;  %v3932_v57 = vadd.s32 %v3931_v51, %v3927_v63  ;;  %v4020_v28 = vsel %vm4008_vm8, %v3998_v6, %v4001_v61  ;;  %v6839_v63 = vld [vmem:[#allocation7 + $0x94] ss:$8 sps:$4 sm:$0xff]   ;;  %v6837_v36 = vld [vmem:[#allocation7 + $0x90] ss:$8 sps:$4 sm:$0xff]  }
 0x357   :  { %v4013_v12 = vsel %vm4011_vm10, %v4001_v61, 2102212464  ;;  %v4017_v27 = vsel %vm4011_vm10, %v4004_v17, 920167782  ;;  %v4012_v20 = vsel %vm4008_vm8, %v3992_v55, %v3995_v58  ;;  %v4021_v10 = vsel %vm4011_vm10, %v4007_v30, 1326507024  ;;  %5132 = vmatprep.subr.bf16.mxu0 %v6839_v63 }
 0x358   :  { %v4018_v7 = vsel %vm4010_vm6, %v4001_v61, %v4017_v27  ;;  %v3933_v42 = vadd.s32 536870912, %v3932_v57  ;;  %v4014_v0 = vsel %vm4010_vm6, %v3998_v6, %v4013_v12  ;;  %v4022_v33 = vsel %vm4010_vm6, %v4004_v17, %v4021_v10  ;;  %v6842_v6 = vld [vmem:[#allocation7 + $0x84] ss:$8 sps:$4 sm:$0xff]   ;;  %5133 = vmatpush2.bf16.msra.mxu0 %v6837_v36 }
 0x359   :  { %v4019_v19 = vsel %vm4009_vm9, %v4016_v32, %v4018_v7  ;;  %v4023_v13 = vsel %vm4009_vm9, %v4020_v28, %v4022_v33  ;;  %v4015_v44 = vsel %vm4009_vm9, %v4012_v20, %v4014_v0  ;;  %v4300_v21 = vsel %vm4299_vm11, %v4298_v56, 0  ;;  %v6840_v32 = vld [vmem:[#allocation7 + $0x80] ss:$8 sps:$4 sm:$0xff]   ;;  %5134 = vmatprep.subr.bf16.mxu0 %v6842_v6 }
 0x35a   :  { %v8997_v2 = vmul.u32.u64.low %v8930_v25, %v4019_v19  ;;  %v8998_v40 = vmul.u32.u64.high %v8930_v25, %v4019_v19, %v8997_v2  ;;  %v9001_v41 = vshrl.u32 %v3933_v42, 30  ;;  %v4288_v59 = vand.u32 2147483647, %v8923_v29 }
 0x35b   :  { %v9004_v37 = vmul.u32.u64.low %v8930_v25, %v4023_v13  ;;  %v9005_v52 = vmul.u32.u64.high %v8930_v25, %v4023_v13, %v9004_v37  ;;  %v4302_v23 = vand.u32 31, %v4300_v21  ;;  %v9012_v49 = vadd.f32 %v3697_v11, %v8932_v54 }
 0x35c   :  { %v3935_v5 = vshll.u32 %v9001_v41, 30  ;;  %v4034_v18 = vadd.s32 1, %v8998_v40  ;;  %v4031_v35 = vmul.u32 %v8930_v25, %v4015_v44  ;;  %v4295_v54 = vand.u32 8388607, %v4288_v59  ;;  %5135 = vmatpush2.bf16.msra.mxu0 %v6840_v32 }
 0x35d   :  { %vm4033_vm12 = vc.u32 %v9005_v52, %v8997_v2  ;;  %v4303_v58 = vsub.s32 32, %v4302_v23  ;;  %v4395_v8 = vand.u32 2139095040, %v9012_v49  ;;  %v4305_v25 = vshll.u32 %v9825_v38, %v4302_v23 }
 0x35e   :  { %v4035_v60 = vsel %vm4033_vm12, %v4034_v18, %v8998_v40  ;;  %v9019_v31 = vsub.s32 %v3932_v57, %v3935_v5  ;;  %v4308_v55 = vshll.u32 %v9826_v34, %v4302_v23  ;;  %v4301_v17 = vshrl.u32 %v4300_v21, 5 }
 0x35f   :  { %v4036_v43 = vadd.s32 %v4035_v60, %v4031_v35  ;;  %v4306_v46 = vshrl.u32 %v9826_v34, %v4303_v58  ;;  %v4309_v61 = vshrl.u32 %v9827_v45, %v4303_v58  ;;  %v4311_v30 = vshll.u32 %v9827_v45, %v4302_v23 }
 0x360   :  { %v4312_v51 = vshrl.u32 %v9828_v1, %v4303_v58  ;;  %v4314_v27 = vshll.u32 %v9828_v1, %v4302_v23  ;;  %v4315_v28 = vshrl.u32 %v9829_v50, %v4303_v58  ;;  %v3938_v9 = vsub.s32 0, %v9019_v31 }
 0x361   :  { %v4037_v4 = vadd.s32 536870912, %v4036_v43  ;;  %v4307_v57 = vor.u32 %v4306_v46, %v4305_v25  ;;  %v4310_v12 = vor.u32 %v4309_v61, %v4308_v55  ;;  %v4318_v10 = vshrl.u32 %v7147_v15, %v4303_v58 }
 0x362   :  { %v4313_v7 = vor.u32 %v4312_v51, %v4311_v30  ;;  %v4296_v56 = vor.u32 8388608, %v4295_v54  ;;  %v4316_v22 = vor.u32 %v4315_v28, %v4314_v27  ;;  %v4317_v42 = vshll.u32 %v9829_v50, %v4302_v23 }
 0x363   :  { %v9033_v20 = vshrl.u32 %v4037_v4, 30  ;;  %v4396_v0 = vshrl.u32 %v4395_v8, 23  ;;  %vm4320_vm13 = vcmp.lt.s32.totalorder %v4301_v17, 1  ;;  %vm4323_vm14 = vcmp.lt.s32.totalorder %v4301_v17, 4 }
 0x364   :  { %v4319_v33 = vor.u32 %v4318_v10, %v4317_v42  ;;  %vm4322_vm15 = vcmp.lt.s32.totalorder %v4301_v17, 3  ;;  %v4328_v13 = vsel %vm4320_vm13, %v4307_v57, %v4310_v12  ;;  %v4329_v40 = vsel %vm4323_vm14, %v4316_v22, 920167782 }
 0x365   :  { %v4039_v19 = vshll.u32 %v9033_v20, 30  ;;  %v6127_v37 = vmin.u32 %v3938_v9, %v9019_v31  ;;  %vm4321_vm0 = vcmp.lt.s32.totalorder %v4301_v17, 2  ;;  %v4330_v14 = vsel %vm4322_vm15, %v4313_v7, %v4329_v40 }
 0x366   :  { %v4331_v21 = vsel %vm4321_vm0, %v4328_v13, %v4330_v14  ;;  %v4336_v11 = vshll.u32 %v4296_v56, 8  ;;  %v6146_v63 = vadd.s32 4294967169, %v4396_v0  ;;  %v4332_v5 = vsel %vm4320_vm13, %v4310_v12, %v4313_v7 }
 0x367   :  { %v9041_v44 = vsub.s32 %v4036_v43, %v4039_v19  ;;  %v4325_v23 = vsel %vm4323_vm14, %v4313_v7, 2102212464  ;;  %v4333_v18 = vsel %vm4323_vm14, %v4319_v33, 1326507024  ;;  %v3940_v60 = vclz %v6127_v37 }
 0x368   :  { %v9045_v35 = vmul.u32.u64.low %v4336_v11, %v4331_v21  ;;  %v9046_v36 = vmul.u32.u64.high %v4336_v11, %v4331_v21, %v9045_v35  ;;  %v4304_v6 = vshrl.u32 %v9825_v38, %v4303_v58  ;;  %v4334_v54 = vsel %vm4322_vm15, %v4316_v22, %v4333_v18 }
 0x369   :  { %v4042_v43 = vsub.s32 0, %v9041_v44  ;;  %v4335_v8 = vsel %vm4321_vm0, %v4332_v5, %v4334_v54  ;;  %v4402_v25 = vadd.s32 1, %v6146_v63  ;;  %v4326_v55 = vsel %vm4322_vm15, %v4310_v12, %v4325_v23 }
 0x36a   :  { %v4324_v46 = vsel %vm4320_vm13, %v4304_v6, %v4307_v57  ;;  %v9055_v61 = vmul.u32.u64.low %v4336_v11, %v4335_v8  ;;  %v9056_v4 = vmul.u32.u64.high %v4336_v11, %v4335_v8, %v9055_v61  ;;  %v6128_v30 = vadd.s32 4294967294, %v3940_v60 }
 0x36b   :  { %vm4403_vm2 = vcmp.gt.s32.totalorder %v4402_v25, 0  ;;  %v4392_v51 = vand.u32 2147483647, %v9012_v49  ;;  %v6131_v58 = vmin.u32 %v4042_v43, %v9041_v44  ;;  %v4327_v27 = vsel %vm4321_vm0, %v4324_v46, %v4326_v55 }
 0x36c   :  { %v4404_v32 = vsel %vm4403_vm2, %v4402_v25, 0  ;;  %v4346_v28 = vadd.s32 1, %v9046_v36  ;;  %vm4345_vm3 = vc.u32 %v9056_v4, %v9045_v35  ;;  %vm6129_vm1 = vcmp.lt.s32.totalorder %v6128_v30, 0 }
 0x36d   :  { %v4406_v9 = vand.u32 31, %v4404_v32  ;;  %v4343_v12 = vmul.u32 %v4336_v11, %v4327_v27  ;;  %v4044_v7 = vclz %v6131_v58  ;;  %v4399_v56 = vand.u32 8388607, %v4392_v51 }
 0x36e   :  { %v4347_v10 = vsel %vm4345_vm3, %v4346_v28, %v9046_v36  ;;  %v9067_v42 = vsel %vm6129_vm1, 0, %v6128_v30  ;;  %v4405_v11 = vshrl.u32 %v4404_v32, 5  ;;  %v3928_v61 = vadd.s32 %v8963_v26, %v8960_v47 }
 0x36f   :  { %v4407_v57 = vsub.s32 32, %v4406_v9  ;;  %v4348_v22 = vadd.s32 %v4347_v10, %v4343_v12  ;;  %v6132_v33 = vadd.s32 4294967294, %v4044_v7  ;;  %v4400_v13 = vor.u32 8388608, %v4399_v56 }
 0x370   :  { %v4409_v40 = vshll.u32 %v9825_v38, %v4406_v9  ;;  %v3948_v14 = vsub.s32 4294967266, %v9067_v42  ;;  %v4412_v63 = vshll.u32 %v9826_v34, %v4406_v9  ;;  %v4415_v23 = vshll.u32 %v9827_v45, %v4406_v9 }
 0x371   :  { %v4410_v17 = vshrl.u32 %v9826_v34, %v4407_v57  ;;  %v4349_v0 = vadd.s32 536870912, %v4348_v22  ;;  %v4413_v19 = vshrl.u32 %v9827_v45, %v4407_v57  ;;  %v4416_v37 = vshrl.u32 %v9828_v1, %v4407_v57 }
 0x372   :  { %v4418_v18 = vshll.u32 %v9828_v1, %v4406_v9  ;;  %v4419_v36 = vshrl.u32 %v9829_v50, %v4407_v57  ;;  %v4421_v54 = vshll.u32 %v9829_v50, %v4406_v9  ;;  %v4422_v43 = vshrl.u32 %v7147_v15, %v4407_v57 }
 0x373   :  { %v9074_v21 = vshrl.u32 %v4349_v0, 30  ;;  %v4411_v5 = vor.u32 %v4410_v17, %v4409_v40  ;;  %v4414_v6 = vor.u32 %v4413_v19, %v4412_v63  ;;  %vm6133_vm4 = vcmp.lt.s32.totalorder %v6132_v33, 0 }
 0x374   :  { %v4417_v8 = vor.u32 %v4416_v37, %v4415_v23  ;;  %v4420_v25 = vor.u32 %v4419_v36, %v4418_v18  ;;  %v4423_v55 = vor.u32 %v4422_v43, %v4421_v54  ;;  %v3949_v30 = vadd.s32 127, %v3948_v14 }
 0x375   :  { %v4351_v60 = vshll.u32 %v9074_v21, 30  ;;  %vm4424_vm5 = vcmp.lt.s32.totalorder %v4405_v11, 1  ;;  %v4440_v32 = vshll.u32 %v4400_v13, 8  ;;  %v4047_v58 = vsel %vm6133_vm4, 0, %v6132_v33 }
 0x376   :  { %vm4427_vm7 = vcmp.lt.s32.totalorder %v4405_v11, 4  ;;  %v4432_v28 = vsel %vm4424_vm5, %v4411_v5, %v4414_v6  ;;  %vm4426_vm8 = vcmp.lt.s32.totalorder %v4405_v11, 3  ;;  %v4436_v12 = vsel %vm4424_vm5, %v4414_v6, %v4417_v8 }
 0x377   :  { %v9083_v46 = vsub.s32 %v4348_v22, %v4351_v60  ;;  %v4433_v9 = vsel %vm4427_vm7, %v4420_v25, 920167782  ;;  %v4437_v7 = vsel %vm4427_vm7, %v4423_v55, 1326507024  ;;  %vm4425_vm9 = vcmp.lt.s32.totalorder %v4405_v11, 2 }
 0x378   :  { %v4429_v56 = vsel %vm4427_vm7, %v4417_v8, 2102212464  ;;  %v4434_v47 = vsel %vm4426_vm8, %v4417_v8, %v4433_v9  ;;  %v3944_v26 = vsub.s32 32, %v9067_v42  ;;  %v4408_v22 = vshrl.u32 %v9825_v38, %v4407_v57 }
 0x379   :  { %v4354_v27 = vsub.s32 0, %v9083_v46  ;;  %v4435_v17 = vsel %vm4425_vm9, %v4432_v28, %v4434_v47  ;;  %v4438_v0 = vsel %vm4426_vm8, %v4420_v25, %v4437_v7  ;;  %v3950_v19 = vshll.u32 %v3949_v30, 23 }
 0x37a   :  { %v4052_v33 = vsub.s32 4294967266, %v4047_v58  ;;  %v4439_v40 = vsel %vm4425_vm9, %v4436_v12, %v4438_v0  ;;  %v4428_v37 = vsel %vm4424_vm5, %v4408_v22, %v4411_v5  ;;  %v4430_v14 = vsel %vm4426_vm8, %v4414_v6, %v4429_v56 }
 0x37b   :  { %v6143_v10 = vmin.u32 %v4354_v27, %v9083_v46  ;;  %v9099_v63 = vmul.u32.u64.low %v4440_v32, %v4439_v40  ;;  %v9100_v23 = vmul.u32.u64.high %v4440_v32, %v4439_v40, %v9099_v63  ;;  %v3946_v57 = vshrl.u32 %v3928_v61, %v3944_v26 }
 0x37c   :  { %v9102_v36 = vmul.u32.u64.low %v4440_v32, %v4435_v17  ;;  %v9103_v60 = vmul.u32.u64.high %v4440_v32, %v4435_v17, %v9102_v36  ;;  %v3945_v54 = vshll.u32 %v9019_v31, %v9067_v42  ;;  %v4053_v43 = vadd.s32 127, %v4052_v33 }
 0x37d   :  { %v4356_v13 = vclz %v6143_v10  ;;  %v4431_v8 = vsel %vm4425_vm9, %v4428_v37, %v4430_v14  ;;  %v3951_v25 = vor.u32 4788187, %v3950_v19  ;;  %v4344_v5 = vadd.s32 %v9045_v35, %v9056_v4 }
 0x37e   :  { %vm4449_vm10 = vc.u32 %v9100_v23, %v9102_v36  ;;  %v4048_v55 = vsub.s32 32, %v4047_v58  ;;  %v4450_v61 = vadd.s32 1, %v9103_v60  ;;  %v3947_v28 = vor.u32 %v3946_v57, %v3945_v54 }
 0x37f   :  { %v6144_v18 = vadd.s32 4294967294, %v4356_v13  ;;  %v4032_v31 = vadd.s32 %v8997_v2, %v9005_v52  ;;  %v4447_v42 = vmul.u32 %v4440_v32, %v4431_v8  ;;  %v4054_v11 = vshll.u32 %v4053_v43, 23 }
 0x380   :  { %v4451_v7 = vsel %vm4449_vm10, %v4450_v61, %v9103_v60  ;;  %v3952_v4 = vand.u32 2147483647, %v3951_v25  ;;  %v3954_v26 = vcvt.s32.f32 %v3947_v28  ;;  %v4049_v17 = vshll.u32 %v9041_v44, %v4047_v58 }
 0x381   :  { %vm6145_vm6 = vcmp.lt.s32.totalorder %v6144_v18, 0  ;;  %v4452_v35 = vadd.s32 %v4451_v7, %v4447_v42  ;;  %v4050_v10 = vshrl.u32 %v4032_v31, %v4048_v55  ;;  %v4055_v0 = vor.u32 4788187, %v4054_v11 }
 0x382   :  { %v4359_v6 = vsel %vm6145_vm6, 0, %v6144_v18  ;;  %v3955_v52 = vmul.f32 %v3954_v26, %v3952_v4  ;;  %vm3874_vm11 = vcmp.lt.s32.totalorder %v8913_v3, 0  ;;  %vm9127_vm12 = vcmp.le.f32.partialorder %v3872_v39, 0.7853982 }
 0x383   :  { %v4360_v30 = vsub.s32 32, %v4359_v6  ;;  %v4364_v27 = vsub.s32 4294967266, %v4359_v6  ;;  %v4361_v56 = vshll.u32 %v9083_v46, %v4359_v6  ;;  %v4453_v22 = vadd.s32 536870912, %v4452_v35 }
 0x384   :  { %v4051_v32 = vor.u32 %v4050_v10, %v4049_v17  ;;  %v4056_v37 = vand.u32 2147483647, %v4055_v0  ;;  %v3956_v18 = vxor.u32 2147483648, %v3955_v52  ;;  %vm4290_vm13 = vcmp.lt.s32.totalorder %v8923_v29, 0  ;;  %v6845_v0 = vld [vmem:[#allocation7 + $0x174] ss:$8 sps:$4 sm:$0xff]  }
 0x385   :  { %v4362_v9 = vshrl.u32 %v4344_v5, %v4360_v30  ;;  %v4365_v12 = vadd.s32 127, %v4364_v27  ;;  %v9119_v2 = vshrl.u32 %v4453_v22, 30  ;;  %vm3978_vm14 = vcmp.lt.s32.totalorder %v8917_v62, 0  ;;  %v3734_v27 = vpop.f32.mrf.mxu0  ;;  %5147 = vmatprep.subr.bf16.mxu1 %v6845_v0 }
 0x386   :  { %v4058_v46 = vcvt.s32.f32 %v4051_v32  ;;  %v3957_v58 = vsel %vm3874_vm11, %v3956_v18, %v3955_v52  ;;  %vm9142_vm0 = vcmp.le.f32.partialorder %v4288_v59, 0.7853982  ;;  %v4448_v42 = vadd.s32 %v9102_v36, %v9100_v23  ;;  %v9882_v18 = vld [vmem:[#allocation21_spill] sm:$0xff] }
 0x387   :  { %v4366_v47 = vshll.u32 %v4365_v12, 23  ;;  %v4363_v19 = vor.u32 %v4362_v9, %v4361_v56  ;;  %v4455_v40 = vshll.u32 %v9119_v2, 30  ;;  %v3960_v6 = vsel %vm9127_vm12, %v8913_v3, %v3957_v58  ;;  %v3736_v56 = vpop.f32.mrf.mxu0  ;;  %v6846_v58 = vld [vmem:[#allocation7 + $0x160] ss:$8 sps:$4 sm:$0xff]  }
 0x388   :  { %v4059_v54 = vmul.f32 %v4058_v46, %v4056_v37  ;;  %6971 = vcosq.f32 %v3960_v6  ;;  %v3958_v12 = vsub.s32 4, %v9001_v41  ;;  %vm9154_vm2 = vcmp.le.f32.partialorder %v3976_v24, 0.7853982 }
 0x389   :  { %v4367_v33 = vor.u32 4788187, %v4366_v47  ;;  %v4370_v14 = vcvt.s32.f32 %v4363_v19  ;;  %v4456_v63 = vsub.s32 %v4452_v35, %v4455_v40  ;;  %6973 = vsinq.f32 %v3960_v6  ;;  %v3738_v17 = vpop.f32.mrf.mxu0  ;;  %v3777_v19 = vpop.f32.mrf.mxu1  ;;  %v9881_v40 = vld [vmem:[#allocation17_spill] sm:$0xff] }
 0x38a   :  { %v4060_v5 = vxor.u32 2147483648, %v4059_v54  ;;  %v4374_v23 = vsub.s32 4, %v9074_v21  ;;  %v4062_v24 = vsub.s32 4, %v9033_v20  ;;  %v3959_v26 = vsel %vm3874_vm11, %v3958_v12, %v9001_v41  ;;  %v6849_v12 = vld [vmem:[#allocation7 + $0x150] ss:$8 sps:$4 sm:$0xff]  }
 0x38b   :  { %v4368_v13 = vand.u32 2147483647, %v4367_v33  ;;  %v4458_v57 = vsub.s32 0, %v4456_v63  ;;  %v6843_v33 = vld [vmem:[#allocation7 + $0x170] ss:$8 sps:$4 sm:$0xff]   ;;  %v2239_v37 = vrot.slane %v8907_v48, %v9881_v40  ;;  %v9178_v46 = vrot.slane %v8907_v48, %v9882_v18 }
 0x38c   :  { %v4061_v39 = vsel %vm3978_vm14, %v4060_v5, %v4059_v54  ;;  %v4375_v52 = vsel %vm4290_vm13, %v4374_v23, %v9074_v21  ;;  %v4063_v41 = vsel %vm3978_vm14, %v4062_v24, %v9033_v20  ;;  %5148 = vmatpush1.bf16.msra.mxu1 %v6843_v33  ;;  %v9180_v21 = vpop.f32.mrf.mxu0  ;;  %v3779_v54 = vpop.f32.mrf.mxu1  ;;  %vm4394_vm3 = vcmp.lt.s32.totalorder %v9012_v49, 0 }
 0x38d   :  { %v4371_v60 = vmul.f32 %v4370_v14, %v4368_v13  ;;  %v6147_v44 = vmin.u32 %v4458_v57, %v4456_v63  ;;  %v4064_v7 = vsel %vm9154_vm2, %v8917_v62, %v4061_v39  ;;  %v3961_v14 = vsel %vm9127_vm12, 0, %v3959_v26 }
 0x38e   :  { %v4377_v57 = vsel %vm9142_vm0, 0, %v4375_v52  ;;  %v3735_v20 = vadd.f32 %v3734_v27, %v2239_v37  ;;  %v4065_v5 = vsel %vm9154_vm2, 0, %v4063_v41  ;;  %v3820_v6 = vpop.f32.mrf.mxu0  ;;  %vm9190_vm1 = vcmp.le.f32.partialorder %v4392_v51, 0.7853982  ;;  %v6851_v27 = vld [vmem:[#allocation7 + $0x154] ss:$8 sps:$4 sm:$0xff]  }
 0x38f   :  { %v4372_v43 = vxor.u32 2147483648, %v4371_v60  ;;  %v4460_v8 = vclz %v6147_v44  ;;  %v4478_v44 = vsub.s32 4, %v9119_v2  ;;  %v3737_v61 = vadd.f32 %v3736_v56, %v9178_v46  ;;  %v6852_v52 = vld [vmem:[#allocation7 + $0x140] ss:$8 sps:$4 sm:$0xff]  }
 0x390   :  { %v3778_v51 = vadd.f32 %v3777_v19, %v3735_v20  ;;  %vm3964_vm4 = vweird.f32 %v8913_v3  ;;  %vm4068_vm6 = vweird.f32 %v8917_v62 }
 0x391   :  { %v6148_v55 = vadd.s32 4294967294, %v4460_v8  ;;  %v4373_v30 = vsel %vm4290_vm13, %v4372_v43, %v4371_v60  ;;  %v6848_v60 = vld [vmem:[#allocation7 + $0x164] ss:$8 sps:$4 sm:$0xff]   ;;  %v3965_v8 = vadd.s32 3, %v3961_v14 }
 0x392   :  { %v4376_v31 = vsel %vm9142_vm0, %v8923_v29, %v4373_v30  ;;  %5149 = vmatprep.subr.bf16.mxu1 %v6848_v60  ;;  %v3821_v26 = vadd.f32 %v3820_v6, %v3778_v51  ;;  %v6855_v60 = vld [vmem:[#allocation7 + $0x130] ss:$8 sps:$4 sm:$0xff]   ;;  %vm4380_vm0 = vweird.f32 %v8923_v29 }
 0x393   :  { %vm6149_vm15 = vcmp.lt.s32.totalorder %v6148_v55, 0  ;;  %6975 = vcosq.f32 %v4376_v31  ;;  %5150 = vmatpush1.bf16.msra.mxu1 %v6846_v58  ;;  %v6860_v58 = vld [vmem:[#allocation7 + $0x124] ss:$8 sps:$4 sm:$0xff]  }
 0x394   :  { %v4463_v28 = vsel %vm6149_vm15, 0, %v6148_v55  ;;  %6977 = vsinq.f32 %v4376_v31  ;;  %v4381_v55 = vadd.s32 3, %v4377_v57  ;;  %v3739_v31 = vadd.f32 %v3738_v17, %v2239_v37  ;;  %5151 = vmatprep.subr.bf16.mxu1 %v6851_v27  ;;  %v6857_v37 = vld [vmem:[#allocation7 + $0x134] ss:$8 sps:$4 sm:$0xff]  }
 0x395   :  { %v4464_v11 = vsub.s32 32, %v4463_v28  ;;  %v4468_v9 = vsub.s32 4294967266, %v4463_v28  ;;  %v4465_v35 = vshll.u32 %v4456_v63, %v4463_v28  ;;  %6979 = vcosq.f32 %v4064_v7  ;;  %v6972_v43 = vpop.eup %6971 }
 0x396   :  { %6981 = vsinq.f32 %v4064_v7  ;;  %v6974_v48 = vpop.eup %6973  ;;  %v3966_v7 = vand.u32 3, %v3965_v8  ;;  %v3972_v56 = vxor.u32 2147483648, %v6972_v43  ;;  %v4382_v24 = vand.u32 3, %v4381_v55 }
 0x397   :  { %v4466_v4 = vshrl.u32 %v4448_v42, %v4464_v11  ;;  %v4469_v10 = vadd.s32 127, %v4468_v9  ;;  %v3781_v42 = vpop.f32.mrf.mxu1  ;;  %v4069_v11 = vadd.s32 3, %v4065_v5  ;;  %v4479_v9 = vsel %vm4394_vm3, %v4478_v44, %v9119_v2  ;;  %5152 = vmatpush1.bf16.msra.mxu1 %v6849_v12  ;;  %v6854_v2 = vld [vmem:[#allocation7 + $0x144] ss:$8 sps:$4 sm:$0xff]  }
 0x398   :  { %v3782_v17 = vadd.f32 %v3781_v42, %v3739_v31  ;;  %vm3968_vm5 = vcmp.eq.s32.totalorder %v3966_v7, 0  ;;  %vm3971_vm7 = vcmp.eq.s32.totalorder %v3966_v7, 2  ;;  %5153 = vmatprep.subr.bf16.mxu1 %v6854_v2  ;;  %vm3967_vm8 = vcmp.lt.s32.totalorder %v3966_v7, 2 }
 0x399   :  { %v4467_v36 = vor.u32 %v4466_v4, %v4465_v35  ;;  %v4470_v47 = vshll.u32 %v4469_v10, 23  ;;  %v3822_v35 = vpop.f32.mrf.mxu0  ;;  %v3969_v10 = vxor.u32 2147483648, %v6974_v48  ;;  %v9201_v0 = vpop.f32.mrf.mxu1  ;;  %v4070_v19 = vand.u32 3, %v4069_v11  ;;  %v6863_v11 = vld [vmem:[#allocation7 + $0x114] ss:$8 sps:$4 sm:$0xff]  }
 0x39a   :  { %vm4387_vm9 = vcmp.eq.s32.totalorder %v4382_v24, 2  ;;  %vm4384_vm11 = vcmp.eq.s32.totalorder %v4382_v24, 0  ;;  %vm4383_vm13 = vcmp.lt.s32.totalorder %v4382_v24, 2  ;;  %vm4484_vm15 = vweird.f32 %v9012_v49 }
 0x39b   :  { %v4471_v22 = vor.u32 4788187, %v4470_v47  ;;  %v4474_v13 = vcvt.s32.f32 %v4467_v36  ;;  %v3780_v36 = vadd.f32 %v3779_v54, %v3737_v61  ;;  %v4481_v47 = vsel %vm9190_vm1, 0, %v4479_v9  ;;  %v3824_v40 = vpop.f32.mrf.mxu0  ;;  %5154 = vmatpush1.bf16.msra.mxu1 %v6852_v52 }
 0x39c   :  { %v4485_v14 = vadd.s32 3, %v4481_v47  ;;  %v3970_v41 = vsel %vm3968_vm5, %v6972_v43, %v3969_v10  ;;  %5155 = vmatprep.subr.bf16.mxu1 %v6857_v37  ;;  %vm4072_vm10 = vcmp.eq.s32.totalorder %v4070_v19, 0  ;;  %v3825_v20 = vadd.f32 %v3824_v40, %v3782_v17  ;;  %v6864_v37 = vld [vmem:[#allocation7 + $0x100] ss:$8 sps:$4 sm:$0xff]  }
 0x39d   :  { %v4472_v32 = vand.u32 2147483647, %v4471_v22  ;;  %vm4075_vm12 = vcmp.eq.s32.totalorder %v4070_v19, 2  ;;  %vm4071_vm14 = vcmp.lt.s32.totalorder %v4070_v19, 2 }
 0x39e   :  { %v4486_v55 = vand.u32 3, %v4485_v14 }
 0x39f   :  { %v4475_v63 = vmul.f32 %v4474_v13, %v4472_v32  ;;  %v3823_v13 = vadd.f32 %v3822_v35, %v3780_v36  ;;  %5156 = vmatpush1.bf16.msra.mxu1 %v6855_v60 }
 0x3a0   :  { %v6976_v59 = vpop.eup %6975  ;;  %5157 = vmatprep.subr.bf16.mxu1 %v6860_v58  ;;  %vm4491_vm2 = vcmp.eq.s32.totalorder %v4486_v55, 2  ;;  %v6869_v58 = vld [vmem:[#allocation7 + $0x1f4] ss:$8 sps:$4 sm:$0xff]  }
 0x3a1   :  { %v4476_v25 = vxor.u32 2147483648, %v4475_v63  ;;  %v6978_v4 = vpop.eup %6977  ;;  %v4388_v33 = vxor.u32 2147483648, %v6976_v59 }
 0x3a2   :  { %v6980_v23 = vpop.eup %6979  ;;  %v4385_v32 = vxor.u32 2147483648, %v6978_v4 }
 0x3a3   :  { %v4477_v39 = vsel %vm4394_vm3, %v4476_v25, %v4475_v63  ;;  %v6982_v22 = vpop.eup %6981  ;;  %v3973_v63 = vsel %vm3971_vm7, %v3972_v56, %v6974_v48  ;;  %v4076_v54 = vxor.u32 2147483648, %v6980_v23  ;;  %v4389_v8 = vsel %vm4387_vm9, %v4388_v33, %v6978_v4 }
 0x3a4   :  { %v4480_v28 = vsel %vm9190_vm1, %v9012_v49, %v4477_v39  ;;  %v4073_v57 = vxor.u32 2147483648, %v6982_v22  ;;  %v4386_v5 = vsel %vm4384_vm11, %v6976_v59, %v4385_v32  ;;  %v3974_v30 = vsel %vm3967_vm8, %v3970_v41, %v3973_v63  ;;  %v6858_v39 = vld [vmem:[#allocation7 + $0x120] ss:$8 sps:$4 sm:$0xff]  }
 0x3a5   :  { %6983 = vcosq.f32 %v4480_v28  ;;  %v4077_v27 = vsel %vm4075_vm12, %v4076_v54, %v6982_v22  ;;  %v4390_v9 = vsel %vm4383_vm13, %v4386_v5, %v4389_v8  ;;  %v3975_v10 = vsel %vm3964_vm4, nan, %v3974_v30  ;;  %5158 = vmatpush1.bf16.msra.mxu1 %v6858_v39  ;;  %v6866_v22 = vld [vmem:[#allocation7 + $0x104] ss:$8 sps:$4 sm:$0xff]   ;;  %v6867_v30 = vld [vmem:[#allocation7 + $0x1f0] ss:$8 sps:$4 sm:$0xff]  }
 0x3a6   :  { %6985 = vsinq.f32 %v4480_v28  ;;  %v4074_v61 = vsel %vm4072_vm10, %v6980_v23, %v4073_v57  ;;  %v6861_v23 = vld [vmem:[#allocation7 + $0x110] ss:$8 sps:$4 sm:$0xff]   ;;  %v4391_v24 = vsel %vm4380_vm0, nan, %v4390_v9  ;;  %5159 = vmatprep.subr.bf16.mxu1 %v6863_v11  ;;  %vm4488_vm3 = vcmp.eq.s32.totalorder %v4486_v55, 0 }
 0x3a7   :  { %v4078_v4 = vsel %vm4071_vm14, %v4074_v61, %v4077_v27  ;;  %vm4487_vm4 = vcmp.lt.s32.totalorder %v4486_v55, 2  ;;  %v4704_v41 = vpack.c.bf16 %v4391_v24, %v3975_v10 }
 0x3a8   :  { %v4079_v3 = vsel %vm4068_vm6, nan, %v4078_v4 }
 0x3a9   :  { %5160 = vmatpush1.bf16.msra.mxu1 %v6861_v23 }
 0x3aa   :  { %5161 = vmatprep.subr.bf16.mxu1 %v6866_v22 }
 0x3ad   :  { %5162 = vmatpush1.bf16.msra.mxu1 %v6864_v37  ;;  %v6873_v37 = vld [vmem:[#allocation7 + $0x1d0] ss:$8 sps:$4 sm:$0xff]  }
 0x3ae   :  { %5163 = vmatprep.subr.bf16.mxu1 %v6869_v58  ;;  %v6878_v58 = vld [vmem:[#allocation7 + $0x1c4] ss:$8 sps:$4 sm:$0xff]  }
 0x3b1   :  { %5164 = vmatpush2.bf16.msra.mxu1 %v6867_v30 }
 0x3b2   :  { %v6984_v35 = vpop.eup %6983 }
 0x3b3   :  { %v6986_v36 = vpop.eup %6985  ;;  %v4492_v47 = vxor.u32 2147483648, %v6984_v35 }
 0x3b4   :  { %v4489_v17 = vxor.u32 2147483648, %v6986_v36 }
 0x3b5   :  { %v4493_v52 = vsel %vm4491_vm2, %v4492_v47, %v6986_v36 }
 0x3b6   :  { %v4490_v32 = vsel %vm4488_vm3, %v6984_v35, %v4489_v17 }
 0x3b7   :  { %v4494_v14 = vsel %vm4487_vm4, %v4490_v32, %v4493_v52  ;;  %v9258_v32 = vadd.f32 %v9180_v21, %v9178_v46 }
 0x3b8   :  { %v3863_v18 = vpop.f32.mrf.mxu1  ;;  %v4495_v60 = vsel %vm4484_vm15, nan, %v4494_v14 }
 0x3b9   :  { %v9204_v44 = vadd.f32 %v3863_v18, %v3821_v26  ;;  %v4705_v8 = vpack.c.bf16 %v4495_v60, %v4079_v3 }
 0x3ba   :  { %v3865_v25 = vpop.f32.mrf.mxu1 }
 0x3bb   :  { %v4080_v43 = vand.u32 2147483647, %v9204_v44  ;;  %v4083_v6 = vand.u32 2139095040, %v9204_v44  ;;  %v9209_v48 = vadd.f32 %v3865_v25, %v3823_v13  ;;  %5136 = vmatprep.mubr.bf16.mxu0 %v4705_v8 }
 0x3bc   :  { %v3867_v42 = vpop.f32.mrf.mxu1  ;;  %5137 = vmatmul.mubr.bf16.vlgmr.msra.gmra.mxu0 %v4704_v41 }
 0x3bd   :  { %v4084_v28 = vshrl.u32 %v4083_v6, 23  ;;  %v4087_v31 = vand.u32 8388607, %v4080_v43  ;;  %v4184_v12 = vand.u32 2147483647, %v9209_v48  ;;  %v4187_v59 = vand.u32 2139095040, %v9209_v48 }
 0x3be   :  { %v9216_v51 = vadd.f32 %v3867_v42, %v3825_v20 }
 0x3bf   :  { %v6134_v7 = vadd.s32 4294967169, %v4084_v28  ;;  %v4188_v56 = vshrl.u32 %v4187_v59, 23  ;;  %v4088_v26 = vor.u32 8388608, %v4087_v31  ;;  %v9224_v29 = vand.u32 8388607, %v4184_v12 }
 0x3c0   :  { %v4499_v33 = vand.u32 2139095040, %v9216_v51  ;;  %v6872_v28 = vld [vmem:[#allocation7 + $0x1e4] ss:$8 sps:$4 sm:$0xff]  }
 0x3c1   :  { %v4090_v2 = vadd.s32 1, %v6134_v7  ;;  %v6138_v19 = vadd.s32 4294967169, %v4188_v56  ;;  %v9232_v62 = vshll.u32 %v4088_v26, 8  ;;  %v4192_v57 = vor.u32 8388608, %v9224_v29  ;;  %v6870_v56 = vld [vmem:[#allocation7 + $0x1e0] ss:$8 sps:$4 sm:$0xff]   ;;  %5165 = vmatprep.subr.bf16.mxu1 %v6872_v28 }
 0x3c2   :  { %v4500_v54 = vshrl.u32 %v4499_v33, 23  ;;  %v6875_v26 = vld [vmem:[#allocation7 + $0x1d4] ss:$8 sps:$4 sm:$0xff]   ;;  %5166 = vmatpush2.bf16.msra.mxu1 %v6870_v56 }
 0x3c3   :  { %vm4091_vm1 = vcmp.gt.s32.totalorder %v4090_v2, 0  ;;  %v4194_v40 = vadd.s32 1, %v6138_v19  ;;  %5167 = vmatprep.subr.bf16.mxu1 %v6875_v26  ;;  %v9272_v8 = vshll.u32 %v4192_v57, 8  ;;  %v6876_v57 = vld [vmem:[#allocation7 + $0x1c0] ss:$8 sps:$4 sm:$0xff]  }
 0x3c4   :  { %v4092_v13 = vsel %vm4091_vm1, %v4090_v2, 0 }
 0x3c5   :  { %v4093_v63 = vshrl.u32 %v4092_v13, 5  ;;  %v4094_v18 = vand.u32 31, %v4092_v13  ;;  %vm4195_vm5 = vcmp.gt.s32.totalorder %v4194_v40, 0 }
 0x3c6   :  { %v4196_v10 = vsel %vm4195_vm5, %v4194_v40, 0  ;;  %5168 = vmatpush2.bf16.msra.mxu1 %v6873_v37 }
 0x3c7   :  { %v4095_v25 = vsub.s32 32, %v4094_v18  ;;  %v4097_v20 = vshll.u32 %v9825_v38, %v4094_v18  ;;  %v4100_v5 = vshll.u32 %v9826_v34, %v4094_v18  ;;  %v4103_v6 = vshll.u32 %v9827_v45, %v4094_v18  ;;  %5169 = vmatprep.subr.bf16.mxu1 %v6878_v58  ;;  %v6887_v58 = vld [vmem:[#allocation7 + $0x194] ss:$8 sps:$4 sm:$0xff]  }
 0x3c8   :  { %v4106_v55 = vshll.u32 %v9828_v1, %v4094_v18  ;;  %v4109_v49 = vshll.u32 %v9829_v50, %v4094_v18  ;;  %vm4112_vm7 = vcmp.lt.s32.totalorder %v4093_v63, 1  ;;  %vm4113_vm8 = vcmp.lt.s32.totalorder %v4093_v63, 2 }
 0x3c9   :  { %v4098_v39 = vshrl.u32 %v9826_v34, %v4095_v25  ;;  %v4101_v61 = vshrl.u32 %v9827_v45, %v4095_v25  ;;  %v4104_v27 = vshrl.u32 %v9828_v1, %v4095_v25  ;;  %v4096_v31 = vshrl.u32 %v9825_v38, %v4095_v25 }
 0x3ca   :  { %v4107_v42 = vshrl.u32 %v9829_v50, %v4095_v25  ;;  %v4110_v11 = vshrl.u32 %v7147_v15, %v4095_v25  ;;  %vm4114_vm9 = vcmp.lt.s32.totalorder %v4093_v63, 3  ;;  %vm4115_vm6 = vcmp.lt.s32.totalorder %v4093_v63, 4  ;;  %5170 = vmatpush2.bf16.msra.mxu1 %v6876_v57 }
 0x3cb   :  { %v4099_v9 = vor.u32 %v4098_v39, %v4097_v20  ;;  %v4102_v59 = vor.u32 %v4101_v61, %v4100_v5  ;;  %v4105_v7 = vor.u32 %v4104_v27, %v4103_v6  ;;  %v9251_v19 = vshrl.u32 %v4196_v10, 5  ;;  %v6881_v61 = vld [vmem:[#allocation7 + $0x1b4] ss:$8 sps:$4 sm:$0xff]  }
 0x3cc   :  { %v4108_v35 = vor.u32 %v4107_v42, %v4106_v55  ;;  %v4111_v4 = vor.u32 %v4110_v11, %v4109_v49  ;;  %v4198_v52 = vand.u32 31, %v4196_v10  ;;  %v6150_v63 = vadd.s32 4294967169, %v4500_v54  ;;  %v6879_v10 = vld [vmem:[#allocation7 + $0x1b0] ss:$8 sps:$4 sm:$0xff]   ;;  %5171 = vmatprep.subr.bf16.mxu1 %v6881_v61 }
 0x3cd   :  { %v4116_v23 = vsel %vm4112_vm7, %v4096_v31, %v4099_v9  ;;  %v4117_v36 = vsel %vm4115_vm6, %v4105_v7, 2102212464  ;;  %v4120_v47 = vsel %vm4112_vm7, %v4099_v9, %v4102_v59  ;;  %v4124_v24 = vsel %vm4112_vm7, %v4102_v59, %v4105_v7 }
 0x3ce   :  { %v4118_v2 = vsel %vm4114_vm9, %v4102_v59, %v4117_v36  ;;  %v4121_v22 = vsel %vm4115_vm6, %v4108_v35, 920167782  ;;  %v4125_v17 = vsel %vm4115_vm6, %v4111_v4, 1326507024  ;;  %v4199_v21 = vsub.s32 32, %v4198_v52  ;;  %5172 = vmatpush2.bf16.msra.mxu1 %v6879_v10  ;;  %v3869_v10 = vpop.f32.mrf.mxu1 }
 0x3cf   :  { %v4119_v29 = vsel %vm4113_vm8, %v4116_v23, %v4118_v2  ;;  %v4122_v33 = vsel %vm4114_vm9, %v4105_v7, %v4121_v22  ;;  %v4126_v3 = vsel %vm4114_vm9, %v4108_v35, %v4125_v17  ;;  %v4201_v25 = vshll.u32 %v9825_v38, %v4198_v52 }
 0x3d0   :  { %v4123_v13 = vsel %vm4113_vm8, %v4120_v47, %v4122_v33  ;;  %v4127_v40 = vsel %vm4113_vm8, %v4124_v24, %v4126_v3  ;;  %v4135_v46 = vmul.u32 %v9232_v62, %v4119_v29  ;;  %v4204_v20 = vshll.u32 %v9826_v34, %v4198_v52  ;;  %v6884_v47 = vld [vmem:[#allocation7 + $0x1a4] ss:$8 sps:$4 sm:$0xff]  }
 0x3d1   :  { %v9263_v14 = vmul.u32.u64.low %v9232_v62, %v4127_v40  ;;  %v9264_v41 = vmul.u32.u64.high %v9232_v62, %v4127_v40, %v9263_v14  ;;  %v9267_v18 = vmul.u32.u64.low %v9232_v62, %v4123_v13  ;;  %v9268_v60 = vmul.u32.u64.high %v9232_v62, %v4123_v13, %v9267_v18  ;;  %v6882_v40 = vld [vmem:[#allocation7 + $0x1a0] ss:$8 sps:$4 sm:$0xff]   ;;  %5173 = vmatprep.subr.bf16.mxu1 %v6884_v47 }
 0x3d2   :  { %v4207_v5 = vshll.u32 %v9827_v45, %v4198_v52  ;;  %vm4216_vm10 = vcmp.lt.s32.totalorder %v9251_v19, 1  ;;  %v4202_v6 = vshrl.u32 %v9826_v34, %v4199_v21  ;;  %v4205_v55 = vshrl.u32 %v9827_v45, %v4199_v21  ;;  %5174 = vmatpush2.bf16.msra.mxu1 %v6882_v40 }
 0x3d3   :  { %v4208_v49 = vshrl.u32 %v9828_v1, %v4199_v21  ;;  %v4210_v62 = vshll.u32 %v9828_v1, %v4198_v52  ;;  %vm4137_vm11 = vc.u32 %v9264_v41, %v9267_v18  ;;  %v4138_v54 = vadd.s32 1, %v9268_v60  ;;  %5175 = vmatprep.subr.bf16.mxu1 %v6887_v58 }
 0x3d4   :  { %v4211_v30 = vshrl.u32 %v9829_v50, %v4199_v21  ;;  %v4213_v39 = vshll.u32 %v9829_v50, %v4198_v52  ;;  %v4203_v27 = vor.u32 %v4202_v6, %v4201_v25  ;;  %v4206_v28 = vor.u32 %v4205_v55, %v4204_v20  ;;  %v3826_v20 = vpop.f32.mrf.mxu0 }
 0x3d5   :  { %v4209_v31 = vor.u32 %v4208_v49, %v4207_v5  ;;  %v4214_v42 = vshrl.u32 %v7147_v15, %v4199_v21  ;;  %v4139_v11 = vsel %vm4137_vm11, %v4138_v54, %v9268_v60  ;;  %vm4219_vm12 = vcmp.lt.s32.totalorder %v9251_v19, 4  ;;  %v6885_v49 = vld [vmem:[#allocation7 + $0x190] ss:$8 sps:$4 sm:$0xff]  }
 0x3d6   :  { %v4212_v9 = vor.u32 %v4211_v30, %v4210_v62  ;;  %v4506_v59 = vadd.s32 1, %v6150_v63  ;;  %v4200_v7 = vshrl.u32 %v9825_v38, %v4199_v21  ;;  %vm4217_vm13 = vcmp.lt.s32.totalorder %v9251_v19, 2  ;;  %5176 = vmatpush2.bf16.msra.mxu1 %v6885_v49 }
 0x3d7   :  { %v4215_v35 = vor.u32 %v4214_v42, %v4213_v39  ;;  %v4221_v4 = vsel %vm4219_vm12, %v4209_v31, 2102212464  ;;  %vm4218_vm14 = vcmp.lt.s32.totalorder %v9251_v19, 3  ;;  %v4224_v56 = vsel %vm4216_vm10, %v4203_v27, %v4206_v28  ;;  %v6890_v19 = vld [vmem:[#allocation7 + $0x184] ss:$8 sps:$4 sm:$0xff]  }
 0x3d8   :  { %v4225_v23 = vsel %vm4219_vm12, %v4212_v9, 920167782  ;;  %v4228_v36 = vsel %vm4216_vm10, %v4206_v28, %v4209_v31  ;;  %v9301_v24 = vadd.s32 %v4139_v11, %v4135_v46  ;;  %v4220_v26 = vsel %vm4216_vm10, %v4200_v7, %v4203_v27  ;;  %5177 = vmatprep.subr.bf16.mxu1 %v6890_v19 }
 0x3d9   :  { %v4226_v2 = vsel %vm4218_vm14, %v4209_v31, %v4225_v23  ;;  %v4229_v22 = vsel %vm4219_vm12, %v4215_v35, 1326507024  ;;  %v4222_v17 = vsel %vm4218_vm14, %v4206_v28, %v4221_v4  ;;  %vm4507_vm15 = vcmp.gt.s32.totalorder %v4506_v59, 0 }
 0x3da   :  { %v4227_v29 = vsel %vm4217_vm13, %v4224_v56, %v4226_v2  ;;  %v4230_v33 = vsel %vm4218_vm14, %v4212_v9, %v4229_v22  ;;  %v4508_v60 = vsel %vm4507_vm15, %v4506_v59, 0  ;;  %v4141_v46 = vadd.s32 536870912, %v9301_v24  ;;  %v6888_v9 = vld [vmem:[#allocation7 + $0x180] ss:$8 sps:$4 sm:$0xff]  }
 0x3db   :  { %v4231_v3 = vsel %vm4217_vm13, %v4228_v36, %v4230_v33  ;;  %v9312_v52 = vmul.u32.u64.low %v9272_v8, %v4227_v29  ;;  %v9313_v13 = vmul.u32.u64.high %v9272_v8, %v4227_v29, %v9312_v52  ;;  %v4223_v21 = vsel %vm4217_vm13, %v4220_v26, %v4222_v17  ;;  %5178 = vmatpush2.bf16.msra.mxu1 %v6888_v9 }
 0x3dc   :  { %v9317_v37 = vmul.u32.u64.low %v9272_v8, %v4231_v3  ;;  %v9318_v14 = vmul.u32.u64.high %v9272_v8, %v4231_v3, %v9317_v37  ;;  %v4496_v63 = vand.u32 2147483647, %v9216_v51  ;;  %v4510_v25 = vand.u32 31, %v4508_v60 }
 0x3dd   :  { %v3784_v5 = vadd.f32 %v9201_v0, %v9258_v32  ;;  %v4242_v6 = vadd.s32 1, %v9313_v13  ;;  %v4239_v62 = vmul.u32 %v9272_v8, %v4223_v21  ;;  %v9330_v54 = vshrl.u32 %v4141_v46, 30 }
 0x3de   :  { %v4511_v55 = vsub.s32 32, %v4510_v25  ;;  %vm4241_vm0 = vc.u32 %v9318_v14, %v9312_v52  ;;  %v4503_v0 = vand.u32 8388607, %v4496_v63  ;;  %v4513_v32 = vshll.u32 %v9825_v38, %v4510_v25 }
 0x3df   :  { %v3827_v57 = vadd.f32 %v3826_v20, %v3784_v5  ;;  %v4243_v30 = vsel %vm4241_vm0, %v4242_v6, %v9313_v13  ;;  %v4516_v8 = vshll.u32 %v9826_v34, %v4510_v25  ;;  %v4509_v28 = vshrl.u32 %v4508_v60, 5 }
 0x3e0   :  { %v4244_v39 = vadd.s32 %v4243_v30, %v4239_v62  ;;  %v4514_v61 = vshrl.u32 %v9826_v34, %v4511_v55  ;;  %v4517_v27 = vshrl.u32 %v9827_v45, %v4511_v55  ;;  %v4519_v31 = vshll.u32 %v9827_v45, %v4510_v25 }
 0x3e1   :  { %v4520_v42 = vshrl.u32 %v9828_v1, %v4511_v55  ;;  %v4522_v11 = vshll.u32 %v9828_v1, %v4510_v25  ;;  %v4523_v4 = vshrl.u32 %v9829_v50, %v4511_v55  ;;  %v4504_v56 = vor.u32 8388608, %v4503_v0 }
 0x3e2   :  { %v4245_v59 = vadd.s32 536870912, %v4244_v39  ;;  %v4515_v7 = vor.u32 %v4514_v61, %v4513_v32  ;;  %v4518_v35 = vor.u32 %v4517_v27, %v4516_v8  ;;  %v4526_v23 = vshrl.u32 %v7147_v15, %v4511_v55 }
 0x3e3   :  { %v9344_v36 = vadd.f32 %v3869_v10, %v3827_v57  ;;  %v4521_v26 = vor.u32 %v4520_v42, %v4519_v31  ;;  %v4524_v2 = vor.u32 %v4523_v4, %v4522_v11  ;;  %v4525_v22 = vshll.u32 %v9829_v50, %v4510_v25 }
 0x3e4   :  { %v9346_v47 = vshrl.u32 %v4245_v59, 30  ;;  %v4143_v17 = vshll.u32 %v9330_v54, 30  ;;  %vm4528_vm2 = vcmp.lt.s32.totalorder %v4509_v28, 1  ;;  %vm4531_vm3 = vcmp.lt.s32.totalorder %v4509_v28, 4 }
 0x3e5   :  { %v4527_v29 = vor.u32 %v4526_v23, %v4525_v22  ;;  %v4536_v33 = vsel %vm4528_vm2, %v4515_v7, %v4518_v35  ;;  %vm4530_vm1 = vcmp.lt.s32.totalorder %v4509_v28, 3  ;;  %v4537_v3 = vsel %vm4531_vm3, %v4524_v2, 920167782 }
 0x3e6   :  { %v4544_v13 = vshll.u32 %v4504_v56, 8  ;;  %v4603_v40 = vand.u32 2139095040, %v9344_v36  ;;  %v4247_v37 = vshll.u32 %v9346_v47, 30  ;;  %vm4529_vm4 = vcmp.lt.s32.totalorder %v4509_v28, 2 }
 0x3e7   :  { %v4533_v60 = vsel %vm4531_vm3, %v4521_v26, 2102212464  ;;  %v4538_v58 = vsel %vm4530_vm1, %v4521_v26, %v4537_v3  ;;  %v9355_v46 = vsub.s32 %v9301_v24, %v4143_v17  ;;  %v4512_v21 = vshrl.u32 %v9825_v38, %v4511_v55 }
 0x3e8   :  { %v4539_v25 = vsel %vm4529_vm4, %v4536_v33, %v4538_v58  ;;  %v4540_v20 = vsel %vm4528_vm2, %v4518_v35, %v4521_v26  ;;  %v4541_v5 = vsel %vm4531_vm3, %v4527_v29, 1326507024  ;;  %v4534_v57 = vsel %vm4530_vm1, %v4518_v35, %v4533_v60 }
 0x3e9   :  { %v9360_v6 = vmul.u32.u64.low %v4544_v13, %v4539_v25  ;;  %v9361_v49 = vmul.u32.u64.high %v4544_v13, %v4539_v25, %v9360_v6  ;;  %v4532_v62 = vsel %vm4528_vm2, %v4512_v21, %v4515_v7  ;;  %v4542_v19 = vsel %vm4530_vm1, %v4524_v2, %v4541_v5 }
 0x3ea   :  { %v9367_v30 = vsub.s32 %v4244_v39, %v4247_v37  ;;  %v4543_v24 = vsel %vm4529_vm4, %v4540_v20, %v4542_v19  ;;  %v4604_v55 = vshrl.u32 %v4603_v40, 23  ;;  %v4146_v0 = vsub.s32 0, %v9355_v46 }
 0x3eb   :  { %v9371_v32 = vmul.u32.u64.low %v4544_v13, %v4543_v24  ;;  %v9372_v61 = vmul.u32.u64.high %v4544_v13, %v4543_v24, %v9371_v32  ;;  %v4535_v8 = vsel %vm4529_vm4, %v4532_v62, %v4534_v57  ;;  %v4554_v27 = vadd.s32 1, %v9361_v49 }
 0x3ec   :  { %v6154_v31 = vadd.s32 4294967169, %v4604_v55  ;;  %v4250_v42 = vsub.s32 0, %v9367_v30  ;;  %v6135_v9 = vmin.u32 %v4146_v0, %v9355_v46  ;;  %v4551_v39 = vmul.u32 %v4544_v13, %v4535_v8 }
 0x3ed   :  { %vm4553_vm5 = vc.u32 %v9372_v61, %v9360_v6  ;;  %v4600_v26 = vand.u32 2147483647, %v9344_v36  ;;  %vm4082_vm15 = vcmp.lt.s32.totalorder %v9204_v44, 0  ;;  %vm4186_vm2 = vcmp.lt.s32.totalorder %v9209_v48, 0 }
 0x3ee   :  { %v4610_v11 = vadd.s32 1, %v6154_v31  ;;  %v4555_v59 = vsel %vm4553_vm5, %v4554_v27, %v9361_v49  ;;  %v6139_v28 = vmin.u32 %v4250_v42, %v9367_v30  ;;  %v4148_v4 = vclz %v6135_v9 }
 0x3ef   :  { %v4556_v7 = vadd.s32 %v4555_v59, %v4551_v39  ;;  %v4607_v13 = vand.u32 8388607, %v4600_v26  ;;  %vm4498_vm3 = vcmp.lt.s32.totalorder %v9216_v51, 0  ;;  %vm9443_vm1 = vcmp.le.f32.partialorder %v4080_v43, 0.7853982 }
 0x3f0   :  { %vm4611_vm7 = vcmp.gt.s32.totalorder %v4610_v11, 0  ;;  %v4252_v22 = vclz %v6139_v28  ;;  %v6136_v17 = vadd.s32 4294967294, %v4148_v4  ;;  %vm9449_vm4 = vcmp.le.f32.partialorder %v4184_v12, 0.7853982 }
 0x3f1   :  { %v4612_v35 = vsel %vm4611_vm7, %v4610_v11, 0  ;;  %v4557_v10 = vadd.s32 536870912, %v4556_v7  ;;  %v4608_v0 = vor.u32 8388608, %v4607_v13  ;;  %vm9463_vm5 = vcmp.le.f32.partialorder %v4496_v63, 0.7853982 }
 0x3f2   :  { %v4614_v56 = vand.u32 31, %v4612_v35  ;;  %v6140_v60 = vadd.s32 4294967294, %v4252_v22  ;;  %vm6137_vm8 = vcmp.lt.s32.totalorder %v6136_v17, 0  ;;  %v4613_v5 = vshrl.u32 %v4612_v35, 5 }
 0x3f3   :  { %v9382_v23 = vshrl.u32 %v4557_v10, 30  ;;  %v4151_v27 = vsel %vm6137_vm8, 0, %v6136_v17  ;;  %v4648_v4 = vshll.u32 %v4608_v0, 8  ;;  %vm4602_vm7 = vcmp.lt.s32.totalorder %v9344_v36, 0 }
 0x3f4   :  { %v4615_v2 = vsub.s32 32, %v4614_v56  ;;  %v4617_v40 = vshll.u32 %v9825_v38, %v4614_v56  ;;  %v4620_v58 = vshll.u32 %v9826_v34, %v4614_v56  ;;  %v4623_v21 = vshll.u32 %v9827_v45, %v4614_v56 }
 0x3f5   :  { %v4559_v29 = vshll.u32 %v9382_v23, 30  ;;  %v4626_v19 = vshll.u32 %v9828_v1, %v4614_v56  ;;  %v4629_v32 = vshll.u32 %v9829_v50, %v4614_v56  ;;  %vm6141_vm9 = vcmp.lt.s32.totalorder %v6140_v60, 0 }
 0x3f6   :  { %v4618_v33 = vshrl.u32 %v9826_v34, %v4615_v2  ;;  %v4621_v37 = vshrl.u32 %v9827_v45, %v4615_v2  ;;  %v4624_v25 = vshrl.u32 %v9828_v1, %v4615_v2  ;;  %v4627_v24 = vshrl.u32 %v9829_v50, %v4615_v2 }
 0x3f7   :  { %v9387_v3 = vsub.s32 %v4556_v7, %v4559_v29  ;;  %v4630_v8 = vshrl.u32 %v7147_v15, %v4615_v2  ;;  %vm4632_vm6 = vcmp.lt.s32.totalorder %v4613_v5, 1  ;;  %vm4635_vm10 = vcmp.lt.s32.totalorder %v4613_v5, 4 }
 0x3f8   :  { %v4619_v49 = vor.u32 %v4618_v33, %v4617_v40  ;;  %v4622_v62 = vor.u32 %v4621_v37, %v4620_v58  ;;  %v4625_v57 = vor.u32 %v4624_v25, %v4623_v21  ;;  %v4628_v31 = vor.u32 %v4627_v24, %v4626_v19 }
 0x3f9   :  { %v4562_v20 = vsub.s32 0, %v9387_v3  ;;  %v4631_v11 = vor.u32 %v4630_v8, %v4629_v32  ;;  %vm4634_vm11 = vcmp.lt.s32.totalorder %v4613_v5, 3  ;;  %v4255_v10 = vsel %vm6141_vm9, 0, %v6140_v60 }
 0x3fa   :  { %v4640_v9 = vsel %vm4632_vm6, %v4619_v49, %v4622_v62  ;;  %v4641_v39 = vsel %vm4635_vm10, %v4628_v31, 920167782  ;;  %v4644_v59 = vsel %vm4632_vm6, %v4622_v62, %v4625_v57  ;;  %vm4633_vm12 = vcmp.lt.s32.totalorder %v4613_v5, 2 }
 0x3fb   :  { %v6151_v55 = vmin.u32 %v4562_v20, %v9387_v3  ;;  %v4642_v35 = vsel %vm4634_vm11, %v4625_v57, %v4641_v39  ;;  %v4645_v28 = vsel %vm4635_vm10, %v4631_v11, 1326507024  ;;  %v4637_v56 = vsel %vm4635_vm10, %v4625_v57, 2102212464 }
 0x3fc   :  { %v4646_v22 = vsel %vm4634_vm11, %v4628_v31, %v4645_v28  ;;  %v4616_v17 = vshrl.u32 %v9825_v38, %v4615_v2  ;;  %v4643_v29 = vsel %vm4633_vm12, %v4640_v9, %v4642_v35  ;;  %v4156_v13 = vsub.s32 4294967266, %v4151_v27 }
 0x3fd   :  { %v4564_v42 = vclz %v6151_v55  ;;  %v4647_v33 = vsel %vm4633_vm12, %v4644_v59, %v4646_v22  ;;  %v4260_v21 = vsub.s32 4294967266, %v4255_v10  ;;  %v4638_v60 = vsel %vm4634_vm11, %v4622_v62, %v4637_v56 }
 0x3fe   :  { %v9409_v37 = vmul.u32.u64.low %v4648_v4, %v4647_v33  ;;  %v9410_v58 = vmul.u32.u64.high %v4648_v4, %v4647_v33, %v9409_v37  ;;  %v4636_v25 = vsel %vm4632_vm6, %v4616_v17, %v4619_v49  ;;  %v4157_v24 = vadd.s32 127, %v4156_v13 }
 0x3ff   :  { %v6152_v7 = vadd.s32 4294967294, %v4564_v42  ;;  %v9414_v57 = vmul.u32.u64.low %v4648_v4, %v4643_v29  ;;  %v9415_v19 = vmul.u32.u64.high %v4648_v4, %v4643_v29, %v9414_v57  ;;  %v4639_v2 = vsel %vm4633_vm12, %v4636_v25, %v4638_v60 }
 0x400   :  { %v4261_v55 = vadd.s32 127, %v4260_v21  ;;  %v4152_v0 = vsub.s32 32, %v4151_v27  ;;  %v4256_v31 = vsub.s32 32, %v4255_v10  ;;  %v4655_v42 = vmul.u32 %v4648_v4, %v4639_v2 }
 0x401   :  { %vm6153_vm13 = vcmp.lt.s32.totalorder %v6152_v7, 0  ;;  %vm4657_vm14 = vc.u32 %v9410_v58, %v9414_v57  ;;  %v4658_v8 = vadd.s32 1, %v9415_v19  ;;  %v4136_v49 = vadd.s32 %v9267_v18, %v9264_v41 }
 0x402   :  { %v4567_v40 = vsel %vm6153_vm13, 0, %v6152_v7  ;;  %v4158_v62 = vshll.u32 %v4157_v24, 23  ;;  %v4240_v5 = vadd.s32 %v9312_v52, %v9318_v14  ;;  %v4262_v39 = vshll.u32 %v4261_v55, 23 }
 0x403   :  { %v4572_v20 = vsub.s32 4294967266, %v4567_v40  ;;  %v4568_v11 = vsub.s32 32, %v4567_v40  ;;  %v4659_v9 = vsel %vm4657_vm14, %v4658_v8, %v9415_v19  ;;  %v4154_v7 = vshrl.u32 %v4136_v49, %v4152_v0 }
 0x404   :  { %v4660_v59 = vadd.s32 %v4659_v9, %v4655_v42  ;;  %v4552_v35 = vadd.s32 %v9360_v6, %v9372_v61  ;;  %v4258_v56 = vshrl.u32 %v4240_v5, %v4256_v31  ;;  %v4153_v4 = vshll.u32 %v9355_v46, %v4151_v27 }
 0x405   :  { %v4573_v32 = vadd.s32 127, %v4572_v20  ;;  %v4159_v17 = vor.u32 4788187, %v4158_v62  ;;  %v4257_v18 = vshll.u32 %v9367_v30, %v4255_v10  ;;  %v4263_v29 = vor.u32 4788187, %v4262_v39 }
 0x406   :  { %v4661_v22 = vadd.s32 536870912, %v4660_v59  ;;  %v4570_v41 = vshrl.u32 %v4552_v35, %v4568_v11  ;;  %v4155_v13 = vor.u32 %v4154_v7, %v4153_v4  ;;  %v4569_v52 = vshll.u32 %v9387_v3, %v4567_v40 }
 0x407   :  { %v4574_v28 = vshll.u32 %v4573_v32, 23  ;;  %v4259_v37 = vor.u32 %v4258_v56, %v4257_v18  ;;  %v4160_v6 = vand.u32 2147483647, %v4159_v17  ;;  %v4264_v25 = vand.u32 2147483647, %v4263_v29 }
 0x408   :  { %v9429_v33 = vshrl.u32 %v4661_v22, 30  ;;  %v4571_v61 = vor.u32 %v4570_v41, %v4569_v52  ;;  %v4162_v20 = vcvt.s32.f32 %v4155_v13  ;;  %v4656_v62 = vadd.s32 %v9414_v57, %v9410_v58 }
 0x409   :  { %v4575_v14 = vor.u32 4788187, %v4574_v28  ;;  %v4266_v27 = vcvt.s32.f32 %v4259_v37  ;;  %v4582_v18 = vsub.s32 4, %v9382_v23  ;;  %v4270_v29 = vsub.s32 4, %v9346_v47 }
 0x40a   :  { %v4663_v21 = vshll.u32 %v9429_v33, 30  ;;  %v4163_v24 = vmul.f32 %v4162_v20, %v4160_v6  ;;  %v4578_v30 = vcvt.s32.f32 %v4571_v61  ;;  %v4166_v13 = vsub.s32 4, %v9330_v54 }
 0x40b   :  { %v4576_v46 = vand.u32 2147483647, %v4575_v14  ;;  %v4267_v10 = vmul.f32 %v4266_v27, %v4264_v25  ;;  %v4583_v14 = vsel %vm4498_vm3, %v4582_v18, %v9382_v23  ;;  %v4686_v37 = vsub.s32 4, %v9429_v33 }
 0x40c   :  { %v4664_v60 = vsub.s32 %v4660_v59, %v4663_v21  ;;  %v4164_v32 = vxor.u32 2147483648, %v4163_v24  ;;  %vm9480_vm8 = vcmp.le.f32.partialorder %v4600_v26, 0.7853982  ;;  %v4271_v61 = vsel %vm4186_vm2, %v4270_v29, %v9346_v47  ;;  %v6891_v21 = vld [vmem:[#allocation8 + $0x78] sm:$0xff]  }
 0x40d   :  { %v4579_v55 = vmul.f32 %v4578_v30, %v4576_v46  ;;  %v4268_v3 = vxor.u32 2147483648, %v4267_v10  ;;  %v4167_v25 = vsel %vm4082_vm15, %v4166_v13, %v9330_v54  ;;  %v4273_v26 = vsel %vm9449_vm4, 0, %v4271_v61  ;;  %6255 = vmatprep.subr.bf16.mxu0 %v6891_v21  ;;  %v6894_v61 = vld [vmem:[#allocation8 + $0x30] sm:$0xff]  }
 0x40e   :  { %v4666_v19 = vsub.s32 0, %v4664_v60  ;;  %v4165_v31 = vsel %vm4082_vm15, %v4164_v32, %v4163_v24  ;;  %v4687_v20 = vsel %vm4602_vm7, %v4686_v37, %v9429_v33  ;;  %v4169_v47 = vsel %vm9443_vm1, 0, %v4167_v25  ;;  %v6895_v25 = vld [vmem:[#allocation8 + $0x68] sm:$0xff]  }
 0x40f   :  { %v4580_v8 = vxor.u32 2147483648, %v4579_v55  ;;  %v4269_v49 = vsel %vm4186_vm2, %v4268_v3, %v4267_v10  ;;  %v4168_v58 = vsel %vm9443_vm1, %v9204_v44, %v4165_v31  ;;  %v4277_v24 = vadd.s32 3, %v4273_v26  ;;  %v6898_v26 = vld [vmem:[#allocation8 + $0x20] sm:$0xff]  }
 0x410   :  { %v6155_v2 = vmin.u32 %v4666_v19, %v4664_v60  ;;  %v4272_v43 = vsel %vm9449_vm4, %v9209_v48, %v4269_v49  ;;  %6987 = vcosq.f32 %v4168_v58  ;;  %v4689_v30 = vsel %vm9480_vm8, 0, %v4687_v20 }
 0x411   :  { %v4581_v59 = vsel %vm4498_vm3, %v4580_v8, %v4579_v55  ;;  %6989 = vcosq.f32 %v4272_v43  ;;  %v4693_v32 = vadd.s32 3, %v4689_v30  ;;  %vm4588_vm4 = vweird.f32 %v9216_v51 }
 0x412   :  { %v4668_v0 = vclz %v6155_v2  ;;  %v4584_v28 = vsel %vm9463_vm5, %v9216_v51, %v4581_v59  ;;  %v4173_v2 = vadd.s32 3, %v4169_v47  ;;  %v6893_v51 = vld [vmem:[#allocation8 + $0x70] sm:$0xff]   ;;  %v6899_v47 = vld [vmem:[#allocation8 + $0x58] sm:$0xff]  }
 0x413   :  { %6991 = vcosq.f32 %v4584_v28 }
 0x414   :  { %v6156_v40 = vadd.s32 4294967294, %v4668_v0  ;;  %6993 = vsinq.f32 %v4584_v28  ;;  %v4174_v49 = vand.u32 3, %v4173_v2 }
 0x415   :  { %6995 = vsinq.f32 %v4272_v43 }
 0x416   :  { %vm6157_vm0 = vcmp.lt.s32.totalorder %v6156_v40, 0  ;;  %6997 = vsinq.f32 %v4168_v58  ;;  %vm4176_vm12 = vcmp.eq.s32.totalorder %v4174_v49, 0  ;;  %vm4179_vm13 = vcmp.eq.s32.totalorder %v4174_v49, 2 }
 0x417   :  { %v4671_v42 = vsel %vm6157_vm0, 0, %v6156_v40  ;;  %v4278_v40 = vand.u32 3, %v4277_v24  ;;  %vm4175_vm3 = vcmp.lt.s32.totalorder %v4174_v49, 2 }
 0x418   :  { %v4672_v11 = vsub.s32 32, %v4671_v42  ;;  %v4676_v9 = vsub.s32 4294967266, %v4671_v42  ;;  %v4673_v57 = vshll.u32 %v4664_v60, %v4671_v42  ;;  %v4585_v60 = vsel %vm9463_vm5, 0, %v4583_v14 }
 0x419   :  { %v4589_v54 = vadd.s32 3, %v4585_v60  ;;  %vm4280_vm10 = vcmp.eq.s32.totalorder %v4278_v40, 0  ;;  %vm4283_vm11 = vcmp.eq.s32.totalorder %v4278_v40, 2  ;;  %vm4279_vm15 = vcmp.lt.s32.totalorder %v4278_v40, 2  ;;  %v6897_v60 = vld [vmem:[#allocation8 + $0x60] sm:$0xff]   ;;  %v6902_v40 = vld [vmem:[#allocation8 + $0x10] sm:$0xff]  }
 0x41a   :  { %v4674_v7 = vshrl.u32 %v4656_v62, %v4672_v11  ;;  %v4677_v35 = vadd.s32 127, %v4676_v9  ;;  %v4694_v9 = vand.u32 3, %v4693_v32  ;;  %vm4276_vm5 = vweird.f32 %v9209_v48  ;;  %v4772_v48 = vld [vmem:[%s9791_s6] sm:$0x3] }
 0x41b   :  { %v4590_v3 = vand.u32 3, %v4589_v54  ;;  %v9511_v20 = vrot.slane %v4772_v48, %v9874_v16 }
 0x41c   :  { %v4675_v56 = vor.u32 %v4674_v7, %v4673_v57  ;;  %v4678_v22 = vshll.u32 %v4677_v35, 23  ;;  %vm4699_vm0 = vcmp.eq.s32.totalorder %v4694_v9, 2  ;;  %vm4696_vm2 = vcmp.eq.s32.totalorder %v4694_v9, 0 }
 0x41d   :  { %v6988_v46 = vpop.eup %6987  ;;  %vm4592_vm9 = vcmp.eq.s32.totalorder %v4590_v3, 0  ;;  %vm4595_vm6 = vcmp.eq.s32.totalorder %v4590_v3, 2  ;;  %vm4591_vm14 = vcmp.lt.s32.totalorder %v4590_v3, 2  ;;  %vm4695_vm1 = vcmp.lt.s32.totalorder %v4694_v9, 2 }
 0x41e   :  { %v4679_v4 = vor.u32 4788187, %v4678_v22  ;;  %v4682_v41 = vcvt.s32.f32 %v4675_v56  ;;  %v6990_v27 = vpop.eup %6989  ;;  %v4180_v11 = vxor.u32 2147483648, %v6988_v46 }
 0x41f   :  { %v4284_v42 = vxor.u32 2147483648, %v6990_v27 }
 0x420   :  { %v4680_v17 = vand.u32 2147483647, %v4679_v4  ;;  %v6992_v19 = vpop.eup %6991 }
 0x421   :  { %v6994_v10 = vpop.eup %6993  ;;  %v4596_v33 = vxor.u32 2147483648, %v6992_v19 }
 0x422   :  { %v4683_v63 = vmul.f32 %v4682_v41, %v4680_v17  ;;  %v6996_v55 = vpop.eup %6995  ;;  %v4593_v8 = vxor.u32 2147483648, %v6994_v10 }
 0x423   :  { %v6998_v0 = vpop.eup %6997  ;;  %v4281_v31 = vxor.u32 2147483648, %v6996_v55  ;;  %v4597_v39 = vsel %vm4595_vm6, %v4596_v33, %v6994_v10  ;;  %v4285_v57 = vsel %vm4283_vm11, %v4284_v42, %v6996_v55  ;;  %v6903_v33 = vld [vmem:[#allocation8 + $0x48] sm:$0xff]  }
 0x424   :  { %v4684_v52 = vxor.u32 2147483648, %v4683_v63  ;;  %v4177_v62 = vxor.u32 2147483648, %v6998_v0  ;;  %v4594_v5 = vsel %vm4592_vm9, %v6992_v19, %v4593_v8  ;;  %v4181_v12 = vsel %vm4179_vm13, %v4180_v11, %v6998_v0  ;;  %v6900_v19 = vld [vmem:[#allocation8 + $0x18] sm:$0xff]  }
 0x425   :  { %v4282_v58 = vsel %vm4280_vm10, %v6990_v27, %v4281_v31  ;;  %v4598_v56 = vsel %vm4591_vm14, %v4594_v5, %v4597_v39  ;;  %v6904_v39 = vld [vmem:[#allocation8 + $0x8] sm:$0xff]  }
 0x426   :  { %v4685_v6 = vsel %vm4602_vm7, %v4684_v52, %v4683_v63  ;;  %v4178_v43 = vsel %vm4176_vm12, %v6988_v46, %v4177_v62  ;;  %v4286_v22 = vsel %vm4279_vm15, %v4282_v58, %v4285_v57  ;;  %vm4692_vm7 = vweird.f32 %v9344_v36  ;;  %v6905_v58 = vld [vmem:[#allocation8 + $0x40] sm:$0xff]  }
 0x427   :  { %v4688_v23 = vsel %vm9480_vm8, %v9344_v36, %v4685_v6  ;;  %v4182_v41 = vsel %vm4175_vm3, %v4178_v43, %v4181_v12  ;;  %v4599_v63 = vsel %vm4588_vm4, nan, %v4598_v56  ;;  %v4287_v29 = vsel %vm4276_vm5, nan, %v4286_v22  ;;  %v6892_v6 = vld [vmem:[#allocation8 + $0x38] sm:$0xff]   ;;  %v6906_v56 = vld [vmem:[#allocation8] sm:$0xff]  }
 0x428   :  { %6999 = vcosq.f32 %v4688_v23  ;;  %vm4172_vm8 = vweird.f32 %v9204_v44  ;;  %6256 = vmatpush3.bf16.msra.mxu0 %v6892_v6  ;;  %v6896_v44 = vld [vmem:[#allocation8 + $0x28] sm:$0xff]  }
 0x429   :  { %7001 = vsinq.f32 %v4688_v23  ;;  %v4183_v14 = vsel %vm4172_vm8, nan, %v4182_v41  ;;  %6257 = vmatprep.subr.bf16.mxu0 %v6893_v51  ;;  %v4777_v23 = vrot.slane %v4772_v48, %v9873_v53  ;;  %v6901_v53 = vld [vmem:[#allocation8 + $0x50] sm:$0xff]  }
 0x42a   :  { %v4706_v37 = vpack.c.bf16 %v4599_v63, %v4183_v14 }
 0x42c   :  { %6258 = vmatpush3.bf16.msra.mxu0 %v6894_v61 }
 0x42d   :  { %6259 = vmatprep.subr.bf16.mxu0 %v6895_v25 }
 0x430   :  { %6260 = vmatpush3.bf16.msra.mxu0 %v6896_v44 }
 0x431   :  { %6261 = vmatprep.subr.bf16.mxu0 %v6897_v60 }
 0x434   :  { %6262 = vmatpush3.bf16.msra.mxu0 %v6898_v26 }
 0x435   :  { %v7000_v59 = vpop.eup %6999  ;;  %6263 = vmatprep.subr.bf16.mxu0 %v6899_v47 }
 0x436   :  { %v7002_v7 = vpop.eup %7001  ;;  %v4700_v35 = vxor.u32 2147483648, %v7000_v59 }
 0x437   :  { %v4697_v28 = vxor.u32 2147483648, %v7002_v7 }
 0x438   :  { %v4701_v4 = vsel %vm4699_vm0, %v4700_v35, %v7002_v7  ;;  %6264 = vmatpush3.bf16.msra.mxu0 %v6900_v19 }
 0x439   :  { %v4698_v17 = vsel %vm4696_vm2, %v7000_v59, %v4697_v28  ;;  %6265 = vmatprep.subr.bf16.mxu0 %v6901_v53 }
 0x43a   :  { %v4702_v18 = vsel %vm4695_vm1, %v4698_v17, %v4701_v4 }
 0x43b   :  { %v4703_v13 = vsel %vm4692_vm7, nan, %v4702_v18 }
 0x43c   :  { %v4707_v52 = vpack.c.bf16 %v4703_v13, %v4287_v29  ;;  %6266 = vmatpush3.bf16.msra.mxu0 %v6902_v40 }
 0x43d   :  { %6267 = vmatprep.subr.bf16.mxu0 %v6903_v33 }
 0x43e   :  { %5179 = vmatprep.mubr.bf16.mxu1 %v4707_v52 }
 0x43f   :  { %5180 = vmatmul.mubr.bf16.vlgmr.msra.gmra.mxu1 %v4706_v37 }
 0x440   :  { %6268 = vmatpush3.bf16.msra.mxu0 %v6904_v39 }
 0x441   :  { %6269 = vmatprep.subr.bf16.mxu0 %v6905_v58 }
 0x444   :  { %6270 = vmatpush3.bf16.msra.mxu0 %v6906_v56 }
 0x47c   :  { %v5138_v36 = vpop.f32.mrf.mxu0 }
 0x47d   :  { %v5139_v27 = vadd.f32 %v5138_v36, %v4777_v23 }
 0x47e   :  { %v5140_v46 = vpop.f32.mrf.mxu0 }
 0x47f   :  { %v5141_v24 = vadd.f32 %v5140_v46, %v9511_v20 }
 0x480   :  { %v5142_v30 = vpop.f32.mrf.mxu0 }
 0x481   :  { %v5143_v32 = vadd.f32 %v5142_v30, %v4777_v23 }
 0x4ff   :  { %v5181_v54 = vpop.f32.mrf.mxu1 }
 0x500   :  { %v9514_v10 = vadd.f32 %v5181_v54, %v5139_v27 }
 0x501   :  { %v5183_v2 = vpop.f32.mrf.mxu1 }
 0x502   :  { %v5190_v55 = vand.u32 2147483647, %v9514_v10  ;;  %v5193_v16 = vand.u32 2139095040, %v9514_v10  ;;  %v9518_v0 = vadd.f32 %v5183_v2, %v5141_v24 }
 0x503   :  { %v5185_v3 = vpop.f32.mrf.mxu1 }
 0x504   :  { %v5194_v8 = vshrl.u32 %v5193_v16, 23  ;;  %v5197_v31 = vand.u32 8388607, %v5190_v55  ;;  %v5294_v42 = vand.u32 2147483647, %v9518_v0  ;;  %v5297_v49 = vand.u32 2139095040, %v9518_v0 }
 0x505   :  { %v9524_v62 = vadd.f32 %v5185_v3, %v5143_v32 }
 0x506   :  { %v6222_v11 = vadd.s32 4294967169, %v5194_v8  ;;  %v5298_v9 = vshrl.u32 %v5297_v49, 23  ;;  %v5301_v5 = vand.u32 8388607, %v5294_v42  ;;  %v5198_v57 = vor.u32 8388608, %v5197_v31 }
 0x507   :  { %v5401_v43 = vand.u32 2139095040, %v9524_v62 }
 0x508   :  { %v5200_v59 = vadd.s32 1, %v6222_v11  ;;  %v6226_v7 = vadd.s32 4294967169, %v5298_v9  ;;  %v5302_v35 = vor.u32 8388608, %v5301_v5  ;;  %v9529_v17 = vshll.u32 %v5198_v57, 8 }
 0x509   :  { %v5402_v18 = vshrl.u32 %v5401_v43, 23 }
 0x50a   :  { %vm5201_vm9 = vcmp.gt.s32.totalorder %v5200_v59, 0  ;;  %v5304_v28 = vadd.s32 1, %v6226_v7  ;;  %v9531_v41 = vshll.u32 %v5302_v35, 8 }
 0x50b   :  { %v5202_v12 = vsel %vm5201_vm9, %v5200_v59, 0  ;;  %v6230_v8 = vadd.s32 4294967169, %v5402_v18 }
 0x50c   :  { %v5203_v22 = vshrl.u32 %v5202_v12, 5  ;;  %v5204_v4 = vand.u32 31, %v5202_v12  ;;  %vm5305_vm6 = vcmp.gt.s32.totalorder %v5304_v28, 0 }
 0x50d   :  { %v5306_v60 = vsel %vm5305_vm6, %v5304_v28, 0 }
 0x50e   :  { %v5205_v63 = vsub.s32 32, %v5204_v4  ;;  %v5207_v29 = vshll.u32 %v9825_v38, %v5204_v4  ;;  %v5210_v13 = vshll.u32 %v9826_v34, %v5204_v4  ;;  %v5213_v52 = vshll.u32 %v9827_v45, %v5204_v4 }
 0x50f   :  { %v5216_v14 = vshll.u32 %v9828_v1, %v5204_v4  ;;  %v5219_v37 = vshll.u32 %v9829_v50, %v5204_v4  ;;  %vm5222_vm10 = vcmp.lt.s32.totalorder %v5203_v22, 1  ;;  %vm5223_vm11 = vcmp.lt.s32.totalorder %v5203_v22, 2 }
 0x510   :  { %v5208_v21 = vshrl.u32 %v9826_v34, %v5205_v63  ;;  %v5211_v6 = vshrl.u32 %v9827_v45, %v5205_v63  ;;  %v5214_v51 = vshrl.u32 %v9828_v1, %v5205_v63  ;;  %v5206_v61 = vshrl.u32 %v9825_v38, %v5205_v63 }
 0x511   :  { %v5217_v48 = vshrl.u32 %v9829_v50, %v5205_v63  ;;  %v5220_v36 = vshrl.u32 %v7147_v15, %v5205_v63  ;;  %vm5224_vm12 = vcmp.lt.s32.totalorder %v5203_v22, 3  ;;  %vm5225_vm13 = vcmp.lt.s32.totalorder %v5203_v22, 4 }
 0x512   :  { %v5209_v25 = vor.u32 %v5208_v21, %v5207_v29  ;;  %v5212_v44 = vor.u32 %v5211_v6, %v5210_v13  ;;  %v5215_v23 = vor.u32 %v5214_v51, %v5213_v52  ;;  %v5308_v47 = vand.u32 31, %v5306_v60 }
 0x513   :  { %v5218_v26 = vor.u32 %v5217_v48, %v5216_v14  ;;  %v5221_v46 = vor.u32 %v5220_v36, %v5219_v37  ;;  %v5307_v49 = vshrl.u32 %v5306_v60, 5  ;;  %v5144_v36 = vpop.f32.mrf.mxu0  ;;  %v5408_v60 = vadd.s32 1, %v6230_v8 }
 0x514   :  { %v5226_v27 = vsel %vm5222_vm10, %v5206_v61, %v5209_v25  ;;  %v5227_v54 = vsel %vm5225_vm13, %v5215_v23, 2102212464  ;;  %v5230_v19 = vsel %vm5222_vm10, %v5209_v25, %v5212_v44  ;;  %v5234_v24 = vsel %vm5222_vm10, %v5212_v44, %v5215_v23 }
 0x515   :  { %v5228_v30 = vsel %vm5224_vm12, %v5212_v44, %v5227_v54  ;;  %v5231_v53 = vsel %vm5225_vm13, %v5218_v26, 920167782  ;;  %v5235_v2 = vsel %vm5225_vm13, %v5221_v46, 1326507024  ;;  %v5309_v16 = vsub.s32 32, %v5308_v47 }
 0x516   :  { %v5229_v32 = vsel %vm5223_vm11, %v5226_v27, %v5228_v30  ;;  %v5232_v3 = vsel %vm5224_vm12, %v5215_v23, %v5231_v53  ;;  %v5236_v40 = vsel %vm5224_vm12, %v5218_v26, %v5235_v2  ;;  %v5311_v11 = vshll.u32 %v9825_v38, %v5308_v47  ;;  %v5187_v30 = vpop.f32.mrf.mxu1 }
 0x517   :  { %v5233_v33 = vsel %vm5223_vm11, %v5230_v19, %v5232_v3  ;;  %v5237_v31 = vsel %vm5223_vm11, %v5234_v24, %v5236_v40  ;;  %v5245_v58 = vmul.u32 %v9529_v17, %v5229_v32  ;;  %v5312_v57 = vshrl.u32 %v9826_v34, %v5309_v16 }
 0x518   :  { %v9556_v9 = vmul.u32.u64.low %v9529_v17, %v5237_v31  ;;  %v9557_v5 = vmul.u32.u64.high %v9529_v17, %v5237_v31, %v9556_v9  ;;  %v9560_v39 = vmul.u32.u64.low %v9529_v17, %v5233_v33  ;;  %v9561_v59 = vmul.u32.u64.high %v9529_v17, %v5233_v33, %v9560_v39 }
 0x519   :  { %v5314_v7 = vshll.u32 %v9826_v34, %v5308_v47  ;;  %v5315_v35 = vshrl.u32 %v9827_v45, %v5309_v16  ;;  %v5317_v43 = vshll.u32 %v9827_v45, %v5308_v47  ;;  %v5318_v12 = vshrl.u32 %v9828_v1, %v5309_v16 }
 0x51a   :  { %v5320_v28 = vshll.u32 %v9828_v1, %v5308_v47  ;;  %v5321_v56 = vshrl.u32 %v9829_v50, %v5309_v16  ;;  %v5313_v22 = vor.u32 %v5312_v57, %v5311_v11  ;;  %v5323_v18 = vshll.u32 %v9829_v50, %v5308_v47 }
 0x51b   :  { %v5316_v4 = vor.u32 %v5315_v35, %v5314_v7  ;;  %v5324_v17 = vshrl.u32 %v7147_v15, %v5309_v16  ;;  %vm5247_vm14 = vc.u32 %v9557_v5, %v9560_v39  ;;  %v5248_v63 = vadd.s32 1, %v9561_v59 }
 0x51c   :  { %v5310_v29 = vshrl.u32 %v9825_v38, %v5309_v16  ;;  %v5319_v13 = vor.u32 %v5318_v12, %v5317_v43  ;;  %v5322_v52 = vor.u32 %v5321_v56, %v5320_v28  ;;  %vm5326_vm15 = vcmp.lt.s32.totalorder %v5307_v49, 1 }
 0x51d   :  { %v5325_v14 = vor.u32 %v5324_v17, %v5323_v18  ;;  %vm5327_vm0 = vcmp.lt.s32.totalorder %v5307_v49, 2  ;;  %v5249_v37 = vsel %vm5247_vm14, %v5248_v63, %v9561_v59  ;;  %vm5328_vm2 = vcmp.lt.s32.totalorder %v5307_v49, 3 }
 0x51e   :  { %vm5329_vm3 = vcmp.lt.s32.totalorder %v5307_v49, 4  ;;  %v5334_v21 = vsel %vm5326_vm15, %v5313_v22, %v5316_v4  ;;  %v5250_v6 = vadd.s32 %v5249_v37, %v5245_v58  ;;  %v5338_v48 = vsel %vm5326_vm15, %v5316_v4, %v5319_v13 }
 0x51f   :  { %v5331_v51 = vsel %vm5329_vm3, %v5319_v13, 2102212464  ;;  %v5335_v61 = vsel %vm5329_vm3, %v5322_v52, 920167782  ;;  %v5330_v25 = vsel %vm5326_vm15, %v5310_v29, %v5313_v22  ;;  %v5339_v23 = vsel %vm5329_vm3, %v5325_v14, 1326507024 }
 0x520   :  { %v5336_v44 = vsel %vm5328_vm2, %v5319_v13, %v5335_v61  ;;  %v5251_v26 = vadd.s32 536870912, %v5250_v6  ;;  %v5332_v46 = vsel %vm5328_vm2, %v5316_v4, %v5331_v51  ;;  %v5340_v27 = vsel %vm5328_vm2, %v5322_v52, %v5339_v23 }
 0x521   :  { %v5337_v47 = vsel %vm5327_vm0, %v5334_v21, %v5336_v44  ;;  %v5341_v54 = vsel %vm5327_vm0, %v5338_v48, %v5340_v27  ;;  %v5145_v53 = vadd.f32 %v5144_v36, %v9511_v20  ;;  %vm5409_vm1 = vcmp.gt.s32.totalorder %v5408_v60, 0 }
 0x522   :  { %v9582_v19 = vmul.u32.u64.low %v9531_v41, %v5337_v47  ;;  %v9583_v24 = vmul.u32.u64.high %v9531_v41, %v5337_v47, %v9582_v19  ;;  %v9588_v2 = vmul.u32.u64.low %v9531_v41, %v5341_v54  ;;  %v9589_v16 = vmul.u32.u64.high %v9531_v41, %v5341_v54, %v9588_v2 }
 0x523   :  { %v5333_v32 = vsel %vm5327_vm0, %v5330_v25, %v5332_v46  ;;  %v5410_v3 = vsel %vm5409_vm1, %v5408_v60, 0  ;;  %v9592_v40 = vshrl.u32 %v5251_v26, 30  ;;  %v5398_v8 = vand.u32 2147483647, %v9524_v62 }
 0x524   :  { %v5412_v33 = vand.u32 31, %v5410_v3  ;;  %v9595_v31 = vadd.f32 %v5187_v30, %v5145_v53  ;;  %v5352_v11 = vadd.s32 1, %v9583_v24  ;;  %v5349_v9 = vmul.u32 %v9531_v41, %v5333_v32 }
 0x525   :  { %vm5351_vm4 = vc.u32 %v9589_v16, %v9582_v19  ;;  %v5253_v49 = vshll.u32 %v9592_v40, 30  ;;  %v5405_v57 = vand.u32 8388607, %v5398_v8  ;;  %v5411_v56 = vshrl.u32 %v5410_v3, 5 }
 0x526   :  { %v5353_v20 = vsel %vm5351_vm4, %v5352_v11, %v9583_v24  ;;  %v5413_v59 = vsub.s32 32, %v5412_v33  ;;  %v5505_v7 = vand.u32 2139095040, %v9595_v31  ;;  %v5415_v35 = vshll.u32 %v9825_v38, %v5412_v33 }
 0x527   :  { %v5354_v58 = vadd.s32 %v5353_v20, %v5349_v9  ;;  %v5418_v41 = vshll.u32 %v9826_v34, %v5412_v33  ;;  %v5421_v22 = vshll.u32 %v9827_v45, %v5412_v33  ;;  %v5424_v63 = vshll.u32 %v9828_v1, %v5412_v33 }
 0x528   :  { %v5416_v43 = vshrl.u32 %v9826_v34, %v5413_v59  ;;  %v5419_v12 = vshrl.u32 %v9827_v45, %v5413_v59  ;;  %v5422_v4 = vshrl.u32 %v9828_v1, %v5413_v59  ;;  %v5425_v29 = vshrl.u32 %v9829_v50, %v5413_v59 }
 0x529   :  { %v5355_v28 = vadd.s32 536870912, %v5354_v58  ;;  %v5428_v14 = vshrl.u32 %v7147_v15, %v5413_v59  ;;  %v5406_v37 = vor.u32 8388608, %v5405_v57  ;;  %v5427_v51 = vshll.u32 %v9829_v50, %v5412_v33 }
 0x52a   :  { %v5417_v18 = vor.u32 %v5416_v43, %v5415_v35  ;;  %v5420_v17 = vor.u32 %v5419_v12, %v5418_v41  ;;  %v5423_v52 = vor.u32 %v5422_v4, %v5421_v22  ;;  %v5426_v21 = vor.u32 %v5425_v29, %v5424_v63 }
 0x52b   :  { %v9614_v13 = vshrl.u32 %v5355_v28, 30  ;;  %v5506_v61 = vshrl.u32 %v5505_v7, 23  ;;  %v9618_v48 = vsub.s32 %v5250_v6, %v5253_v49  ;;  %vm5430_vm5 = vcmp.lt.s32.totalorder %v5411_v56, 1 }
 0x52c   :  { %vm5433_vm7 = vcmp.lt.s32.totalorder %v5411_v56, 4  ;;  %v5429_v25 = vor.u32 %v5428_v14, %v5427_v51  ;;  %vm5432_vm8 = vcmp.lt.s32.totalorder %v5411_v56, 3  ;;  %v5438_v44 = vsel %vm5430_vm5, %v5417_v18, %v5420_v17 }
 0x52d   :  { %v5357_v36 = vshll.u32 %v9614_v13, 30  ;;  %v5439_v23 = vsel %vm5433_vm7, %v5426_v21, 920167782  ;;  %vm5431_vm9 = vcmp.lt.s32.totalorder %v5411_v56, 2  ;;  %v5446_v47 = vshll.u32 %v5406_v37, 8 }
 0x52e   :  { %v5440_v60 = vsel %vm5432_vm8, %v5423_v52, %v5439_v23  ;;  %v6234_v27 = vadd.s32 4294967169, %v5506_v61  ;;  %v5256_v6 = vsub.s32 0, %v9618_v48  ;;  %v5442_v54 = vsel %vm5430_vm5, %v5420_v17, %v5423_v52 }
 0x52f   :  { %v9623_v26 = vsub.s32 %v5354_v58, %v5357_v36  ;;  %v5441_v46 = vsel %vm5431_vm9, %v5438_v44, %v5440_v60  ;;  %v5435_v24 = vsel %vm5433_vm7, %v5423_v52, 2102212464  ;;  %v5443_v30 = vsel %vm5433_vm7, %v5429_v25, 1326507024 }
 0x530   :  { %v9628_v53 = vmul.u32.u64.low %v5446_v47, %v5441_v46  ;;  %v9629_v2 = vmul.u32.u64.high %v5446_v47, %v5441_v46, %v9628_v53  ;;  %v5414_v32 = vshrl.u32 %v9825_v38, %v5413_v59  ;;  %v5444_v3 = vsel %vm5432_vm8, %v5426_v21, %v5443_v30 }
 0x531   :  { %v5360_v33 = vsub.s32 0, %v9623_v26  ;;  %v5445_v11 = vsel %vm5431_vm9, %v5442_v54, %v5444_v3  ;;  %v5512_v9 = vadd.s32 1, %v6234_v27  ;;  %v6223_v20 = vmin.u32 %v5256_v6, %v9618_v48 }
 0x532   :  { %v5434_v49 = vsel %vm5430_vm5, %v5414_v32, %v5417_v18  ;;  %v5436_v58 = vsel %vm5432_vm8, %v5420_v17, %v5435_v24  ;;  %v9639_v57 = vmul.u32.u64.low %v5446_v47, %v5445_v11  ;;  %v9640_v7 = vmul.u32.u64.high %v5446_v47, %v5445_v11, %v9639_v57 }
 0x533   :  { %vm5513_vm6 = vcmp.gt.s32.totalorder %v5512_v9, 0  ;;  %v6227_v59 = vmin.u32 %v5360_v33, %v9623_v26  ;;  %v5437_v43 = vsel %vm5431_vm9, %v5434_v49, %v5436_v58  ;;  %v5456_v41 = vadd.s32 1, %v9629_v2 }
 0x534   :  { %v5514_v35 = vsel %vm5513_vm6, %v5512_v9, 0  ;;  %v5258_v28 = vclz %v6223_v20  ;;  %vm5455_vm10 = vc.u32 %v9640_v7, %v9628_v53  ;;  %v5453_v4 = vmul.u32 %v5446_v47, %v5437_v43 }
 0x535   :  { %v5516_v12 = vand.u32 31, %v5514_v35  ;;  %v5362_v18 = vclz %v6227_v59  ;;  %v5457_v17 = vsel %vm5455_vm10, %v5456_v41, %v9629_v2  ;;  %v5502_v63 = vand.u32 2147483647, %v9595_v31 }
 0x536   :  { %v6224_v29 = vadd.s32 4294967294, %v5258_v28  ;;  %v5458_v52 = vadd.s32 %v5457_v17, %v5453_v4  ;;  %v5515_v44 = vshrl.u32 %v5514_v35, 5  ;;  %vm5192_vm1 = vcmp.lt.s32.totalorder %v9514_v10, 0 }
 0x537   :  { %v5517_v22 = vsub.s32 32, %v5516_v12  ;;  %v6228_v21 = vadd.s32 4294967294, %v5362_v18  ;;  %v5509_v51 = vand.u32 8388607, %v5502_v63  ;;  %v5519_v61 = vshll.u32 %v9825_v38, %v5516_v12 }
 0x538   :  { %v5459_v56 = vadd.s32 536870912, %v5458_v52  ;;  %vm6225_vm11 = vcmp.lt.s32.totalorder %v6224_v29, 0  ;;  %v5522_v23 = vshll.u32 %v9826_v34, %v5516_v12  ;;  %v5525_v46 = vshll.u32 %v9827_v45, %v5516_v12 }
 0x539   :  { %v5520_v14 = vshrl.u32 %v9826_v34, %v5517_v22  ;;  %v5523_v37 = vshrl.u32 %v9827_v45, %v5517_v22  ;;  %v5526_v36 = vshrl.u32 %v9828_v1, %v5517_v22  ;;  %v5528_v47 = vshll.u32 %v9828_v1, %v5516_v12 }
 0x53a   :  { %v9655_v25 = vshrl.u32 %v5459_v56, 30  ;;  %v5529_v27 = vshrl.u32 %v9829_v50, %v5517_v22  ;;  %v5531_v24 = vshll.u32 %v9829_v50, %v5516_v12  ;;  %v5532_v30 = vshrl.u32 %v7147_v15, %v5517_v22 }
 0x53b   :  { %v5521_v60 = vor.u32 %v5520_v14, %v5519_v61  ;;  %v5524_v54 = vor.u32 %v5523_v37, %v5522_v23  ;;  %vm6229_vm12 = vcmp.lt.s32.totalorder %v6228_v21, 0  ;;  %v5527_v2 = vor.u32 %v5526_v36, %v5525_v46 }
 0x53c   :  { %v5461_v6 = vshll.u32 %v9655_v25, 30  ;;  %v5530_v32 = vor.u32 %v5529_v27, %v5528_v47  ;;  %v5533_v34 = vor.u32 %v5532_v30, %v5531_v24  ;;  %v5261_v33 = vsel %vm6225_vm11, 0, %v6224_v29 }
 0x53d   :  { %v5510_v45 = vor.u32 8388608, %v5509_v51  ;;  %vm5534_vm13 = vcmp.lt.s32.totalorder %v5515_v44, 1  ;;  %v5365_v1 = vsel %vm6229_vm12, 0, %v6228_v21  ;;  %vm5537_vm14 = vcmp.lt.s32.totalorder %v5515_v44, 4 }
 0x53e   :  { %v9664_v3 = vsub.s32 %v5458_v52, %v5461_v6  ;;  %v5542_v9 = vsel %vm5534_vm13, %v5521_v60, %v5524_v54  ;;  %vm5536_vm15 = vcmp.lt.s32.totalorder %v5515_v44, 3  ;;  %v5543_v50 = vsel %vm5537_vm14, %v5530_v32, 920167782 }
 0x53f   :  { %v5546_v15 = vsel %vm5534_vm13, %v5524_v54, %v5527_v2  ;;  %v5547_v20 = vsel %vm5537_vm14, %v5533_v34, 1326507024  ;;  %vm5535_vm0 = vcmp.lt.s32.totalorder %v5515_v44, 2  ;;  %v5539_v58 = vsel %vm5537_vm14, %v5527_v2, 2102212464 }
 0x540   :  { %v5464_v11 = vsub.s32 0, %v9664_v3  ;;  %v5544_v57 = vsel %vm5536_vm15, %v5527_v2, %v5543_v50  ;;  %v5518_v35 = vshrl.u32 %v9825_v38, %v5517_v22  ;;  %v5548_v43 = vsel %vm5536_vm15, %v5530_v32, %v5547_v20 }
 0x541   :  { %v5545_v59 = vsel %vm5535_vm0, %v5542_v9, %v5544_v57  ;;  %v5550_v41 = vshll.u32 %v5510_v45, 8  ;;  %v5266_v12 = vsub.s32 4294967266, %v5261_v33  ;;  %v5370_v28 = vsub.s32 4294967266, %v5365_v1 }
 0x542   :  { %v6231_v49 = vmin.u32 %v5464_v11, %v9664_v3  ;;  %v5549_v18 = vsel %vm5535_vm0, %v5546_v15, %v5548_v43  ;;  %v5538_v17 = vsel %vm5534_vm13, %v5518_v35, %v5521_v60  ;;  %v5540_v29 = vsel %vm5536_vm15, %v5524_v54, %v5539_v58 }
 0x543   :  { %v9678_v52 = vmul.u32.u64.low %v5550_v41, %v5549_v18  ;;  %v9679_v14 = vmul.u32.u64.high %v5550_v41, %v5549_v18, %v9678_v52  ;;  %v9681_v37 = vmul.u32.u64.low %v5550_v41, %v5545_v59  ;;  %v9682_v38 = vmul.u32.u64.high %v5550_v41, %v5545_v59, %v9681_v37 }
 0x544   :  { %v5466_v4 = vclz %v6231_v49  ;;  %v5267_v22 = vadd.s32 127, %v5266_v12  ;;  %v5541_v21 = vsel %vm5535_vm0, %v5538_v17, %v5540_v29  ;;  %v5371_v51 = vadd.s32 127, %v5370_v28 }
 0x545   :  { %vm5559_vm3 = vc.u32 %v9679_v14, %v9681_v37  ;;  %v5262_v36 = vsub.s32 32, %v5261_v33  ;;  %v5560_v60 = vadd.s32 1, %v9682_v38  ;;  %v5246_v46 = vadd.s32 %v9560_v39, %v9557_v5 }
 0x546   :  { %v6232_v56 = vadd.s32 4294967294, %v5466_v4  ;;  %v5366_v47 = vsub.s32 32, %v5365_v1  ;;  %v5557_v27 = vmul.u32 %v5550_v41, %v5541_v21  ;;  %v5268_v6 = vshll.u32 %v5267_v22, 23 }
 0x547   :  { %v5561_v44 = vsel %vm5559_vm3, %v5560_v60, %v9682_v38  ;;  %v5350_v30 = vadd.s32 %v9582_v19, %v9589_v16  ;;  %v5372_v2 = vshll.u32 %v5371_v51, 23  ;;  %v5264_v34 = vshrl.u32 %v5246_v46, %v5262_v36 }
 0x548   :  { %vm6233_vm2 = vcmp.lt.s32.totalorder %v6232_v56, 0  ;;  %v5562_v32 = vadd.s32 %v5561_v44, %v5557_v27  ;;  %v5454_v45 = vadd.s32 %v9628_v53, %v9640_v7  ;;  %v5263_v5 = vshll.u32 %v9618_v48, %v5261_v33 }
 0x549   :  { %v5469_v61 = vsel %vm6233_vm2, 0, %v6232_v56  ;;  %v5368_v9 = vshrl.u32 %v5350_v30, %v5366_v47  ;;  %v5269_v39 = vor.u32 4788187, %v5268_v6  ;;  %v5367_v20 = vshll.u32 %v9623_v26, %v5365_v1 }
 0x54a   :  { %v5474_v23 = vsub.s32 4294967266, %v5469_v61  ;;  %v5470_v54 = vsub.s32 32, %v5469_v61  ;;  %v5563_v50 = vadd.s32 536870912, %v5562_v32  ;;  %v5373_v49 = vor.u32 4788187, %v5372_v2 }
 0x54b   :  { %v5265_v57 = vor.u32 %v5264_v34, %v5263_v5  ;;  %v5471_v19 = vshll.u32 %v9664_v3, %v5469_v61  ;;  %v5369_v35 = vor.u32 %v5368_v9, %v5367_v20  ;;  %v5270_v53 = vand.u32 2147483647, %v5269_v39 }
 0x54c   :  { %v5475_v24 = vadd.s32 127, %v5474_v23  ;;  %v5472_v15 = vshrl.u32 %v5454_v45, %v5470_v54  ;;  %v9698_v58 = vshrl.u32 %v5563_v50, 30  ;;  %v5374_v43 = vand.u32 2147483647, %v5373_v49 }
 0x54d   :  { %v5272_v12 = vcvt.s32.f32 %v5265_v57  ;;  %v5376_v33 = vcvt.s32.f32 %v5369_v35  ;;  %vm5296_vm5 = vcmp.lt.s32.totalorder %v9518_v0, 0  ;;  %vm5400_vm7 = vcmp.lt.s32.totalorder %v9524_v62, 0 }
 0x54e   :  { %v5476_v11 = vshll.u32 %v5475_v24, 23  ;;  %v5565_v59 = vshll.u32 %v9698_v58, 30  ;;  %v5473_v7 = vor.u32 %v5472_v15, %v5471_v19  ;;  %v5558_v61 = vadd.s32 %v9681_v37, %v9679_v14 }
 0x54f   :  { %v5273_v4 = vmul.f32 %v5272_v12, %v5270_v53  ;;  %v5377_v1 = vmul.f32 %v5376_v33, %v5374_v43  ;;  %vm9713_vm8 = vcmp.le.f32.partialorder %v5190_v55, 0.7853982  ;;  %vm9719_vm9 = vcmp.le.f32.partialorder %v5294_v42, 0.7853982 }
 0x550   :  { %v5477_v16 = vor.u32 4788187, %v5476_v11  ;;  %v5566_v41 = vsub.s32 %v5562_v32, %v5565_v59  ;;  %v5480_v26 = vcvt.s32.f32 %v5473_v7  ;;  %vm9733_vm6 = vcmp.le.f32.partialorder %v5398_v8, 0.7853982 }
 0x551   :  { %v5274_v52 = vxor.u32 2147483648, %v5273_v4  ;;  %v5378_v3 = vxor.u32 2147483648, %v5377_v1  ;;  %v5484_v34 = vsub.s32 4, %v9655_v25  ;;  %v5380_v45 = vsub.s32 4, %v9614_v13 }
 0x552   :  { %v5478_v48 = vand.u32 2147483647, %v5477_v16  ;;  %v5568_v28 = vsub.s32 0, %v5566_v41  ;;  %v5276_v11 = vsub.s32 4, %v9592_v40  ;;  %vm5504_vm10 = vcmp.lt.s32.totalorder %v9595_v31, 0 }
 0x553   :  { %v5275_v22 = vsel %vm5192_vm1, %v5274_v52, %v5273_v4  ;;  %v5379_v51 = vsel %vm5296_vm5, %v5378_v3, %v5377_v1  ;;  %v5485_v50 = vsel %vm5400_vm7, %v5484_v34, %v9655_v25  ;;  %v5588_v5 = vsub.s32 4, %v9698_v58 }
 0x554   :  { %v6235_v18 = vmin.u32 %v5568_v28, %v5566_v41  ;;  %v5481_v17 = vmul.f32 %v5480_v26, %v5478_v48  ;;  %v5278_v14 = vsel %vm9713_vm8, %v9514_v10, %v5275_v22  ;;  %v5382_v55 = vsel %vm9719_vm9, %v9518_v0, %v5379_v51 }
 0x555   :  { %7003 = vcosq.f32 %v5278_v14  ;;  %vm9750_vm11 = vcmp.le.f32.partialorder %v5502_v63, 0.7853982  ;;  %v5381_v20 = vsel %vm5296_vm5, %v5380_v45, %v9614_v13  ;;  %v5277_v49 = vsel %vm5192_vm1, %v5276_v11, %v9592_v40 }
 0x556   :  { %v5570_v29 = vclz %v6235_v18  ;;  %v5482_v38 = vxor.u32 2147483648, %v5481_v17  ;;  %7005 = vcosq.f32 %v5382_v55  ;;  %v5487_v57 = vsel %vm9733_vm6, 0, %v5485_v50 }
 0x557   :  { %v5383_v63 = vsel %vm9719_vm9, 0, %v5381_v20  ;;  %v5589_v19 = vsel %vm5504_vm10, %v5588_v5, %v9698_v58  ;;  %v5279_v13 = vsel %vm9713_vm8, 0, %v5277_v49  ;;  %v5491_v40 = vadd.s32 3, %v5487_v57 }
 0x558   :  { %v6236_v56 = vadd.s32 4294967294, %v5570_v29  ;;  %v5483_v47 = vsel %vm5400_vm7, %v5482_v38, %v5481_v17  ;;  %v5387_v53 = vadd.s32 3, %v5383_v63  ;;  %v5591_v7 = vsel %vm9750_vm11, 0, %v5589_v19 }
 0x559   :  { %v5486_v54 = vsel %vm9733_vm6, %v9524_v62, %v5483_v47  ;;  %v5595_v33 = vadd.s32 3, %v5591_v7  ;;  %v5492_v28 = vand.u32 3, %v5491_v40  ;;  %vm5490_vm9 = vweird.f32 %v9524_v62  ;;  %v6238_v62 = vld [vmem:[%s9793_s8] ss:$0 sm:$0xff] }
 0x55a   :  { %vm6237_vm4 = vcmp.lt.s32.totalorder %v6236_v56, 0  ;;  %7007 = vcosq.f32 %v5486_v54  ;;  %v5388_v4 = vand.u32 3, %v5387_v53  ;;  %vm5386_vm6 = vweird.f32 %v9518_v0 }
 0x55b   :  { %v5573_v21 = vsel %vm6237_vm4, 0, %v6236_v56  ;;  %7009 = vsinq.f32 %v5486_v54  ;;  %v5596_v3 = vand.u32 3, %v5595_v33  ;;  %vm5494_vm12 = vcmp.eq.s32.totalorder %v5492_v28, 0 }
 0x55c   :  { %v5574_v36 = vsub.s32 32, %v5573_v21  ;;  %v5578_v23 = vsub.s32 4294967266, %v5573_v21  ;;  %v5575_v37 = vshll.u32 %v5566_v41, %v5573_v21  ;;  %7011 = vsinq.f32 %v5382_v55 }
 0x55d   :  { %7013 = vsinq.f32 %v5278_v14  ;;  %v5283_v41 = vadd.s32 3, %v5279_v13  ;;  %vm5497_vm13 = vcmp.eq.s32.totalorder %v5492_v28, 2  ;;  %vm5390_vm14 = vcmp.eq.s32.totalorder %v5388_v4, 0 }
 0x55e   :  { %v5576_v27 = vshrl.u32 %v5558_v61, %v5574_v36  ;;  %v5579_v6 = vadd.s32 127, %v5578_v23  ;;  %vm5393_vm15 = vcmp.eq.s32.totalorder %v5388_v4, 2  ;;  %vm5493_vm3 = vcmp.lt.s32.totalorder %v5492_v28, 2 }
 0x55f   :  { %v5284_v17 = vand.u32 3, %v5283_v41  ;;  %vm5389_vm1 = vcmp.lt.s32.totalorder %v5388_v4, 2  ;;  %vm5601_vm4 = vcmp.eq.s32.totalorder %v5596_v3, 2  ;;  %vm5598_vm5 = vcmp.eq.s32.totalorder %v5596_v3, 0 }
 0x560   :  { %v5577_v24 = vor.u32 %v5576_v27, %v5575_v37  ;;  %v5580_v44 = vshll.u32 %v5579_v6, 23  ;;  %vm5597_vm8 = vcmp.lt.s32.totalorder %v5596_v3, 2 }
 0x561   :  { %vm5286_vm0 = vcmp.eq.s32.totalorder %v5284_v17, 0  ;;  %vm5289_vm2 = vcmp.eq.s32.totalorder %v5284_v17, 2  ;;  %vm5285_vm7 = vcmp.lt.s32.totalorder %v5284_v17, 2 }
 0x562   :  { %v5581_v30 = vor.u32 4788187, %v5580_v44  ;;  %v5584_v32 = vcvt.s32.f32 %v5577_v24  ;;  %v7004_v16 = vpop.eup %7003 }
 0x563   :  { %v7006_v35 = vpop.eup %7005  ;;  %v5290_v52 = vxor.u32 2147483648, %v7004_v16 }
 0x564   :  { %v5582_v2 = vand.u32 2147483647, %v5581_v30  ;;  %v5394_v18 = vxor.u32 2147483648, %v7006_v35 }
 0x566   :  { %v5585_v8 = vmul.f32 %v5584_v32, %v5582_v2 }
 0x567   :  { %v7008_v59 = vpop.eup %7007 }
 0x568   :  { %v5586_v9 = vxor.u32 2147483648, %v5585_v8  ;;  %v7010_v43 = vpop.eup %7009  ;;  %v5498_v58 = vxor.u32 2147483648, %v7008_v59 }
 0x569   :  { %v7012_v12 = vpop.eup %7011  ;;  %v5495_v26 = vxor.u32 2147483648, %v7010_v43 }
 0x56a   :  { %v5587_v15 = vsel %vm5504_vm10, %v5586_v9, %v5585_v8  ;;  %v7014_v48 = vpop.eup %7013  ;;  %v5391_v1 = vxor.u32 2147483648, %v7012_v12  ;;  %v5499_v38 = vsel %vm5497_vm13, %v5498_v58, %v7010_v43  ;;  %v5395_v51 = vsel %vm5393_vm15, %v5394_v18, %v7012_v12 }
 0x56b   :  { %v5590_v25 = vsel %vm9750_vm11, %v9595_v31, %v5587_v15  ;;  %v5287_v29 = vxor.u32 2147483648, %v7014_v48  ;;  %v5496_v56 = vsel %vm5494_vm12, %v7008_v59, %v5495_v26  ;;  %v5291_v60 = vsel %vm5289_vm2, %v5290_v52, %v7014_v48 }
 0x56c   :  { %7015 = vcosq.f32 %v5590_v25  ;;  %v5392_v21 = vsel %vm5390_vm14, %v7006_v35, %v5391_v1  ;;  %v5500_v47 = vsel %vm5493_vm3, %v5496_v56, %v5499_v38  ;;  %vm5594_vm10 = vweird.f32 %v9595_v31 }
 0x56d   :  { %7017 = vsinq.f32 %v5590_v25  ;;  %v5288_v23 = vsel %vm5286_vm0, %v7004_v16, %v5287_v29  ;;  %v5396_v14 = vsel %vm5389_vm1, %v5392_v21, %v5395_v51  ;;  %v5501_v42 = vsel %vm5490_vm9, nan, %v5500_v47 }
 0x56e   :  { %v5292_v6 = vsel %vm5285_vm7, %v5288_v23, %v5291_v60  ;;  %v5397_v54 = vsel %vm5386_vm6, nan, %v5396_v14  ;;  %vm5282_vm11 = vweird.f32 %v9514_v10 }
 0x56f   :  { %v5293_v30 = vsel %vm5282_vm11, nan, %v5292_v6 }
 0x570   :  { %v5606_v2 = vpack.c.bf16 %v5501_v42, %v5293_v30 }
 0x579   :  { %v7016_v22 = vpop.eup %7015 }
 0x57a   :  { %v7018_v61 = vpop.eup %7017  ;;  %v5602_v36 = vxor.u32 2147483648, %v7016_v22 }
 0x57b   :  { %v5599_v46 = vxor.u32 2147483648, %v7018_v61 }
 0x57c   :  { %v5603_v37 = vsel %vm5601_vm4, %v5602_v36, %v7018_v61 }
 0x57d   :  { %v5600_v27 = vsel %vm5598_vm5, %v7016_v22, %v5599_v46 }
 0x57e   :  { %v5604_v55 = vsel %vm5597_vm8, %v5600_v27, %v5603_v37 }
 0x57f   :  { %v5605_v24 = vsel %vm5594_vm10, nan, %v5604_v55 }
 0x580   :  { %v5607_v44 = vpack.c.bf16 %v5605_v24, %v5397_v54 }
 0x582   :  { %5775 = vmatprep.mubr.bf16.mxu0 %v5607_v44 }
 0x583   :  { %5776 = vmatmul.mubr.bf16.vlgmr.msra.gmra.mxu0 %v5606_v2 }
 0x643   :  { %v6271_v32 = vpop.f32.mrf.mxu0 }
 0x645   :  { %v6272_v34 = vpop.f32.mrf.mxu0 }
 0x646   :  { %v6273_v0 = vadd.f32 %v6272_v34, %v6271_v32 }
 0x647   :  { %v6274_v8 = vpop.f32.mrf.mxu0 }
 0x648   :  { %v5778_v31 = vadd.f32 %v6273_v0, %v6238_v62 }
 0x649   :  { %v6275_v45 = vpop.f32.mrf.mxu0 }
 0x64a   :  { %5784 = vst [vmem:[#allocation10] sm:$0xff] %v5778_v31  ;;  %v6276_v11 = vadd.f32 %v6275_v45, %v6274_v8 }
 0x64c   :  { %v5781_v10 = vadd.f32 %v6276_v11, %v6238_v62 }
 0x64e   :  { %5785 = vst [vmem:[#allocation10 + $0x8] sm:$0xff] %v5781_v10 }
 0x64f   :  { %7113 = shalt.err (!%p7110_p10)
}
 0x650   :  { %5797 = dma.vmem_to_hbm [thread:$0]  %s5792_s26, 256, %s9794_s9, [#allocation4], %s7135_s3, %s7135_s3, %s7136_s24  }
 0x651   :  { %7128 = dma.done.wait [#allocation4], 256  }
 0x652   :  { %7129 = vsyncadd [#allocation4], 4294967040 }
 0x653   :  { %5801 = vsyncpa [#allocation3], 1 }
 0x654   :  { %5802 = vsyncpa [#allocation6], 1 }
 0x655   :  { %5803 = vsyncpa [#allocation9], 1 }
 0x656   :  { %5804 = vsyncpa [#allocation4], 1 }

</bundles_post_ra>
